<compile_context>
chip_gen: v5e
topology: v5e:2x2
jax: 0.10.0
libtpu: 0.0.40
codegen_flags: <defaults>
</compile_context>

<pallas_src>
import numpy as np

import jax
import jax.numpy as jnp
from jax import lax
from jax.experimental import pallas as pl
from jax.experimental.pallas import tpu as pltpu

KSIZE = 5                                        # CNN5x5 default kernel_size
LAY1, LAY2, LAY3 = 32 // 8, 64 // 8, 128 // 8    # 4, 8, 16 channels
REDUCTION = 16
NEG_SLOPE = 0.01                                 # nn.LeakyReLU default
BN_EPS = 1e-5


def _leaky_relu(x):
    return jnp.where(x > 0, x, NEG_SLOPE * x)


# --------------------------------------------------------------------------------------
# Fused kernel
# --------------------------------------------------------------------------------------
def _make_fused_kernel(Nb, H, W, K, layer_shapes):
    """layer_shapes: tuple of (cin, cout, se_hidden) per conv layer.  Nb = batch tile."""
    pad = K // 2
    n_layers = len(layer_shapes)

    def kernel(*refs):
        # ---- unpack (in_refs..., out_ref, scratch_refs...) ----
        pos = 0
        x_ref = refs[pos]; pos += 1
        layer_param_refs = []
        for (_, _, hidden) in layer_shapes:
            n = 4 if hidden > 0 else 2
            layer_param_refs.append(refs[pos:pos + n])
            pos += n
        bf_ref = refs[pos]; pos += 1
        fbias_ref = refs[pos]; pos += 1
        o_ref = refs[pos]; pos += 1
        lhs_refs = refs[pos:pos + n_layers]

        # activations stay in an H-major channels-interleaved (H, Nb, W*C) layout, so
        # every reshape below is a leading-dim merge/split (free view).
        a = x_ref[...]                                            # (H, Nb, W*cin)
        for (cin, cout, hidden), prefs, lhs_ref in zip(layer_shapes, layer_param_refs,
                                                       lhs_refs):
            bs_ref, bi_ref = prefs[:2]
            wc = W * cin

            # Build the im2col LHS (H, Nb, K*W*cin): band kh holds the input rows
            # shifted by kh - pad; only the few out-of-range rows are zeroed ('same'
            # H padding).  'same' W padding is folded into the banded weights.
            for kh in range(K):
                off = kh - pad
                lo = max(0, -off)
                hi = min(H, H - off)
                if lo > 0:
                    lhs_ref[0:lo, :, kh * wc:(kh + 1) * wc] = (
                        jnp.zeros((lo, Nb, wc), jnp.float32))
                if hi < H:
                    lhs_ref[hi:H, :, kh * wc:(kh + 1) * wc] = (
                        jnp.zeros((H - hi, Nb, wc), jnp.float32))
                lhs_ref[lo:hi, :, kh * wc:(kh + 1) * wc] = a[lo + off:hi + off]

            # one deep-contraction MXU matmul per layer; BN scale (and the constant 0.5
            # SE gate when hidden == 0) is already folded into the weight columns.
            acc = jnp.dot(lhs_ref[...].reshape(H * Nb, K * wc), bs_ref[...],
                          preferred_element_type=jnp.float32)     # (H*Nb, W*cout)
            feat = _leaky_relu(acc + bi_ref[...])
            feat3 = feat.reshape(H, Nb, W * cout)

            # ---- Squeeze-and-Excitation ----
            if hidden == 0:
                # Linear(cout, 0) -> Linear(0, cout) yields exact zeros, so the gate is
                # sigmoid(0) == 0.5 for every channel; folded into the conv weights/bias.
                a = feat3
            else:
                w1_ref, w2_ref = prefs[2:4]
                hsum = jnp.sum(feat3, axis=0)                     # (Nb, W*cout)
                # avg-pool matrix folded into w1, channel-broadcast matrix into w2
                mid = _leaky_relu(jnp.dot(hsum, w1_ref[...],
                                          preferred_element_type=jnp.float32))
                exc = jax.nn.sigmoid(jnp.dot(mid, w2_ref[...],
                                             preferred_element_type=jnp.float32))
                a = feat3 * exc[None, :, :]

        # final 1x1 conv to one channel (banded weight), stored H-major (H, Nb, W)
        c_last = layer_shapes[-1][1]
        out = jnp.dot(a.reshape(H * Nb, W * c_last), bf_ref[...],
                      preferred_element_type=jnp.float32) + fbias_ref[...]
        o_ref[...] = out.reshape(H, Nb, W)

    return kernel


def _pick_batch_tile(N):
    """Batch-tile size: prefer multiples of 8 (sublane aligned) that split N into >1
    grid steps (weights reused across steps, megacore on v7x); tiny batches = 1 block."""
    for nb in (32, 16, 8):
        if N % nb == 0 and N > nb:
            return nb
    return N


def cnn5x5_forward(x_nchw, kp):
    """PyTorch-equivalent forward.  x_nchw: (N, C, H, W) f32 -> (N, H, W) f32."""
    N, C0, H, W = x_nchw.shape
    K = kp["K"]
    layer_shapes = kp["layer_shapes"]
    assert layer_shapes[0][0] == C0, (layer_shapes, C0)
    Nb = _pick_batch_tile(N)
    T = N // Nb

    # NCHW -> H-major channels-interleaved (H, N, W*C) lane layout (one XLA glue op).
    x_flat = jnp.transpose(x_nchw, (2, 0, 3, 1)).reshape(H, N, W * C0)

    def _const_spec(arr):
        # whole array in VMEM, same block for every grid step -> DMA'd once and reused
        return pl.BlockSpec(arr.shape, lambda b: (0,) * arr.ndim)

    flat_inputs = [x_flat]
    in_specs = [pl.BlockSpec((H, Nb, W * C0), lambda b: (0, b, 0))]
    for entry, (cin, cout, hidden) in zip(kp["layers"], layer_shapes):
        names = ("Bs", "bias_t") + (("se_w1", "se_w2") if hidden > 0 else ())
        for name in names:
            arr = entry[name]
            flat_inputs.append(arr)
            in_specs.append(_const_spec(arr))
    for arr in (kp["Bf"], kp["fbias"]):
        flat_inputs.append(arr)
        in_specs.append(_const_spec(arr))

    kernel = _make_fused_kernel(Nb, H, W, K, layer_shapes)
    out = pl.pallas_call(
        kernel,
        out_shape=jax.ShapeDtypeStruct((H, N, W), jnp.float32),
        grid_spec=pltpu.PrefetchScalarGridSpec(
            num_scalar_prefetch=0,
            grid=(T,),
            in_specs=in_specs,
            out_specs=pl.BlockSpec((H, Nb, W), lambda b: (0, b, 0)),
            scratch_shapes=[pltpu.VMEM((H, Nb, K * W * cin), jnp.float32)
                            for (cin, _, _) in layer_shapes]),
        compiler_params=pltpu.CompilerParams(
            dimension_semantics=("parallel",),
            vmem_limit_bytes=32 * 1024 * 1024),
    )(*flat_inputs)
    # (H, N, W) -> (N, H, W): host-side layout glue.
    return jnp.transpose(out, (1, 0, 2))


# --------------------------------------------------------------------------------------
# Parameters: raw (PyTorch-like) + host-side folding into kernel-friendly form
# --------------------------------------------------------------------------------------
def init_params(key, input_channels, K=KSIZE, reduction=REDUCTION):
    """Deterministic synthetic parameters mirroring the PyTorch module's shapes."""

    def conv_init(k, cin, cout, ksz):
        kw_, kb_ = jax.random.split(k)
        bound = 1.0 / float(cin * ksz * ksz) ** 0.5
        w = jax.random.uniform(kw_, (ksz, ksz, cin, cout), jnp.float32, -bound, bound)
        b = jax.random.uniform(kb_, (cout,), jnp.float32, -bound, bound)
        return w, b

    def bn_init(k, c):
        k1, k2, k3, k4 = jax.random.split(k, 4)
        gamma = 1.0 + 0.1 * jax.random.normal(k1, (c,), jnp.float32)
        beta = 0.1 * jax.random.normal(k2, (c,), jnp.float32)
        rmean = 0.1 * jax.random.normal(k3, (c,), jnp.float32)
        rvar = jax.random.uniform(k4, (c,), jnp.float32, 0.5, 1.5)
        return gamma, beta, rmean, rvar

    def se_init(k, c):
        hidden = c // reduction
        if hidden == 0:
            return None, None, 0
        k1, k2 = jax.random.split(k)
        b1 = 1.0 / float(c) ** 0.5
        w1 = jax.random.uniform(k1, (c, hidden), jnp.float32, -b1, b1)
        b2 = 1.0 / float(hidden) ** 0.5
        w2 = jax.random.uniform(k2, (hidden, c), jnp.float32, -b2, b2)
        return w1, w2, hidden

    keys = jax.random.split(key, 4)
    layers = []
    cin = input_channels
    for k, cout in zip(keys[:3], (LAY1, LAY2, LAY3)):
        kc, kb, ks = jax.random.split(k, 3)
        w, b = conv_init(kc, cin, cout, K)
        gamma, beta, rmean, rvar = bn_init(kb, cout)
        se_w1, se_w2, hidden = se_init(ks, cout)
        layers.append(dict(cin=cin, cout=cout, hidden=hidden, w=w, b=b,
                           gamma=gamma, beta=beta, mean=rmean, var=rvar,
                           se_w1=se_w1, se_w2=se_w2))
        cin = cout

    kfw, kfb = jax.random.split(keys[3])
    bound = 1.0 / float(LAY3) ** 0.5
    final_w = jax.random.uniform(kfw, (LAY3,), jnp.float32, -bound, bound)
    final_b = jax.random.uniform(kfb, (), jnp.float32, -bound, bound)
    return dict(layers=layers, final_w=final_w, final_b=final_b, K=K)


def _banded_weight_stacked(w_kkio, W, scale):
    """Stack the K row-bands into one (K*W*Cin, W*Cout) matrix, folding the per-output-
    channel `scale` (conv-bias/BN/SE-0.5 scaling) into the columns.

    Bs[(kh*W + wi)*Cin + ci, wo*Cout + co] = w[kh, kw, ci, co] * scale[co]
    with wi = wo + kw - pad; out-of-range wi dropped -> 'same' zero padding along W.
    """
    K, _, cin, cout = w_kkio.shape
    pad = K // 2
    wn = (np.asarray(w_kkio, np.float32)
          * np.asarray(scale, np.float32)[None, None, None, :])
    B = np.zeros((K, W * cin, W * cout), np.float32)
    for kh in range(K):
        for kw in range(K):
            for wo in range(W):
                wi = wo + kw - pad
                if 0 <= wi < W:
                    B[kh, wi * cin:(wi + 1) * cin, wo * cout:(wo + 1) * cout] = wn[kh, kw]
    return jnp.asarray(B.reshape(K * W * cin, W * cout))


def prepare_kernel_params(params, H, W):
    """Host-side folding: stacked banded conv weights with BN(eval) scale folded in,
    bias pre-tiled to the W*C lane layout, SE weights with pool/broadcast matrices
    folded in, and the banded final 1x1 conv."""
    K = params["K"]
    layers = []
    layer_shapes = []
    for lp in params["layers"]:
        cin, cout, hidden = lp["cin"], lp["cout"], lp["hidden"]
        scale = np.asarray(lp["gamma"]) / np.sqrt(np.asarray(lp["var"]) + BN_EPS)
        bias = (np.asarray(lp["b"]) - np.asarray(lp["mean"])) * scale + np.asarray(lp["beta"])
        if hidden == 0:
            # SE degenerates to a constant x0.5 gate (sigmoid(0)); LeakyReLU is
            # positively homogeneous, so fold the 0.5 into the conv scale/bias.
            scale = 0.5 * scale
            bias = 0.5 * bias
        entry = dict(
            Bs=_banded_weight_stacked(lp["w"], W, scale),
            bias_t=jnp.asarray(np.tile(bias.astype(np.float32), W)[None, :]),
        )
        if hidden > 0:
            # fold the global-avg-pool matrix into w1 and the channel-broadcast matrix
            # into w2 (pure averaging / replication, so exact).
            w1 = np.asarray(lp["se_w1"], np.float32)
            w2 = np.asarray(lp["se_w2"], np.float32)
            entry["se_w1"] = jnp.asarray(np.tile(w1 / float(H * W), (W, 1)))  # (W*cout, h)
            entry["se_w2"] = jnp.asarray(np.tile(w2, (1, W)))                 # (h, W*cout)
        layers.append(entry)
        layer_shapes.append((cin, cout, hidden))

    c_last = params["layers"][-1]["cout"]
    fw = np.asarray(params["final_w"], dtype=np.float32)
    Bf = np.zeros((W * c_last, W), np.float32)               # banded 1x1 conv weight
    for wv in range(W):
        Bf[wv * c_last:(wv + 1) * c_last, wv] = fw
    fbias = np.full((1, W), float(params["final_b"]), np.float32)
    return dict(layers=layers, layer_shapes=tuple(layer_shapes), K=K,
                Bf=jnp.asarray(Bf), fbias=jnp.asarray(fbias))


# --------------------------------------------------------------------------------------
# Plain-XLA reference of the same forward (eval-mode BN), for a sanity check
# --------------------------------------------------------------------------------------
def reference_forward(x_nchw, params):
    hi = lax.Precision.HIGHEST
    x = jnp.transpose(x_nchw, (0, 2, 3, 1))
    for lp in params["layers"]:
        y = lax.conv_general_dilated(
            x, lp["w"], window_strides=(1, 1), padding="SAME",
            dimension_numbers=("NHWC", "HWIO", "NHWC"), precision=hi) + lp["b"]
        y = (y - lp["mean"]) * (lp["gamma"] / jnp.sqrt(lp["var"] + BN_EPS)) + lp["beta"]
        y = _leaky_relu(y)
        pooled = jnp.mean(y, axis=(1, 2))
        if lp["hidden"] == 0:
            exc = jnp.full_like(pooled, 0.5)
        else:
            mid = _leaky_relu(jnp.dot(pooled, lp["se_w1"], precision=hi))
            exc = jax.nn.sigmoid(jnp.dot(mid, lp["se_w2"], precision=hi))
        x = y * exc[:, None, None, :]
    return jnp.einsum("nhwc,c->nhw", x, params["final_w"], precision=hi) + params["final_b"]


if __name__ == "__main__":
    key = jax.random.PRNGKey(0)
    kx, kp_key, kx2 = jax.random.split(key, 3)

    N, Cin, H, W = 2, 4, 16, 16
    x = jax.random.normal(kx, (N, Cin, H, W), jnp.float32)

    params = init_params(kp_key, Cin)
    kparams = prepare_kernel_params(params, H, W)

    out = jax.block_until_ready(cnn5x5_forward(x, kparams))
    assert out.shape == (N, H, W), out.shape
    assert out.dtype == jnp.float32
    assert bool(jnp.all(jnp.isfinite(out)))

    ref = reference_forward(x, params)
    max_err = float(jnp.max(jnp.abs(out - ref)))
    assert max_err < 2e-2, f"kernel/reference mismatch: max |err| = {max_err}"

    # also exercise the batched-grid path (2 batch tiles of 8 on a "parallel" grid axis,
    # banded weights fetched once and reused across tiles)
    N2 = 16
    x2 = jax.random.normal(kx2, (N2, Cin, H, W), jnp.float32)
    out2 = jax.block_until_ready(cnn5x5_forward(x2, kparams))
    ref2 = reference_forward(x2, params)
    assert out2.shape == (N2, H, W), out2.shape
    max_err2 = float(jnp.max(jnp.abs(out2 - ref2)))
    assert max_err2 < 2e-2, f"batched-grid mismatch: max |err| = {max_err2}"

    print("KERNEL_OK")
</pallas_src>

<mosaic_0001>
module attributes {stable_mosaic.version = 11 : i64} {
  func.func @kernel(%arg0: i32, %arg1: memref<16x2x64xf32, #tpu.memory_space<vmem>>, %arg2: memref<320x64xf32, #tpu.memory_space<vmem>>, %arg3: memref<1x64xf32, #tpu.memory_space<vmem>>, %arg4: memref<320x128xf32, #tpu.memory_space<vmem>>, %arg5: memref<1x128xf32, #tpu.memory_space<vmem>>, %arg6: memref<640x256xf32, #tpu.memory_space<vmem>>, %arg7: memref<1x256xf32, #tpu.memory_space<vmem>>, %arg8: memref<256x1xf32, #tpu.memory_space<vmem>>, %arg9: memref<1x256xf32, #tpu.memory_space<vmem>>, %arg10: memref<256x16xf32, #tpu.memory_space<vmem>>, %arg11: memref<1x16xf32, #tpu.memory_space<vmem>>, %arg12: memref<16x2x16xf32, #tpu.memory_space<vmem>>, %arg13: memref<16x2x320xf32, #tpu.memory_space<vmem>>, %arg14: memref<16x2x320xf32, #tpu.memory_space<vmem>>, %arg15: memref<16x2x640xf32, #tpu.memory_space<vmem>>) attributes {dimension_semantics = [#tpu.dimension_semantics<parallel>], iteration_bounds = array<i64: 1>, scalar_prefetch = 0 : i64, scratch_operands = 3 : i64, tpu.core_type = #tpu.core_type<tc>, window_params = [{transform_indices = @transform_0, window_bounds = array<i64: 16, 2, 64>}, {pipeline_mode = #tpu.pipeline_mode<synchronous>, transform_indices = @transform_1, window_bounds = array<i64: 320, 64>}, {pipeline_mode = #tpu.pipeline_mode<synchronous>, transform_indices = @transform_2, window_bounds = array<i64: 1, 64>}, {pipeline_mode = #tpu.pipeline_mode<synchronous>, transform_indices = @transform_3, window_bounds = array<i64: 320, 128>}, {pipeline_mode = #tpu.pipeline_mode<synchronous>, transform_indices = @transform_4, window_bounds = array<i64: 1, 128>}, {pipeline_mode = #tpu.pipeline_mode<synchronous>, transform_indices = @transform_5, window_bounds = array<i64: 640, 256>}, {pipeline_mode = #tpu.pipeline_mode<synchronous>, transform_indices = @transform_6, window_bounds = array<i64: 1, 256>}, {pipeline_mode = #tpu.pipeline_mode<synchronous>, transform_indices = @transform_7, window_bounds = array<i64: 256, 1>}, {pipeline_mode = #tpu.pipeline_mode<synchronous>, transform_indices = @transform_8, window_bounds = array<i64: 1, 256>}, {pipeline_mode = #tpu.pipeline_mode<synchronous>, transform_indices = @transform_9, window_bounds = array<i64: 256, 16>}, {pipeline_mode = #tpu.pipeline_mode<synchronous>, transform_indices = @transform_10, window_bounds = array<i64: 1, 16>}, {transform_indices = @transform_11, window_bounds = array<i64: 16, 2, 16>}]} {
    %c0 = arith.constant 0 : index
    %c0_0 = arith.constant 0 : index
    %c0_1 = arith.constant 0 : index
    %0 = vector.load %arg1[%c0, %c0_0, %c0_1] : memref<16x2x64xf32, #tpu.memory_space<vmem>>, vector<16x2x64xf32>
    %cst = arith.constant 0.000000e+00 : f32
    %1 = vector.broadcast %cst : f32 to vector<2x2x64xf32>
    %c0_2 = arith.constant 0 : index
    %c0_3 = arith.constant 0 : index
    %c0_4 = arith.constant 0 : index
    %2 = vector.load %arg13[%c0_2, %c0_3, %c0_4] : memref<16x2x320xf32, #tpu.memory_space<vmem>>, vector<2x2x64xf32>
    tpu.vector_store %arg13[%c0_2, %c0_3, %c0_4], %1 {strides = array<i32>} : memref<16x2x320xf32, #tpu.memory_space<vmem>>, vector<2x2x64xf32>,
    %3 = vector.extract_strided_slice %0 {offsets = [0, 0, 0], sizes = [14, 2, 64], strides = [1, 1, 1]} : vector<16x2x64xf32> to vector<14x2x64xf32>
    %c2 = arith.constant 2 : index
    %c0_5 = arith.constant 0 : index
    %c0_6 = arith.constant 0 : index
    %4 = vector.load %arg13[%c2, %c0_5, %c0_6] : memref<16x2x320xf32, #tpu.memory_space<vmem>>, vector<14x2x64xf32>
    tpu.vector_store %arg13[%c2, %c0_5, %c0_6], %3 {strides = array<i32>} : memref<16x2x320xf32, #tpu.memory_space<vmem>>, vector<14x2x64xf32>,
    %cst_7 = arith.constant 0.000000e+00 : f32
    %5 = vector.broadcast %cst_7 : f32 to vector<1x2x64xf32>
    %c0_8 = arith.constant 0 : index
    %c0_9 = arith.constant 0 : index
    %c64 = arith.constant 64 : index
    %6 = vector.load %arg13[%c0_8, %c0_9, %c64] : memref<16x2x320xf32, #tpu.memory_space<vmem>>, vector<1x2x64xf32>
    tpu.vector_store %arg13[%c0_8, %c0_9, %c64], %5 {strides = array<i32>} : memref<16x2x320xf32, #tpu.memory_space<vmem>>, vector<1x2x64xf32>,
    %7 = vector.extract_strided_slice %0 {offsets = [0, 0, 0], sizes = [15, 2, 64], strides = [1, 1, 1]} : vector<16x2x64xf32> to vector<15x2x64xf32>
    %c1 = arith.constant 1 : index
    %c0_10 = arith.constant 0 : index
    %c64_11 = arith.constant 64 : index
    %8 = vector.load %arg13[%c1, %c0_10, %c64_11] : memref<16x2x320xf32, #tpu.memory_space<vmem>>, vector<15x2x64xf32>
    tpu.vector_store %arg13[%c1, %c0_10, %c64_11], %7 {strides = array<i32>} : memref<16x2x320xf32, #tpu.memory_space<vmem>>, vector<15x2x64xf32>,
    %c0_12 = arith.constant 0 : index
    %c0_13 = arith.constant 0 : index
    %c128 = arith.constant 128 : index
    %9 = vector.load %arg13[%c0_12, %c0_13, %c128] : memref<16x2x320xf32, #tpu.memory_space<vmem>>, vector<16x2x64xf32>
    tpu.vector_store %arg13[%c0_12, %c0_13, %c128], %0 {strides = array<i32>} : memref<16x2x320xf32, #tpu.memory_space<vmem>>, vector<16x2x64xf32>,
    %cst_14 = arith.constant 0.000000e+00 : f32
    %10 = vector.broadcast %cst_14 : f32 to vector<1x2x64xf32>
    %c15 = arith.constant 15 : index
    %c0_15 = arith.constant 0 : index
    %c192 = arith.constant 192 : index
    %11 = vector.load %arg13[%c15, %c0_15, %c192] : memref<16x2x320xf32, #tpu.memory_space<vmem>>, vector<1x2x64xf32>
    tpu.vector_store %arg13[%c15, %c0_15, %c192], %10 {strides = array<i32>} : memref<16x2x320xf32, #tpu.memory_space<vmem>>, vector<1x2x64xf32>,
    %12 = vector.extract_strided_slice %0 {offsets = [1, 0, 0], sizes = [15, 2, 64], strides = [1, 1, 1]} : vector<16x2x64xf32> to vector<15x2x64xf32>
    %c0_16 = arith.constant 0 : index
    %c0_17 = arith.constant 0 : index
    %c192_18 = arith.constant 192 : index
    %13 = vector.load %arg13[%c0_16, %c0_17, %c192_18] : memref<16x2x320xf32, #tpu.memory_space<vmem>>, vector<15x2x64xf32>
    tpu.vector_store %arg13[%c0_16, %c0_17, %c192_18], %12 {strides = array<i32>} : memref<16x2x320xf32, #tpu.memory_space<vmem>>, vector<15x2x64xf32>,
    %cst_19 = arith.constant 0.000000e+00 : f32
    %14 = vector.broadcast %cst_19 : f32 to vector<2x2x64xf32>
    %c14 = arith.constant 14 : index
    %c0_20 = arith.constant 0 : index
    %c256 = arith.constant 256 : index
    %15 = vector.load %arg13[%c14, %c0_20, %c256] : memref<16x2x320xf32, #tpu.memory_space<vmem>>, vector<2x2x64xf32>
    tpu.vector_store %arg13[%c14, %c0_20, %c256], %14 {strides = array<i32>} : memref<16x2x320xf32, #tpu.memory_space<vmem>>, vector<2x2x64xf32>,
    %16 = vector.extract_strided_slice %0 {offsets = [2, 0, 0], sizes = [14, 2, 64], strides = [1, 1, 1]} : vector<16x2x64xf32> to vector<14x2x64xf32>
    %c0_21 = arith.constant 0 : index
    %c0_22 = arith.constant 0 : index
    %c256_23 = arith.constant 256 : index
    %17 = vector.load %arg13[%c0_21, %c0_22, %c256_23] : memref<16x2x320xf32, #tpu.memory_space<vmem>>, vector<14x2x64xf32>
    tpu.vector_store %arg13[%c0_21, %c0_22, %c256_23], %16 {strides = array<i32>} : memref<16x2x320xf32, #tpu.memory_space<vmem>>, vector<14x2x64xf32>,
    %c0_24 = arith.constant 0 : index
    %c0_25 = arith.constant 0 : index
    %c0_26 = arith.constant 0 : index
    %18 = vector.load %arg13[%c0_24, %c0_25, %c0_26] : memref<16x2x320xf32, #tpu.memory_space<vmem>>, vector<16x2x320xf32>
    %19 = vector.shape_cast %18 : vector<16x2x320xf32> to vector<32x320xf32>
    %c0_27 = arith.constant 0 : index
    %c0_28 = arith.constant 0 : index
    %20 = vector.load %arg2[%c0_27, %c0_28] : memref<320x64xf32, #tpu.memory_space<vmem>>, vector<320x64xf32>
    %cst_29 = arith.constant dense<0.000000e+00> : vector<32x64xf32>
    %21 = tpu.matmul %19, %20, %cst_29 {dimension_numbers = #tpu.dot_dimension_numbers<[1], [0], [0], [1], [0, 0, 1, 1], [], []>} : vector<32x320xf32>, vector<320x64xf32>, vector<32x64xf32> -> vector<32x64xf32>
    %c0_30 = arith.constant 0 : index
    %c0_31 = arith.constant 0 : index
    %22 = vector.load %arg3[%c0_30, %c0_31] : memref<1x64xf32, #tpu.memory_space<vmem>>, vector<1x64xf32>
    %23 = vector.broadcast %22 : vector<1x64xf32> to vector<32x64xf32>
    %24 = arith.addf %21, %23 : vector<32x64xf32>
    %cst_32 = arith.constant 0.000000e+00 : f32
    %25 = vector.broadcast %cst_32 : f32 to vector<32x64xf32>
    %26 = arith.cmpf ogt, %24, %25 : vector<32x64xf32>
    %cst_33 = arith.constant 0.00999999977 : f32
    %27 = vector.broadcast %cst_33 : f32 to vector<32x64xf32>
    %28 = arith.mulf %27, %24 : vector<32x64xf32>
    %29 = arith.select %26, %24, %28 : vector<32x64xi1>, vector<32x64xf32>
    %30 = vector.shape_cast %29 : vector<32x64xf32> to vector<16x2x64xf32>
    %cst_34 = arith.constant 0.000000e+00 : f32
    %31 = vector.broadcast %cst_34 : f32 to vector<2x2x64xf32>
    %c0_35 = arith.constant 0 : index
    %c0_36 = arith.constant 0 : index
    %c0_37 = arith.constant 0 : index
    %32 = vector.load %arg14[%c0_35, %c0_36, %c0_37] : memref<16x2x320xf32, #tpu.memory_space<vmem>>, vector<2x2x64xf32>
    tpu.vector_store %arg14[%c0_35, %c0_36, %c0_37], %31 {strides = array<i32>} : memref<16x2x320xf32, #tpu.memory_space<vmem>>, vector<2x2x64xf32>,
    %33 = vector.extract_strided_slice %30 {offsets = [0, 0, 0], sizes = [14, 2, 64], strides = [1, 1, 1]} : vector<16x2x64xf32> to vector<14x2x64xf32>
    %c2_38 = arith.constant 2 : index
    %c0_39 = arith.constant 0 : index
    %c0_40 = arith.constant 0 : index
    %34 = vector.load %arg14[%c2_38, %c0_39, %c0_40] : memref<16x2x320xf32, #tpu.memory_space<vmem>>, vector<14x2x64xf32>
    tpu.vector_store %arg14[%c2_38, %c0_39, %c0_40], %33 {strides = array<i32>} : memref<16x2x320xf32, #tpu.memory_space<vmem>>, vector<14x2x64xf32>,
    %cst_41 = arith.constant 0.000000e+00 : f32
    %35 = vector.broadcast %cst_41 : f32 to vector<1x2x64xf32>
    %c0_42 = arith.constant 0 : index
    %c0_43 = arith.constant 0 : index
    %c64_44 = arith.constant 64 : index
    %36 = vector.load %arg14[%c0_42, %c0_43, %c64_44] : memref<16x2x320xf32, #tpu.memory_space<vmem>>, vector<1x2x64xf32>
    tpu.vector_store %arg14[%c0_42, %c0_43, %c64_44], %35 {strides = array<i32>} : memref<16x2x320xf32, #tpu.memory_space<vmem>>, vector<1x2x64xf32>,
    %37 = vector.extract_strided_slice %30 {offsets = [0, 0, 0], sizes = [15, 2, 64], strides = [1, 1, 1]} : vector<16x2x64xf32> to vector<15x2x64xf32>
    %c1_45 = arith.constant 1 : index
    %c0_46 = arith.constant 0 : index
    %c64_47 = arith.constant 64 : index
    %38 = vector.load %arg14[%c1_45, %c0_46, %c64_47] : memref<16x2x320xf32, #tpu.memory_space<vmem>>, vector<15x2x64xf32>
    tpu.vector_store %arg14[%c1_45, %c0_46, %c64_47], %37 {strides = array<i32>} : memref<16x2x320xf32, #tpu.memory_space<vmem>>, vector<15x2x64xf32>,
    %c0_48 = arith.constant 0 : index
    %c0_49 = arith.constant 0 : index
    %c128_50 = arith.constant 128 : index
    %39 = vector.load %arg14[%c0_48, %c0_49, %c128_50] : memref<16x2x320xf32, #tpu.memory_space<vmem>>, vector<16x2x64xf32>
    tpu.vector_store %arg14[%c0_48, %c0_49, %c128_50], %30 {strides = array<i32>} : memref<16x2x320xf32, #tpu.memory_space<vmem>>, vector<16x2x64xf32>,
    %cst_51 = arith.constant 0.000000e+00 : f32
    %40 = vector.broadcast %cst_51 : f32 to vector<1x2x64xf32>
    %c15_52 = arith.constant 15 : index
    %c0_53 = arith.constant 0 : index
    %c192_54 = arith.constant 192 : index
    %41 = vector.load %arg14[%c15_52, %c0_53, %c192_54] : memref<16x2x320xf32, #tpu.memory_space<vmem>>, vector<1x2x64xf32>
    tpu.vector_store %arg14[%c15_52, %c0_53, %c192_54], %40 {strides = array<i32>} : memref<16x2x320xf32, #tpu.memory_space<vmem>>, vector<1x2x64xf32>,
    %42 = vector.extract_strided_slice %30 {offsets = [1, 0, 0], sizes = [15, 2, 64], strides = [1, 1, 1]} : vector<16x2x64xf32> to vector<15x2x64xf32>
    %c0_55 = arith.constant 0 : index
    %c0_56 = arith.constant 0 : index
    %c192_57 = arith.constant 192 : index
    %43 = vector.load %arg14[%c0_55, %c0_56, %c192_57] : memref<16x2x320xf32, #tpu.memory_space<vmem>>, vector<15x2x64xf32>
    tpu.vector_store %arg14[%c0_55, %c0_56, %c192_57], %42 {strides = array<i32>} : memref<16x2x320xf32, #tpu.memory_space<vmem>>, vector<15x2x64xf32>,
    %cst_58 = arith.constant 0.000000e+00 : f32
    %44 = vector.broadcast %cst_58 : f32 to vector<2x2x64xf32>
    %c14_59 = arith.constant 14 : index
    %c0_60 = arith.constant 0 : index
    %c256_61 = arith.constant 256 : index
    %45 = vector.load %arg14[%c14_59, %c0_60, %c256_61] : memref<16x2x320xf32, #tpu.memory_space<vmem>>, vector<2x2x64xf32>
    tpu.vector_store %arg14[%c14_59, %c0_60, %c256_61], %44 {strides = array<i32>} : memref<16x2x320xf32, #tpu.memory_space<vmem>>, vector<2x2x64xf32>,
    %46 = vector.extract_strided_slice %30 {offsets = [2, 0, 0], sizes = [14, 2, 64], strides = [1, 1, 1]} : vector<16x2x64xf32> to vector<14x2x64xf32>
    %c0_62 = arith.constant 0 : index
    %c0_63 = arith.constant 0 : index
    %c256_64 = arith.constant 256 : index
    %47 = vector.load %arg14[%c0_62, %c0_63, %c256_64] : memref<16x2x320xf32, #tpu.memory_space<vmem>>, vector<14x2x64xf32>
    tpu.vector_store %arg14[%c0_62, %c0_63, %c256_64], %46 {strides = array<i32>} : memref<16x2x320xf32, #tpu.memory_space<vmem>>, vector<14x2x64xf32>,
    %c0_65 = arith.constant 0 : index
    %c0_66 = arith.constant 0 : index
    %c0_67 = arith.constant 0 : index
    %48 = vector.load %arg14[%c0_65, %c0_66, %c0_67] : memref<16x2x320xf32, #tpu.memory_space<vmem>>, vector<16x2x320xf32>
    %49 = vector.shape_cast %48 : vector<16x2x320xf32> to vector<32x320xf32>
    %c0_68 = arith.constant 0 : index
    %c0_69 = arith.constant 0 : index
    %50 = vector.load %arg4[%c0_68, %c0_69] : memref<320x128xf32, #tpu.memory_space<vmem>>, vector<320x128xf32>
    %cst_70 = arith.constant dense<0.000000e+00> : vector<32x128xf32>
    %51 = tpu.matmul %49, %50, %cst_70 {dimension_numbers = #tpu.dot_dimension_numbers<[1], [0], [0], [1], [0, 0, 1, 1], [], []>} : vector<32x320xf32>, vector<320x128xf32>, vector<32x128xf32> -> vector<32x128xf32>
    %c0_71 = arith.constant 0 : index
    %c0_72 = arith.constant 0 : index
    %52 = vector.load %arg5[%c0_71, %c0_72] : memref<1x128xf32, #tpu.memory_space<vmem>>, vector<1x128xf32>
    %53 = vector.broadcast %52 : vector<1x128xf32> to vector<32x128xf32>
    %54 = arith.addf %51, %53 : vector<32x128xf32>
    %cst_73 = arith.constant 0.000000e+00 : f32
    %55 = vector.broadcast %cst_73 : f32 to vector<32x128xf32>
    %56 = arith.cmpf ogt, %54, %55 : vector<32x128xf32>
    %cst_74 = arith.constant 0.00999999977 : f32
    %57 = vector.broadcast %cst_74 : f32 to vector<32x128xf32>
    %58 = arith.mulf %57, %54 : vector<32x128xf32>
    %59 = arith.select %56, %54, %58 : vector<32x128xi1>, vector<32x128xf32>
    %60 = vector.shape_cast %59 : vector<32x128xf32> to vector<16x2x128xf32>
    %cst_75 = arith.constant 0.000000e+00 : f32
    %61 = vector.broadcast %cst_75 : f32 to vector<2x2x128xf32>
    %c0_76 = arith.constant 0 : index
    %c0_77 = arith.constant 0 : index
    %c0_78 = arith.constant 0 : index
    %62 = vector.load %arg15[%c0_76, %c0_77, %c0_78] : memref<16x2x640xf32, #tpu.memory_space<vmem>>, vector<2x2x128xf32>
    tpu.vector_store %arg15[%c0_76, %c0_77, %c0_78], %61 {strides = array<i32>} : memref<16x2x640xf32, #tpu.memory_space<vmem>>, vector<2x2x128xf32>,
    %63 = vector.extract_strided_slice %60 {offsets = [0, 0, 0], sizes = [14, 2, 128], strides = [1, 1, 1]} : vector<16x2x128xf32> to vector<14x2x128xf32>
    %c2_79 = arith.constant 2 : index
    %c0_80 = arith.constant 0 : index
    %c0_81 = arith.constant 0 : index
    %64 = vector.load %arg15[%c2_79, %c0_80, %c0_81] : memref<16x2x640xf32, #tpu.memory_space<vmem>>, vector<14x2x128xf32>
    tpu.vector_store %arg15[%c2_79, %c0_80, %c0_81], %63 {strides = array<i32>} : memref<16x2x640xf32, #tpu.memory_space<vmem>>, vector<14x2x128xf32>,
    %cst_82 = arith.constant 0.000000e+00 : f32
    %65 = vector.broadcast %cst_82 : f32 to vector<1x2x128xf32>
    %c0_83 = arith.constant 0 : index
    %c0_84 = arith.constant 0 : index
    %c128_85 = arith.constant 128 : index
    %66 = vector.load %arg15[%c0_83, %c0_84, %c128_85] : memref<16x2x640xf32, #tpu.memory_space<vmem>>, vector<1x2x128xf32>
    tpu.vector_store %arg15[%c0_83, %c0_84, %c128_85], %65 {strides = array<i32>} : memref<16x2x640xf32, #tpu.memory_space<vmem>>, vector<1x2x128xf32>,
    %67 = vector.extract_strided_slice %60 {offsets = [0, 0, 0], sizes = [15, 2, 128], strides = [1, 1, 1]} : vector<16x2x128xf32> to vector<15x2x128xf32>
    %c1_86 = arith.constant 1 : index
    %c0_87 = arith.constant 0 : index
    %c128_88 = arith.constant 128 : index
    %68 = vector.load %arg15[%c1_86, %c0_87, %c128_88] : memref<16x2x640xf32, #tpu.memory_space<vmem>>, vector<15x2x128xf32>
    tpu.vector_store %arg15[%c1_86, %c0_87, %c128_88], %67 {strides = array<i32>} : memref<16x2x640xf32, #tpu.memory_space<vmem>>, vector<15x2x128xf32>,
    %c0_89 = arith.constant 0 : index
    %c0_90 = arith.constant 0 : index
    %c256_91 = arith.constant 256 : index
    %69 = vector.load %arg15[%c0_89, %c0_90, %c256_91] : memref<16x2x640xf32, #tpu.memory_space<vmem>>, vector<16x2x128xf32>
    tpu.vector_store %arg15[%c0_89, %c0_90, %c256_91], %60 {strides = array<i32>} : memref<16x2x640xf32, #tpu.memory_space<vmem>>, vector<16x2x128xf32>,
    %cst_92 = arith.constant 0.000000e+00 : f32
    %70 = vector.broadcast %cst_92 : f32 to vector<1x2x128xf32>
    %c15_93 = arith.constant 15 : index
    %c0_94 = arith.constant 0 : index
    %c384 = arith.constant 384 : index
    %71 = vector.load %arg15[%c15_93, %c0_94, %c384] : memref<16x2x640xf32, #tpu.memory_space<vmem>>, vector<1x2x128xf32>
    tpu.vector_store %arg15[%c15_93, %c0_94, %c384], %70 {strides = array<i32>} : memref<16x2x640xf32, #tpu.memory_space<vmem>>, vector<1x2x128xf32>,
    %72 = vector.extract_strided_slice %60 {offsets = [1, 0, 0], sizes = [15, 2, 128], strides = [1, 1, 1]} : vector<16x2x128xf32> to vector<15x2x128xf32>
    %c0_95 = arith.constant 0 : index
    %c0_96 = arith.constant 0 : index
    %c384_97 = arith.constant 384 : index
    %73 = vector.load %arg15[%c0_95, %c0_96, %c384_97] : memref<16x2x640xf32, #tpu.memory_space<vmem>>, vector<15x2x128xf32>
    tpu.vector_store %arg15[%c0_95, %c0_96, %c384_97], %72 {strides = array<i32>} : memref<16x2x640xf32, #tpu.memory_space<vmem>>, vector<15x2x128xf32>,
    %cst_98 = arith.constant 0.000000e+00 : f32
    %74 = vector.broadcast %cst_98 : f32 to vector<2x2x128xf32>
    %c14_99 = arith.constant 14 : index
    %c0_100 = arith.constant 0 : index
    %c512 = arith.constant 512 : index
    %75 = vector.load %arg15[%c14_99, %c0_100, %c512] : memref<16x2x640xf32, #tpu.memory_space<vmem>>, vector<2x2x128xf32>
    tpu.vector_store %arg15[%c14_99, %c0_100, %c512], %74 {strides = array<i32>} : memref<16x2x640xf32, #tpu.memory_space<vmem>>, vector<2x2x128xf32>,
    %76 = vector.extract_strided_slice %60 {offsets = [2, 0, 0], sizes = [14, 2, 128], strides = [1, 1, 1]} : vector<16x2x128xf32> to vector<14x2x128xf32>
    %c0_101 = arith.constant 0 : index
    %c0_102 = arith.constant 0 : index
    %c512_103 = arith.constant 512 : index
    %77 = vector.load %arg15[%c0_101, %c0_102, %c512_103] : memref<16x2x640xf32, #tpu.memory_space<vmem>>, vector<14x2x128xf32>
    tpu.vector_store %arg15[%c0_101, %c0_102, %c512_103], %76 {strides = array<i32>} : memref<16x2x640xf32, #tpu.memory_space<vmem>>, vector<14x2x128xf32>,
    %c0_104 = arith.constant 0 : index
    %c0_105 = arith.constant 0 : index
    %c0_106 = arith.constant 0 : index
    %78 = vector.load %arg15[%c0_104, %c0_105, %c0_106] : memref<16x2x640xf32, #tpu.memory_space<vmem>>, vector<16x2x640xf32>
    %79 = vector.shape_cast %78 : vector<16x2x640xf32> to vector<32x640xf32>
    %c0_107 = arith.constant 0 : index
    %c0_108 = arith.constant 0 : index
    %80 = vector.load %arg6[%c0_107, %c0_108] : memref<640x256xf32, #tpu.memory_space<vmem>>, vector<640x256xf32>
    %cst_109 = arith.constant dense<0.000000e+00> : vector<32x256xf32>
    %81 = tpu.matmul %79, %80, %cst_109 {dimension_numbers = #tpu.dot_dimension_numbers<[1], [0], [0], [1], [0, 0, 1, 1], [], []>} : vector<32x640xf32>, vector<640x256xf32>, vector<32x256xf32> -> vector<32x256xf32>
    %c0_110 = arith.constant 0 : index
    %c0_111 = arith.constant 0 : index
    %82 = vector.load %arg7[%c0_110, %c0_111] : memref<1x256xf32, #tpu.memory_space<vmem>>, vector<1x256xf32>
    %83 = vector.broadcast %82 : vector<1x256xf32> to vector<32x256xf32>
    %84 = arith.addf %81, %83 : vector<32x256xf32>
    %cst_112 = arith.constant 0.000000e+00 : f32
    %85 = vector.broadcast %cst_112 : f32 to vector<32x256xf32>
    %86 = arith.cmpf ogt, %84, %85 : vector<32x256xf32>
    %cst_113 = arith.constant 0.00999999977 : f32
    %87 = vector.broadcast %cst_113 : f32 to vector<32x256xf32>
    %88 = arith.mulf %87, %84 : vector<32x256xf32>
    %89 = arith.select %86, %84, %88 : vector<32x256xi1>, vector<32x256xf32>
    %90 = vector.shape_cast %89 : vector<32x256xf32> to vector<16x2x256xf32>
    %cst_114 = arith.constant dense<0.000000e+00> : vector<2x256xf32>
    %91 = vector.multi_reduction <add>, %90, %cst_114 [0] : vector<16x2x256xf32> to vector<2x256xf32>
    %c0_115 = arith.constant 0 : index
    %c0_116 = arith.constant 0 : index
    %92 = vector.load %arg8[%c0_115, %c0_116] : memref<256x1xf32, #tpu.memory_space<vmem>>, vector<256x1xf32>
    %cst_117 = arith.constant dense<0.000000e+00> : vector<2x1xf32>
    %93 = tpu.matmul %91, %92, %cst_117 {dimension_numbers = #tpu.dot_dimension_numbers<[1], [0], [0], [1], [0, 0, 1, 1], [], []>} : vector<2x256xf32>, vector<256x1xf32>, vector<2x1xf32> -> vector<2x1xf32>
    %cst_118 = arith.constant 0.000000e+00 : f32
    %94 = vector.broadcast %cst_118 : f32 to vector<2x1xf32>
    %95 = arith.cmpf ogt, %93, %94 : vector<2x1xf32>
    %cst_119 = arith.constant 0.00999999977 : f32
    %96 = vector.broadcast %cst_119 : f32 to vector<2x1xf32>
    %97 = arith.mulf %96, %93 : vector<2x1xf32>
    %98 = arith.select %95, %93, %97 : vector<2x1xi1>, vector<2x1xf32>
    %c0_120 = arith.constant 0 : index
    %c0_121 = arith.constant 0 : index
    %99 = vector.load %arg9[%c0_120, %c0_121] : memref<1x256xf32, #tpu.memory_space<vmem>>, vector<1x256xf32>
    %cst_122 = arith.constant dense<0.000000e+00> : vector<2x256xf32>
    %100 = tpu.matmul %98, %99, %cst_122 {dimension_numbers = #tpu.dot_dimension_numbers<[1], [0], [0], [1], [0, 0, 1, 1], [], []>} : vector<2x1xf32>, vector<1x256xf32>, vector<2x256xf32> -> vector<2x256xf32>
    %101 = arith.negf %100 : vector<2x256xf32>
    %102 = math.exp %101 : vector<2x256xf32>
    %cst_123 = arith.constant 1.000000e+00 : f32
    %103 = vector.broadcast %cst_123 : f32 to vector<2x256xf32>
    %104 = arith.addf %103, %102 : vector<2x256xf32>
    %105 = arith.divf %103, %104 : vector<2x256xf32>
    %106 = vector.shape_cast %105 : vector<2x256xf32> to vector<1x2x256xf32>
    %107 = vector.broadcast %106 : vector<1x2x256xf32> to vector<16x2x256xf32>
    %108 = arith.mulf %90, %107 : vector<16x2x256xf32>
    %109 = vector.shape_cast %108 : vector<16x2x256xf32> to vector<32x256xf32>
    %c0_124 = arith.constant 0 : index
    %c0_125 = arith.constant 0 : index
    %110 = vector.load %arg10[%c0_124, %c0_125] : memref<256x16xf32, #tpu.memory_space<vmem>>, vector<256x16xf32>
    %cst_126 = arith.constant dense<0.000000e+00> : vector<32x16xf32>
    %111 = tpu.matmul %109, %110, %cst_126 {dimension_numbers = #tpu.dot_dimension_numbers<[1], [0], [0], [1], [0, 0, 1, 1], [], []>} : vector<32x256xf32>, vector<256x16xf32>, vector<32x16xf32> -> vector<32x16xf32>
    %c0_127 = arith.constant 0 : index
    %c0_128 = arith.constant 0 : index
    %112 = vector.load %arg11[%c0_127, %c0_128] : memref<1x16xf32, #tpu.memory_space<vmem>>, vector<1x16xf32>
    %113 = vector.broadcast %112 : vector<1x16xf32> to vector<32x16xf32>
    %114 = arith.addf %111, %113 : vector<32x16xf32>
    %115 = vector.shape_cast %114 : vector<32x16xf32> to vector<16x2x16xf32>
    %c0_129 = arith.constant 0 : index
    %c0_130 = arith.constant 0 : index
    %c0_131 = arith.constant 0 : index
    %116 = vector.load %arg12[%c0_129, %c0_130, %c0_131] : memref<16x2x16xf32, #tpu.memory_space<vmem>>, vector<16x2x16xf32>
    tpu.vector_store %arg12[%c0_129, %c0_130, %c0_131], %115 {strides = array<i32>} : memref<16x2x16xf32, #tpu.memory_space<vmem>>, vector<16x2x16xf32>,
    return
  }
  func.func @transform_0(%arg0: i32) -> (i32, i32, i32) {
    %c0_i32 = arith.constant 0 : i32
    %c0_i32_0 = arith.constant 0 : i32
    %c0_i32_1 = arith.constant 0 : i32
    return %c0_i32, %arg0, %c0_i32_0 : i32, i32, i32
  }
  func.func @transform_1(%arg0: i32) -> (i32, i32) {
    %c0_i32 = arith.constant 0 : i32
    %c0_i32_0 = arith.constant 0 : i32
    %c0_i32_1 = arith.constant 0 : i32
    return %c0_i32, %c0_i32_0 : i32, i32
  }
  func.func @transform_2(%arg0: i32) -> (i32, i32) {
    %c0_i32 = arith.constant 0 : i32
    %c0_i32_0 = arith.constant 0 : i32
    %c0_i32_1 = arith.constant 0 : i32
    return %c0_i32, %c0_i32_0 : i32, i32
  }
  func.func @transform_3(%arg0: i32) -> (i32, i32) {
    %c0_i32 = arith.constant 0 : i32
    %c0_i32_0 = arith.constant 0 : i32
    %c0_i32_1 = arith.constant 0 : i32
    return %c0_i32, %c0_i32_0 : i32, i32
  }
  func.func @transform_4(%arg0: i32) -> (i32, i32) {
    %c0_i32 = arith.constant 0 : i32
    %c0_i32_0 = arith.constant 0 : i32
    %c0_i32_1 = arith.constant 0 : i32
    return %c0_i32, %c0_i32_0 : i32, i32
  }
  func.func @transform_5(%arg0: i32) -> (i32, i32) {
    %c0_i32 = arith.constant 0 : i32
    %c0_i32_0 = arith.constant 0 : i32
    %c0_i32_1 = arith.constant 0 : i32
    return %c0_i32, %c0_i32_0 : i32, i32
  }
  func.func @transform_6(%arg0: i32) -> (i32, i32) {
    %c0_i32 = arith.constant 0 : i32
    %c0_i32_0 = arith.constant 0 : i32
    %c0_i32_1 = arith.constant 0 : i32
    return %c0_i32, %c0_i32_0 : i32, i32
  }
  func.func @transform_7(%arg0: i32) -> (i32, i32) {
    %c0_i32 = arith.constant 0 : i32
    %c0_i32_0 = arith.constant 0 : i32
    %c0_i32_1 = arith.constant 0 : i32
    return %c0_i32, %c0_i32_0 : i32, i32
  }
  func.func @transform_8(%arg0: i32) -> (i32, i32) {
    %c0_i32 = arith.constant 0 : i32
    %c0_i32_0 = arith.constant 0 : i32
    %c0_i32_1 = arith.constant 0 : i32
    return %c0_i32, %c0_i32_0 : i32, i32
  }
  func.func @transform_9(%arg0: i32) -> (i32, i32) {
    %c0_i32 = arith.constant 0 : i32
    %c0_i32_0 = arith.constant 0 : i32
    %c0_i32_1 = arith.constant 0 : i32
    return %c0_i32, %c0_i32_0 : i32, i32
  }
  func.func @transform_10(%arg0: i32) -> (i32, i32) {
    %c0_i32 = arith.constant 0 : i32
    %c0_i32_0 = arith.constant 0 : i32
    %c0_i32_1 = arith.constant 0 : i32
    return %c0_i32, %c0_i32_0 : i32, i32
  }
  func.func @transform_11(%arg0: i32) -> (i32, i32, i32) {
    %c0_i32 = arith.constant 0 : i32
    %c0_i32_0 = arith.constant 0 : i32
    %c0_i32_1 = arith.constant 0 : i32
    return %c0_i32, %arg0, %c0_i32_0 : i32, i32, i32
  }
}

</mosaic_0001>

<bundles_post_ra>
// kernel: tpu_custom_call.1
= control target key start
LH: loop header
LB: loop body
LE: loop exit
PB: predicated region body
PF: predicated region fallthrough
CT: control target
= control target key end

     0   :  { %16 = vsyncpa [#allocation6], 0  ;;  %s3468_s0 = inlined_call_operand.vmem [shape: f32[16,2,64], index: 0, kind: input, shape index: {}]   ;;  %s3469_s1 = inlined_call_operand.vmem [shape: f32[320,64], index: 1, kind: input, shape index: {}]   ;;  %s3470_s2 = inlined_call_operand.vmem [shape: f32[1,64], index: 2, kind: input, shape index: {}]   ;;  %s3471_s3 = inlined_call_operand.vmem [shape: f32[320,128], index: 3, kind: input, shape index: {}]   ;;  %s3472_s4 = inlined_call_operand.vmem [shape: f32[1,128], index: 4, kind: input, shape index: {}]   ;;  %s3473_s5 = inlined_call_operand.hbm [shape: f32[640,256], index: 5, kind: input, shape index: {}]   ;;  %s3474_s6 = inlined_call_operand.vmem [shape: f32[1,256], index: 6, kind: input, shape index: {}]   ;;  %s3475_s7 = inlined_call_operand.vmem [shape: f32[256,1], index: 7, kind: input, shape index: {}]   ;;  %s3476_s8 = inlined_call_operand.vmem [shape: f32[1,256], index: 8, kind: input, shape index: {}]   ;;  %s3477_s9 = inlined_call_operand.vmem [shape: f32[256,16], index: 9, kind: input, shape index: {}]   ;;  %s3478_s10 = inlined_call_operand.vmem [shape: f32[1,16], index: 10, kind: input, shape index: {}]   ;;  %s3479_s11 = inlined_call_operand.hbm [shape: f32[16,2,16], index: 11, kind: output, shape index: {}]  }
   0x1   :  { %17 = vsyncpa [#allocation7], 0  ;;  %s32_s19 = sshll.u32 %s3473_s5, 4  ;;  %s2257_s20 = smov [#allocation5]   ;;  %s33_s19 = int_to_ptr.hbm [resolvable:$true] %s32_s19 }
   0x2   :  { %s34_s21 = sshll.u32 %s2257_s20, 4  ;;  %s2258_s22 = smov 256   ;;  %s35_s21 = int_to_ptr.vmem [resolvable:$true] %s34_s21 }
   0x3   :  { %s2259_s23 = smov 16  }
   0x4   :  { %40 = dma.hbm_to_vmem [thread:$0]  %s33_s19, 20480, %s35_s21, [#allocation6], %s2258_s22, %s2258_s22, %s2259_s23  }
   0x5   :  { %2253 = dma.done.wait [#allocation6], 20480  }
   0x6   :  { %2254 = vsyncadd [#allocation6], 4294946816  ;;  %v57_v0 = vld [vmem:[%s3468_s0 + $0x4] sm:$0x3]  ;;  %vm71_vm0 = vcmask 517120   ;;  %s2260_s28 = smov 64  }
   0x7   :  { %v55_v1 = vld [vmem:[%s3468_s0] sm:$0x3]  ;;  %110 = vrot.lane.b32.xlu1 %v57_v0, %s2260_s28  ;;  %207 = vst.msk [vmem:[#allocation2 + $0x4] sm:$0x3] %vm71_vm0, %v57_v0  ;;  %v59_v2 = vld [vmem:[%s3468_s0 + $0x8] sm:$0x3] }
   0x8   :  { %106 = vrot.lane.b32.xlu0 %v55_v1, %s2260_s28  ;;  %77 = vst.msk [vmem:[#allocation2 + $0x18] sm:$0x3] %vm71_vm0, %v57_v0  ;;  %114 = vrot.lane.b32.xlu2 %v59_v2, %s2260_s28  ;;  %v58_v3 = vld [vmem:[%s3468_s0 + $0x6] sm:$0x3]  ;;  %v56_v4 = vld [vmem:[%s3468_s0 + $0x2] sm:$0x3] }
   0x9   :  { %169 = vst.msk [vmem:[#allocation2 + $0xe] sm:$0x3] %vm71_vm0, %v57_v0  ;;  %v60_v5 = vld [vmem:[%s3468_s0 + $0xa] sm:$0x3]  ;;  %v62_v6 = vld [vmem:[%s3468_s0 + $0xe] sm:$0x3] }
   0xa   :  { %75 = vst.msk [vmem:[#allocation2 + $0xc] sm:$0x3] %vm71_vm0, %v55_v1  ;;  %v61_v7 = vld [vmem:[%s3468_s0 + $0xc] sm:$0x3]  ;;  %v63_v8 = vld [vmem:[%s3468_s0 + $0x10] sm:$0x3] }
   0xb   :  { %167 = vst.msk [vmem:[#allocation2 + $0x2] sm:$0x3] %vm71_vm0, %v55_v1  ;;  %v65_v9 = vld [vmem:[%s3468_s0 + $0x14] sm:$0x3]  ;;  %v64_v10 = vld [vmem:[%s3468_s0 + $0x12] sm:$0x3] }
   0xc   :  { %208 = vst.msk [vmem:[#allocation2 + $0xa] sm:$0x3] %vm71_vm0, %v58_v3  ;;  %v2397_v11 = vld [vmem:[%s3468_s0 + $0x16] sm:$0x3]  ;;  %v68_v12 = vld [vmem:[%s3468_s0 + $0x1a] sm:$0x3] }
   0xd   :  { %78 = vst.msk [vmem:[#allocation2 + $0x1e] sm:$0x3] %vm71_vm0, %v58_v3  ;;  %v252_v13 = vld [vmem:[%s3469_s1 + $0x78] sm:$0xff]  ;;  %v251_v15 = vld [vmem:[%s3469_s1 + $0x70] sm:$0xff]  ;;  %v250_v18 = vld [vmem:[%s3469_s1 + $0x68] sm:$0xff]  ;;  %vm89_vm1 = vcmask 1041920  }
   0xe   :  { %170 = vst.msk [vmem:[#allocation2 + $0x14] sm:$0x3] %vm71_vm0, %v58_v3  ;;  %v268_v14 = vld [vmem:[%s3469_s1 + $0xf8] sm:$0xff]  ;;  %349 = vmatpush.msra.mxu0 %v252_v13  ;;  %v267_v17 = vld [vmem:[%s3469_s1 + $0xf0] sm:$0xff]  ;;  %v266_v19 = vld [vmem:[%s3469_s1 + $0xe8] sm:$0xff]  ;;  %v2261_v24 = vmov 0.0  }
   0xf   :  { %112 = vrot.lane.b32.xlu1 %v58_v3, %s2260_s28  ;;  %76 = vst.msk [vmem:[#allocation2 + $0x12] sm:$0x3] %vm71_vm0, %v56_v4  ;;  %v67_v16 = vld [vmem:[%s3468_s0 + $0x18] sm:$0x3]  ;;  %378 = vmatpush.msra.mxu1 %v268_v14  ;;  %v69_v20 = vld [vmem:[%s3468_s0 + $0x1c] sm:$0x3] }
  0x10   :  { %108 = vrot.lane.b32.xlu0 %v56_v4, %s2260_s28  ;;  %168 = vst.msk [vmem:[#allocation2 + $0x8] sm:$0x3] %vm71_vm0, %v56_v4  ;;  %116 = vrot.lane.b32.xlu2 %v60_v5, %s2260_s28  ;;  %v249_v21 = vld [vmem:[%s3469_s1 + $0x60] sm:$0xff]  ;;  %v70_v23 = vld [vmem:[%s3468_s0 + $0x1e] sm:$0x3]  ;;  %vm340_vm2 = vcmask 523264  }
  0x11   :  { %212 = vst.msk [vmem:[#allocation2 + $0x22] sm:$0x3] %vm71_vm0, %v62_v6  ;;  %350 = vmatpush.msra.mxu0 %v251_v15  ;;  %379 = vmatpush.msra.mxu1 %v267_v17  ;;  %v265_v22 = vld [vmem:[%s3469_s1 + $0xe0] sm:$0xff]  ;;  %v248_v25 = vld [vmem:[%s3469_s1 + $0x58] sm:$0xff]  ;;  %v247_v27 = vld [vmem:[%s3469_s1 + $0x50] sm:$0xff]  ;;  %vm1581_vm13 = vcmask 1041408  }
  0x12   :  { %82 = vst.msk [vmem:[#allocation2 + $0x36] sm:$0x3] %vm71_vm0, %v62_v6  ;;  %v264_v26 = vld [vmem:[%s3469_s1 + $0xd8] sm:$0xff]  ;;  %v263_v28 = vld [vmem:[%s3469_s1 + $0xd0] sm:$0xff]  ;;  %v246_v29 = vld [vmem:[%s3469_s1 + $0x48] sm:$0xff]  ;;  %vm1583_vm14 = vcmask 1043458  }
  0x13   :  { %174 = vst.msk [vmem:[#allocation2 + $0x2c] sm:$0x3] %vm71_vm0, %v62_v6  ;;  %351 = vmatpush.msra.mxu0 %v250_v18  ;;  %380 = vmatpush.msra.mxu1 %v266_v19  ;;  %v262_v30 = vld [vmem:[%s3469_s1 + $0xc8] sm:$0xff]  ;;  %v245_v31 = vld [vmem:[%s3469_s1 + $0x40] sm:$0xff]  ;;  %v244_v34 = vld [vmem:[%s3469_s1 + $0x38] sm:$0xff]  ;;  %vm1586_vm15 = vcmask 1045508  }
  0x14   :  { %211 = vst.msk [vmem:[#allocation2 + $0x1c] sm:$0x3] %vm71_vm0, %v61_v7  ;;  %v261_v32 = vld [vmem:[%s3469_s1 + $0xc0] sm:$0xff]  ;;  %v260_v35 = vld [vmem:[%s3469_s1 + $0xb8] sm:$0xff]  ;;  %v243_v36 = vld [vmem:[%s3469_s1 + $0x30] sm:$0xff]  ;;  %s2263_s29 = smov 32  }
  0x15   :  { %81 = vst.msk [vmem:[#allocation2 + $0x30] sm:$0x3] %vm71_vm0, %v61_v7  ;;  %352 = vmatpush.msra.mxu0 %v249_v21  ;;  %381 = vmatpush.msra.mxu1 %v265_v22  ;;  %v259_v37 = vld [vmem:[%s3469_s1 + $0xb0] sm:$0xff]  ;;  %v242_v39 = vld [vmem:[%s3469_s1 + $0x28] sm:$0xff]  ;;  %v241_v41 = vld [vmem:[%s3469_s1 + $0x20] sm:$0xff] }
  0x16   :  { %173 = vst.msk [vmem:[#allocation2 + $0x26] sm:$0x3] %vm71_vm0, %v61_v7  ;;  %v258_v40 = vld [vmem:[%s3469_s1 + $0xa8] sm:$0xff]  ;;  %v257_v42 = vld [vmem:[%s3469_s1 + $0xa0] sm:$0xff]  ;;  %v240_v43 = vld [vmem:[%s3469_s1 + $0x18] sm:$0xff] }
  0x17   :  { %120 = vrot.lane.b32.xlu1 %v62_v6, %s2260_s28  ;;  %209 = vst.msk [vmem:[#allocation2 + $0x10] sm:$0x3] %vm71_vm0, %v59_v2  ;;  %353 = vmatpush.msra.mxu0 %v248_v25  ;;  %v256_v44 = vld [vmem:[%s3469_s1 + $0x98] sm:$0xff]  ;;  %v239_v46 = vld [vmem:[%s3469_s1 + $0x10] sm:$0xff]  ;;  %v238_v48 = vld [vmem:[%s3469_s1 + $0x8] sm:$0xff] }
  0x18   :  { %118 = vrot.lane.b32.xlu0 %v61_v7, %s2260_s28  ;;  %79 = vst.msk [vmem:[#allocation2 + $0x24] sm:$0x3] %vm71_vm0, %v59_v2  ;;  %122 = vrot.lane.b32.xlu2 %v63_v8, %s2260_s28  ;;  %v255_v47 = vld [vmem:[%s3469_s1 + $0x90] sm:$0xff]  ;;  %v254_v49 = vld [vmem:[%s3469_s1 + $0x88] sm:$0xff] }
  0x19   :  { %171 = vst.msk [vmem:[#allocation2 + $0x1a] sm:$0x3] %vm71_vm0, %v59_v2  ;;  %382 = vmatpush.msra.mxu1 %v264_v26  ;;  %354 = vmatpush.msra.mxu0 %v247_v27  ;;  %v237_v50 = vld [vmem:[%s3469_s1] sm:$0xff]  ;;  %v275_v6 = vld [vmem:[%s3469_s1 + $0x130] sm:$0xff]  ;;  %v270_v22 = vld [vmem:[%s3469_s1 + $0x108] sm:$0xff] }
  0x1a   :  { %215 = vst.msk [vmem:[#allocation2 + $0x34] sm:$0x3] %vm71_vm0, %v65_v9  ;;  %v253_v51 = vld [vmem:[%s3469_s1 + $0x80] sm:$0xff]  ;;  %v271_v17 = vld [vmem:[%s3469_s1 + $0x110] sm:$0xff] }
  0x1b   :  { %85 = vst.msk [vmem:[#allocation2 + $0x48] sm:$0x3] %vm71_vm0, %v65_v9  ;;  %383 = vmatpush.msra.mxu1 %v263_v28  ;;  %355 = vmatpush.msra.mxu0 %v246_v29  ;;  %v269_v26 = vld [vmem:[%s3469_s1 + $0x100] sm:$0xff] }
  0x1c   :  { %177 = vst.msk [vmem:[#allocation2 + $0x3e] sm:$0x3] %vm71_vm0, %v65_v9 }
  0x1d   :  { %214 = vst.msk [vmem:[#allocation2 + $0x2e] sm:$0x3] %vm71_vm0, %v64_v10  ;;  %384 = vmatpush.msra.mxu1 %v262_v30  ;;  %356 = vmatpush.msra.mxu0 %v245_v31 }
  0x1e   :  { %84 = vst.msk [vmem:[#allocation2 + $0x42] sm:$0x3] %vm71_vm0, %v64_v10 }
  0x1f   :  { %126 = vrot.lane.b32.xlu1 %v65_v9, %s2260_s28  ;;  %176 = vst.msk [vmem:[#allocation2 + $0x38] sm:$0x3] %vm71_vm0, %v64_v10  ;;  %385 = vmatpush.msra.mxu1 %v261_v32 }
  0x20   :  { %124 = vrot.lane.b32.xlu0 %v64_v10, %s2260_s28  ;;  %210 = vst.msk [vmem:[#allocation2 + $0x16] sm:$0x3] %vm71_vm0, %v60_v5  ;;  %128 = vrot.lane.b32.xlu2 %v2397_v11, %s2260_s28  ;;  %v274_v10 = vld [vmem:[%s3469_s1 + $0x128] sm:$0xff] }
  0x21   :  { %80 = vst.msk [vmem:[#allocation2 + $0x2a] sm:$0x3] %vm71_vm0, %v60_v5  ;;  %357 = vmatpush.msra.mxu0 %v244_v34  ;;  %386 = vmatpush.msra.mxu1 %v260_v35 }
  0x22   :  { %172 = vst.msk [vmem:[#allocation2 + $0x20] sm:$0x3] %vm71_vm0, %v60_v5  ;;  %v276_v5 = vld [vmem:[%s3469_s1 + $0x138] sm:$0xff] }
  0x23   :  { %218 = vst.msk [vmem:[#allocation2 + $0x46] sm:$0x3] %vm71_vm0, %v68_v12  ;;  %358 = vmatpush.msra.mxu0 %v243_v36  ;;  %387 = vmatpush.msra.mxu1 %v259_v37 }
  0x24   :  { %88 = vst.msk [vmem:[#allocation2 + $0x5a] sm:$0x3] %vm71_vm0, %v68_v12 }
  0x25   :  { %180 = vst.msk [vmem:[#allocation2 + $0x50] sm:$0x3] %vm71_vm0, %v68_v12  ;;  %359 = vmatpush.msra.mxu0 %v242_v39  ;;  %388 = vmatpush.msra.mxu1 %v258_v40 }
  0x26   :  { %217 = vst.msk [vmem:[#allocation2 + $0x40] sm:$0x3] %vm71_vm0, %v67_v16 }
  0x27   :  { %132 = vrot.lane.b32.xlu1 %v68_v12, %s2260_s28  ;;  %87 = vst.msk [vmem:[#allocation2 + $0x54] sm:$0x3] %vm71_vm0, %v67_v16  ;;  %360 = vmatpush.msra.mxu0 %v241_v41  ;;  %v273_v12 = vld [vmem:[%s3469_s1 + $0x120] sm:$0xff] }
  0x28   :  { %130 = vrot.lane.b32.xlu0 %v67_v16, %s2260_s28  ;;  %179 = vst.msk [vmem:[#allocation2 + $0x4a] sm:$0x3] %vm71_vm0, %v67_v16  ;;  %134 = vrot.lane.b32.xlu2 %v69_v20, %s2260_s28  ;;  %v272_v16 = vld [vmem:[%s3469_s1 + $0x118] sm:$0xff]  ;;  %v2194_v41 = vld [vmem:[%s3470_s2] ss:$0 sm:$0xff] }
  0x29   :  { %213 = vst.msk [vmem:[#allocation2 + $0x28] sm:$0x3] %vm71_vm0, %v63_v8  ;;  %389 = vmatpush.msra.mxu1 %v257_v42  ;;  %361 = vmatpush.msra.mxu0 %v240_v43 }
  0x2a   :  { %83 = vst.msk [vmem:[#allocation2 + $0x3c] sm:$0x3] %vm71_vm0, %v63_v8 }
  0x2b   :  { %175 = vst.msk [vmem:[#allocation2 + $0x32] sm:$0x3] %vm71_vm0, %v63_v8  ;;  %390 = vmatpush.msra.mxu1 %v256_v44  ;;  %362 = vmatpush.msra.mxu0 %v239_v46 }
  0x2c   :  { %182 = vst.msk [vmem:[#allocation2 + $0x5c] sm:$0x3] %vm71_vm0, %v70_v23 }
  0x2d   :  { %184 = vst.msk [vmem:[#allocation2 + $0x5c] sm:$0x3] %vm89_vm1, %v2261_v24  ;;  %391 = vmatpush.msra.mxu1 %v255_v47  ;;  %363 = vmatpush.msra.mxu0 %v238_v48 }
  0x2e   :  { %220 = vst.msk [vmem:[#allocation2 + $0x52] sm:$0x3] %vm71_vm0, %v70_v23 }
  0x2f   :  { %72 = vst.msk [vmem:[#allocation2] sm:$0x3] %vm71_vm0, %v2261_v24  ;;  %392 = vmatpush.msra.mxu1 %v254_v49  ;;  %364 = vmatpush.msra.mxu0 %v237_v50 }
  0x30   :  { %186 = vrot.lane.b32.xlu0 %v70_v23, %s2260_s28  ;;  %73 = vst.msk [vmem:[#allocation2 + $0x6] sm:$0x3] %vm71_vm0, %v2261_v24 }
  0x31   :  { %205 = vst.msk [vmem:[#allocation2 + $0x58] sm:$0x3] %vm71_vm0, %v2261_v24  ;;  %393 = vmatpush.msra.mxu1 %v253_v51  ;;  %415 = vmatpush.msrb.mxu0 %v276_v5 }
  0x32   :  { %206 = vst.msk [vmem:[#allocation2 + $0x5e] sm:$0x3] %vm71_vm0, %v2261_v24 }
  0x33   :  { %476 = vst.msk [vmem:[#allocation3] sm:$0x3] %vm71_vm0, %v2261_v24  ;;  %416 = vmatpush.msrb.mxu0 %v275_v6 }
  0x34   :  { %477 = vst.msk [vmem:[#allocation3 + $0x6] sm:$0x3] %vm71_vm0, %v2261_v24 }
  0x35   :  { %592 = vst.msk [vmem:[#allocation3 + $0x58] sm:$0x3] %vm71_vm0, %v2261_v24  ;;  %417 = vmatpush.msrb.mxu0 %v274_v10 }
  0x36   :  { %593 = vst.msk [vmem:[#allocation3 + $0x5e] sm:$0x3] %vm71_vm0, %v2261_v24 }
  0x37   :  { %862 = vst [vmem:[#allocation4] sm:$0x3] %v2261_v24  ;;  %418 = vmatpush.msrb.mxu0 %v273_v12 }
  0x38   :  { %863 = vst [vmem:[#allocation4 + $0xa] sm:$0x3] %v2261_v24 }
  0x39   :  { %879 = vst [vmem:[#allocation4 + $0x2] sm:$0x3] %v2261_v24  ;;  %419 = vmatpush.msrb.mxu0 %v272_v16 }
  0x3a   :  { %913 = vst [vmem:[#allocation4 + $0x9c] sm:$0x3] %v2261_v24 }
  0x3b   :  { %930 = vst [vmem:[#allocation4 + $0x94] sm:$0x3] %v2261_v24  ;;  %420 = vmatpush.msrb.mxu0 %v271_v17 }
  0x3c   :  { %931 = vst [vmem:[#allocation4 + $0x9e] sm:$0x3] %v2261_v24 }
  0x3d   :  { %216 = vst.msk [vmem:[#allocation2 + $0x3a] sm:$0x3] %vm71_vm0, %v2397_v11  ;;  %421 = vmatpush.msrb.mxu0 %v270_v22  ;;  %v637_v22 = vld [vmem:[%s3471_s3 + $0x68] sm:$0xff] }
  0x3e   :  { %86 = vst.msk [vmem:[#allocation2 + $0x4e] sm:$0x3] %vm71_vm0, %v2397_v11 }
  0x3f   :  { %90 = vst.msk [vmem:[#allocation2] sm:$0x3] %vm89_vm1, %v2261_v24  ;;  %422 = vmatpush.msrb.mxu0 %v269_v26  ;;  %v652_v26 = vld [vmem:[%s3471_s3 + $0xe0] sm:$0xff] }
  0x40   :  { %178 = vst.msk [vmem:[#allocation2 + $0x44] sm:$0x3] %vm71_vm0, %v2397_v11 }
  0x41   :  { %493 = vst.msk [vmem:[#allocation3] sm:$0x3] %vm89_vm1, %v2261_v24 }
  0x42   :  { %181 = vst.msk [vmem:[#allocation2 + $0x56] sm:$0x3] %vm71_vm0, %v69_v20 }
  0x43   :  { %219 = vst.msk [vmem:[#allocation2 + $0x4c] sm:$0x3] %vm71_vm0, %v69_v20 }
  0x62   :  { %v115_v33 = vpop.permute.xlu2 %114 }
  0x63   :  { %156 = vst.msk [vmem:[#allocation2 + $0x1e] sm:$0x3] %vm89_vm1, %v115_v33 }
  0x64   :  { %192 = vst.msk [vmem:[#allocation2 + $0x14] sm:$0x3] %vm89_vm1, %v115_v33 }
  0x6a   :  { %v117_v38 = vpop.permute.xlu2 %116 }
  0x6b   :  { %157 = vst.msk [vmem:[#allocation2 + $0x24] sm:$0x3] %vm89_vm1, %v117_v38 }
  0x6c   :  { %193 = vst.msk [vmem:[#allocation2 + $0x1a] sm:$0x3] %vm89_vm1, %v117_v38 }
  0x72   :  { %v123_v45 = vpop.permute.xlu2 %122 }
  0x73   :  { %160 = vst.msk [vmem:[#allocation2 + $0x36] sm:$0x3] %vm89_vm1, %v123_v45 }
  0x74   :  { %196 = vst.msk [vmem:[#allocation2 + $0x2c] sm:$0x3] %vm89_vm1, %v123_v45 }
  0x79   :  { %v111_v52 = vpop.permute.xlu1 %110 }
  0x7a   :  { %v107_v53 = vpop.permute.xlu0 %106  ;;  %154 = vst.msk [vmem:[#allocation2 + $0x12] sm:$0x3] %vm89_vm1, %v111_v52  ;;  %v129_v54 = vpop.permute.xlu2 %128 }
  0x7b   :  { %190 = vst.msk [vmem:[#allocation2 + $0x8] sm:$0x3] %vm89_vm1, %v111_v52 }
  0x7c   :  { %152 = vst.msk [vmem:[#allocation2 + $0x6] sm:$0x3] %vm89_vm1, %v107_v53 }
  0x7d   :  { %163 = vst.msk [vmem:[#allocation2 + $0x48] sm:$0x3] %vm89_vm1, %v129_v54 }
  0x7e   :  { %199 = vst.msk [vmem:[#allocation2 + $0x3e] sm:$0x3] %vm89_vm1, %v129_v54 }
  0x81   :  { %v224_v55 = vld [vmem:[#allocation2 + $0x12] sm:$0x3f]  ;;  %v113_v56 = vpop.permute.xlu1 %112 }
  0x82   :  { %v109_v57 = vpop.permute.xlu0 %108  ;;  %303 = vst [vmem:[#allocation1 + $0x3] ss:$4 sm:$0xff] %v224_v55  ;;  %v135_v59 = vpop.permute.xlu2 %134 }
  0x83   :  { %v222_v58 = vld [vmem:[#allocation2 + $0x6] sm:$0x3f]  ;;  %155 = vst.msk [vmem:[#allocation2 + $0x18] sm:$0x3] %vm89_vm1, %v113_v56 }
  0x84   :  { %299 = vst [vmem:[#allocation1 + $0x1] ss:$4 sm:$0xff] %v222_v58 }
  0x85   :  { %191 = vst.msk [vmem:[#allocation2 + $0xe] sm:$0x3] %vm89_vm1, %v113_v56 }
  0x86   :  { %153 = vst.msk [vmem:[#allocation2 + $0xc] sm:$0x3] %vm89_vm1, %v109_v57 }
  0x87   :  { %189 = vst.msk [vmem:[#allocation2 + $0x2] sm:$0x3] %vm89_vm1, %v109_v57 }
  0x88   :  { %166 = vst.msk [vmem:[#allocation2 + $0x5a] sm:$0x3] %vm89_vm1, %v135_v59 }
  0x89   :  { %v121_v60 = vpop.permute.xlu1 %120  ;;  %202 = vst.msk [vmem:[#allocation2 + $0x50] sm:$0x3] %vm89_vm1, %v135_v59 }
  0x8a   :  { %v119_v61 = vpop.permute.xlu0 %118  ;;  %v225_v62 = vld [vmem:[#allocation2 + $0x18] sm:$0x3f]  ;;  %159 = vst.msk [vmem:[#allocation2 + $0x30] sm:$0x3] %vm89_vm1, %v121_v60 }
  0x8b   :  { %305 = vst [vmem:[#allocation1 + $0x20] ss:$4 sm:$0xff] %v225_v62 }
  0x8c   :  { %195 = vst.msk [vmem:[#allocation2 + $0x26] sm:$0x3] %vm89_vm1, %v121_v60 }
  0x8d   :  { %v223_v63 = vld [vmem:[#allocation2 + $0xc] sm:$0x3f]  ;;  %158 = vst.msk [vmem:[#allocation2 + $0x2a] sm:$0x3] %vm89_vm1, %v119_v61 }
  0x8e   :  { %v221_v0 = vld [vmem:[#allocation2] sm:$0x3f]  ;;  %301 = vst [vmem:[#allocation1 + $0x2] ss:$4 sm:$0xff] %v223_v63 }
  0x8f   :  { %297 = vst [vmem:[#allocation1] ss:$4 sm:$0xff] %v221_v0  ;;  %v236_v21 = vld [vmem:[#allocation2 + $0x5a] sm:$0x3f] }
  0x90   :  { %194 = vst.msk [vmem:[#allocation2 + $0x20] sm:$0x3] %vm89_vm1, %v119_v61 }
  0x91   :  { %v127_v1 = vpop.permute.xlu1 %126 }
  0x92   :  { %v125_v2 = vpop.permute.xlu0 %124  ;;  %162 = vst.msk [vmem:[#allocation2 + $0x42] sm:$0x3] %vm89_vm1, %v127_v1 }
  0x93   :  { %v227_v3 = vld [vmem:[#allocation2 + $0x24] sm:$0x3f]  ;;  %198 = vst.msk [vmem:[#allocation2 + $0x38] sm:$0x3] %vm89_vm1, %v127_v1 }
  0x94   :  { %309 = vst [vmem:[#allocation1 + $0x22] ss:$4 sm:$0xff] %v227_v3  ;;  %v228_v4 = vld [vmem:[#allocation2 + $0x2a] sm:$0x3f] }
  0x95   :  { %311 = vst [vmem:[#allocation1 + $0x23] ss:$4 sm:$0xff] %v228_v4 }
  0x96   :  { %v312_v7 = vld.sshfl [vmem:[#allocation1] sm:$0xff pattern:$0x73625140]  ;;  %v313_v8 = vld.sshfl [vmem:[#allocation1 + $0x8] sm:$0xff pattern:$0x73625140] }
  0x97   :  { %v226_v9 = vld [vmem:[#allocation2 + $0x1e] sm:$0x3f]  ;;  %365 = vmatmul.f32.vlgmr.msra.gmra.mxu0 %v312_v7  ;;  %394 = vmatmul.f32.vlgmr.msra.gmra.mxu1 %v313_v8  ;;  %v314_v11 = vld.sshfl [vmem:[#allocation1 + $0x10] sm:$0xff pattern:$0x73625140] }
  0x98   :  { %307 = vst [vmem:[#allocation1 + $0x21] ss:$4 sm:$0xff] %v226_v9 }
  0x99   :  { %161 = vst.msk [vmem:[#allocation2 + $0x3c] sm:$0x3] %vm89_vm1, %v125_v2  ;;  %v133_v14 = vpop.permute.xlu1 %132 }
  0x9a   :  { %v230_v13 = vld [vmem:[#allocation2 + $0x36] sm:$0x3f]  ;;  %197 = vst.msk [vmem:[#allocation2 + $0x32] sm:$0x3] %vm89_vm1, %v125_v2  ;;  %v131_v15 = vpop.permute.xlu0 %130 }
  0x9b   :  { %319 = vst [vmem:[#allocation1 + $0x1] ss:$4 sm:$0xff] %v230_v13 }
  0x9c   :  { %165 = vst.msk [vmem:[#allocation2 + $0x54] sm:$0x3] %vm89_vm1, %v133_v14 }
  0x9d   :  { %201 = vst.msk [vmem:[#allocation2 + $0x4a] sm:$0x3] %vm89_vm1, %v133_v14 }
  0x9e   :  { %164 = vst.msk [vmem:[#allocation2 + $0x4e] sm:$0x3] %vm89_vm1, %v131_v15 }
  0x9f   :  { %v315_v18 = vld.sshfl [vmem:[#allocation1 + $0x20] sm:$0xff pattern:$0x73625140]  ;;  %v316_v19 = vld.sshfl [vmem:[#allocation1 + $0x28] sm:$0xff pattern:$0x73625140] }
  0xa0   :  { %v231_v20 = vld [vmem:[#allocation2 + $0x3c] sm:$0x3f]  ;;  %368 = vmatmul.f32.gmra.mxu0 %v315_v18  ;;  %397 = vmatmul.f32.gmra.mxu1 %v316_v19  ;;  %v317_v25 = vld.sshfl [vmem:[#allocation1 + $0x30] sm:$0xff pattern:$0x73625140]  ;;  %v639_v19 = vld [vmem:[%s3471_s3 + $0x78] sm:$0xff] }
  0xa1   :  { %v229_v23 = vld [vmem:[#allocation2 + $0x30] sm:$0x3f]  ;;  %320 = vst [vmem:[#allocation1 + $0x2] ss:$4 sm:$0xff] %v231_v20  ;;  %735 = vmatpush.msra.mxu3 %v639_v19 }
  0xa2   :  { %318 = vst [vmem:[#allocation1] ss:$4 sm:$0xff] %v229_v23  ;;  %v187_v28 = vpop.permute.xlu0 %186  ;;  %v655_v20 = vld [vmem:[%s3471_s3 + $0xf8] sm:$0xff]  ;;  %v653_v23 = vld [vmem:[%s3471_s3 + $0xe8] sm:$0xff] }
  0xa3   :  { %325 = vst [vmem:[#allocation1 + $0x23] ss:$4 sm:$0xff] %v236_v21  ;;  %764 = vmatpush.msra.mxu2 %v655_v20  ;;  %v638_v21 = vld [vmem:[%s3471_s3 + $0x70] sm:$0xff] }
  0xa4   :  { %v233_v27 = vld [vmem:[#allocation2 + $0x48] sm:$0x3f]  ;;  %200 = vst.msk [vmem:[#allocation2 + $0x44] sm:$0x3] %vm89_vm1, %v131_v15  ;;  %736 = vmatpush.msra.mxu3 %v638_v21 }
  0xa5   :  { %322 = vst [vmem:[#allocation1 + $0x20] ss:$4 sm:$0xff] %v233_v27  ;;  %v234_v29 = vld [vmem:[#allocation2 + $0x4e] sm:$0x3f] }
  0xa6   :  { %323 = vst [vmem:[#allocation1 + $0x21] ss:$4 sm:$0xff] %v234_v29  ;;  %737 = vmatpush.msra.mxu3 %v637_v22  ;;  %v635_v27 = vld [vmem:[%s3471_s3 + $0x58] sm:$0xff] }
  0xa7   :  { %203 = vst.msk [vmem:[#allocation2 + $0x56] sm:$0x3] %vm89_vm1, %v187_v28  ;;  %v651_v28 = vld [vmem:[%s3471_s3 + $0xd8] sm:$0xff] }
  0xab   :  { %v232_v30 = vld [vmem:[#allocation2 + $0x42] sm:$0x3f] }
  0xac   :  { %321 = vst [vmem:[#allocation1 + $0x3] ss:$4 sm:$0xff] %v232_v30  ;;  %v634_v30 = vld [vmem:[%s3471_s3 + $0x50] sm:$0xff] }
  0xae   :  { %v235_v31 = vld [vmem:[#allocation2 + $0x54] sm:$0x3f] }
  0xaf   :  { %324 = vst [vmem:[#allocation1 + $0x22] ss:$4 sm:$0xff] %v235_v31  ;;  %v650_v31 = vld [vmem:[%s3471_s3 + $0xd0] sm:$0xff] }
  0xb3   :  { %v326_v32 = vld.sshfl [vmem:[#allocation1] sm:$0xff pattern:$0x73625140]  ;;  %v327_v33 = vld.sshfl [vmem:[#allocation1 + $0x8] sm:$0xff pattern:$0x73625140] }
  0xb4   :  { %371 = vmatmul.f32.gmra.mxu0 %v326_v32  ;;  %400 = vmatmul.f32.gmra.mxu1 %v327_v33  ;;  %v328_v36 = vld.sshfl [vmem:[#allocation1 + $0x10] sm:$0xff pattern:$0x73625140]  ;;  %v633_v32 = vld [vmem:[%s3471_s3 + $0x48] sm:$0xff] }
  0xb5   :  { %v649_v33 = vld [vmem:[%s3471_s3 + $0xc8] sm:$0xff] }
  0xb6   :  { %v329_v34 = vld.sshfl [vmem:[#allocation1 + $0x20] sm:$0xff pattern:$0x73625140]  ;;  %v330_v35 = vld.sshfl [vmem:[#allocation1 + $0x28] sm:$0xff pattern:$0x73625140] }
  0xb7   :  { %v331_v37 = vld.sshfl [vmem:[#allocation1 + $0x30] sm:$0xff pattern:$0x73625140] }
  0xbc   :  { %374 = vmatmul.f32.gmra.mxu0 %v329_v34  ;;  %403 = vmatmul.f32.gmra.mxu1 %v330_v35  ;;  %v632_v34 = vld [vmem:[%s3471_s3 + $0x40] sm:$0xff] }
  0xbd   :  { %v648_v35 = vld [vmem:[%s3471_s3 + $0xc0] sm:$0xff] }
  0xc4   :  { %2172 = vmatmul.msk.f32.vlgmr.msrb.gmra.mxu0 %vm340_vm2, %v314_v11 }
  0xcc   :  { %2173 = vmatmul.msk.f32.gmra.mxu0 %vm340_vm2, %v317_v25  ;;  %v636_v25 = vld [vmem:[%s3471_s3 + $0x60] sm:$0xff] }
  0xcd   :  { %738 = vmatpush.msra.mxu3 %v636_v25 }
  0xcf   :  { %739 = vmatpush.msra.mxu3 %v635_v27 }
  0xd1   :  { %740 = vmatpush.msra.mxu3 %v634_v30 }
  0xd3   :  { %741 = vmatpush.msra.mxu3 %v633_v32 }
  0xd4   :  { %2174 = vmatmul.msk.f32.gmra.mxu0 %vm340_vm2, %v328_v36 }
  0xd5   :  { %742 = vmatpush.msra.mxu3 %v632_v34 }
  0xdc   :  { %2175 = vmatmul.msk.f32.gmra.mxu0 %vm340_vm2, %v331_v37 }
 0x114   :  { %v366_v38 = vpop.f32.mrf.mxu0  ;;  %v395_v43 = vpop.f32.mrf.mxu1 }
 0x115   :  { %v367_v44 = vadd.f32 %v2194_v41, %v366_v38 }
 0x117   :  { %v396_v45 = vadd.f32 %v395_v43, %v367_v44  ;;  %v646_v43 = vld [vmem:[%s3471_s3 + $0xb0] sm:$0xff] }
 0x118   :  { %v662_v44 = vld [vmem:[%s3471_s3 + $0x130] sm:$0xff] }
 0x11d   :  { %v369_v39 = vpop.f32.mrf.mxu0  ;;  %v398_v50 = vpop.f32.mrf.mxu1 }
 0x11e   :  { %v370_v48 = vadd.f32 %v2194_v41, %v369_v39  ;;  %v631_v39 = vld [vmem:[%s3471_s3 + $0x38] sm:$0xff] }
 0x11f   :  { %743 = vmatpush.msra.mxu3 %v631_v39  ;;  %v1008_v39 = vld [vmem:[#allocation5 + $0xf0] sm:$0xff] }
 0x120   :  { %v399_v54 = vadd.f32 %v398_v50, %v370_v48  ;;  %v628_v48 = vld [vmem:[%s3471_s3 + $0x20] sm:$0xff]  ;;  %1255 = vmatpush.msrb.mxu1 %v1008_v39 }
 0x121   :  { %v660_v50 = vld [vmem:[%s3471_s3 + $0x120] sm:$0xff] }
 0x131   :  { %v372_v40 = vpop.f32.mrf.mxu0  ;;  %v401_v60 = vpop.f32.mrf.mxu1 }
 0x132   :  { %v373_v58 = vadd.f32 %v2194_v41, %v372_v40  ;;  %v647_v40 = vld [vmem:[%s3471_s3 + $0xb8] sm:$0xff] }
 0x134   :  { %v402_v63 = vadd.f32 %v401_v60, %v373_v58  ;;  %v642_v58 = vld [vmem:[%s3471_s3 + $0x90] sm:$0xff]  ;;  %v625_v60 = vld [vmem:[%s3471_s3 + $0x8] sm:$0xff] }
 0x139   :  { %v375_v42 = vpop.f32.mrf.mxu0  ;;  %v404_v6 = vpop.f32.mrf.mxu1 }
 0x13a   :  { %v376_v2 = vadd.f32 %v2194_v41, %v375_v42  ;;  %v663_v41 = vld [vmem:[%s3471_s3 + $0x138] sm:$0xff]  ;;  %v630_v42 = vld [vmem:[%s3471_s3 + $0x30] sm:$0xff] }
 0x13b   :  { %801 = vmatpush.msra.mxu0 %v663_v41  ;;  %744 = vmatpush.msra.mxu3 %v630_v42  ;;  %v1072_v41 = vld [vmem:[#allocation5 + $0x2f0] sm:$0xff] }
 0x13c   :  { %v405_v8 = vadd.f32 %v404_v6, %v376_v2  ;;  %v656_v2 = vld [vmem:[%s3471_s3 + $0x100] sm:$0xff]  ;;  %v1104_v42 = vld [vmem:[#allocation5 + $0x3f0] sm:$0xff] }
 0x13d   :  { %802 = vmatpush.msra.mxu0 %v662_v44  ;;  %v1038_v44 = vld [vmem:[#allocation5 + $0x1e0] sm:$0xff] }
 0x141   :  { %v424_v46 = vpop.f32.mrf.mxu0 }
 0x142   :  { %v425_v47 = vadd.f32 %v424_v46, %v396_v45  ;;  %v629_v45 = vld [vmem:[%s3471_s3 + $0x28] sm:$0xff] }
 0x143   :  { %v645_v46 = vld [vmem:[%s3471_s3 + $0xa8] sm:$0xff]  ;;  %745 = vmatpush.msra.mxu3 %v629_v45 }
 0x144   :  { %vm436_vm3 = vcmp.gt.f32.partialorder %v425_v47, 0.0  ;;  %v440_v49 = vmul.f32 0.01, %v425_v47  ;;  %v1070_v45 = vld [vmem:[#allocation5 + $0x2e0] sm:$0xff] }
 0x145   :  { %746 = vmatpush.msra.mxu3 %v628_v48  ;;  %v1036_v48 = vld [vmem:[#allocation5 + $0x1d0] sm:$0xff] }
 0x146   :  { %v444_v51 = vsel %vm436_vm3, %v425_v47, %v440_v49  ;;  %v661_v47 = vld [vmem:[%s3471_s3 + $0x128] sm:$0xff]  ;;  %v644_v49 = vld [vmem:[%s3471_s3 + $0xa0] sm:$0xff] }
 0x147   :  { %479 = vst.msk [vmem:[#allocation3 + $0xc] sm:$0x3] %vm71_vm0, %v444_v51  ;;  %494 = vrot.lane.b32.xlu1 %v444_v51, %s2260_s28  ;;  %v453_v52 = vrot.slane %v444_v51, 4  ;;  %v452_v53 = vrot.slane %v444_v51, 2  ;;  %v454_v57 = vrot.slane %v444_v51, 6  ;;  %803 = vmatpush.msra.mxu0 %v661_v47  ;;  %v1004_v47 = vld [vmem:[#allocation5 + $0xd0] sm:$0xff] }
 0x148   :  { %555 = vst.msk [vmem:[#allocation3 + $0x2] sm:$0x3] %vm71_vm0, %v444_v51 }
 0x149   :  { %v427_v55 = vpop.f32.mrf.mxu0  ;;  %498 = vrot.lane.b32.xlu0 %v453_v52, %s2260_s28  ;;  %594 = vst.msk [vmem:[#allocation3 + $0x4] sm:$0x3] %vm71_vm0, %v453_v52  ;;  %496 = vrot.lane.b32.xlu2 %v452_v53, %s2260_s28 }
 0x14a   :  { %v428_v56 = vadd.f32 %v427_v55, %v399_v54  ;;  %481 = vst.msk [vmem:[#allocation3 + $0x18] sm:$0x3] %vm71_vm0, %v453_v52  ;;  %v659_v54 = vld [vmem:[%s3471_s3 + $0x118] sm:$0xff]  ;;  %804 = vmatpush.msra.mxu0 %v660_v50 }
 0x14b   :  { %557 = vst.msk [vmem:[#allocation3 + $0xe] sm:$0x3] %vm71_vm0, %v453_v52  ;;  %v627_v52 = vld [vmem:[%s3471_s3 + $0x18] sm:$0xff] }
 0x14c   :  { %vm437_vm4 = vcmp.gt.f32.partialorder %v428_v56, 0.0  ;;  %v441_v59 = vmul.f32 0.01, %v428_v56  ;;  %480 = vst.msk [vmem:[#allocation3 + $0x12] sm:$0x3] %vm71_vm0, %v452_v53  ;;  %747 = vmatpush.msra.mxu3 %v627_v52  ;;  %805 = vmatpush.msra.mxu0 %v659_v54  ;;  %v1100_v50 = vld [vmem:[#allocation5 + $0x3d0] sm:$0xff] }
 0x14d   :  { %556 = vst.msk [vmem:[#allocation3 + $0x8] sm:$0x3] %vm71_vm0, %v452_v53  ;;  %v643_v53 = vld [vmem:[%s3471_s3 + $0x98] sm:$0xff] }
 0x14e   :  { %v445_v61 = vsel %vm437_vm4, %v428_v56, %v441_v59  ;;  %595 = vst.msk [vmem:[#allocation3 + $0xa] sm:$0x3] %vm71_vm0, %v454_v57  ;;  %v658_v59 = vld [vmem:[%s3471_s3 + $0x110] sm:$0xff] }
 0x14f   :  { %596 = vst.msk [vmem:[#allocation3 + $0x10] sm:$0x3] %vm71_vm0, %v445_v61  ;;  %500 = vrot.lane.b32.xlu1 %v454_v57, %s2260_s28  ;;  %v455_v62 = vrot.slane %v445_v61, 2  ;;  %v456_v4 = vrot.slane %v445_v61, 4  ;;  %v457_v7 = vrot.slane %v445_v61, 6  ;;  %806 = vmatpush.msra.mxu0 %v658_v59  ;;  %v1002_v59 = vld [vmem:[#allocation5 + $0xc0] sm:$0xff] }
 0x150   :  { %483 = vst.msk [vmem:[#allocation3 + $0x24] sm:$0x3] %vm71_vm0, %v445_v61 }
 0x151   :  { %559 = vst.msk [vmem:[#allocation3 + $0x1a] sm:$0x3] %vm71_vm0, %v445_v61  ;;  %v430_v0 = vpop.f32.mrf.mxu0  ;;  %504 = vrot.lane.b32.xlu0 %v455_v62, %s2260_s28  ;;  %502 = vrot.lane.b32.xlu2 %v445_v61, %s2260_s28  ;;  %v641_v61 = vld [vmem:[%s3471_s3 + $0x88] sm:$0xff] }
 0x152   :  { %482 = vst.msk [vmem:[#allocation3 + $0x1e] sm:$0x3] %vm71_vm0, %v454_v57  ;;  %v431_v1 = vadd.f32 %v430_v0, %v402_v63  ;;  %v624_v0 = vld [vmem:[%s3471_s3] sm:$0xff] }
 0x153   :  { %558 = vst.msk [vmem:[#allocation3 + $0x14] sm:$0x3] %vm71_vm0, %v454_v57  ;;  %v626_v57 = vld [vmem:[%s3471_s3 + $0x10] sm:$0xff] }
 0x154   :  { %vm438_vm5 = vcmp.gt.f32.partialorder %v431_v1, 0.0  ;;  %v442_v3 = vmul.f32 0.01, %v431_v1  ;;  %597 = vst.msk [vmem:[#allocation3 + $0x16] sm:$0x3] %vm71_vm0, %v455_v62  ;;  %748 = vmatpush.msra.mxu3 %v626_v57 }
 0x155   :  { %484 = vst.msk [vmem:[#allocation3 + $0x2a] sm:$0x3] %vm71_vm0, %v455_v62 }
 0x156   :  { %v446_v5 = vsel %vm438_vm5, %v431_v1, %v442_v3  ;;  %560 = vst.msk [vmem:[#allocation3 + $0x20] sm:$0x3] %vm71_vm0, %v455_v62  ;;  %v657_v62 = vld [vmem:[%s3471_s3 + $0x108] sm:$0xff]  ;;  %749 = vmatpush.msra.mxu3 %v625_v60  ;;  %v640_v1 = vld [vmem:[%s3471_s3 + $0x80] sm:$0xff] }
 0x157   :  { %600 = vst.msk [vmem:[#allocation3 + $0x28] sm:$0x3] %vm71_vm0, %v446_v5  ;;  %506 = vrot.lane.b32.xlu1 %v456_v4, %s2260_s28  ;;  %v458_v12 = vrot.slane %v446_v5, 2  ;;  %v460_v14 = vrot.slane %v446_v5, 6  ;;  %v459_v15 = vrot.slane %v446_v5, 4  ;;  %807 = vmatpush.msra.mxu0 %v657_v62  ;;  %v1034_v60 = vld [vmem:[#allocation5 + $0x1c0] sm:$0xff] }
 0x158   :  { %487 = vst.msk [vmem:[#allocation3 + $0x3c] sm:$0x3] %vm71_vm0, %v446_v5  ;;  %750 = vmatpush.msra.mxu3 %v624_v0  ;;  %v1098_v62 = vld [vmem:[#allocation5 + $0x3c0] sm:$0xff]  ;;  %v1000_v0 = vld [vmem:[#allocation5 + $0xb0] sm:$0xff] }
 0x159   :  { %563 = vst.msk [vmem:[#allocation3 + $0x32] sm:$0x3] %vm71_vm0, %v446_v5  ;;  %v433_v9 = vpop.f32.mrf.mxu0  ;;  %508 = vrot.lane.b32.xlu2 %v457_v7, %s2260_s28  ;;  %510 = vrot.lane.b32.xlu0 %v446_v5, %s2260_s28 }
 0x15a   :  { %598 = vst.msk [vmem:[#allocation3 + $0x1c] sm:$0x3] %vm71_vm0, %v456_v4  ;;  %v434_v10 = vadd.f32 %v433_v9, %v405_v8  ;;  %808 = vmatpush.msra.mxu0 %v656_v2  ;;  %v1064_v2 = vld [vmem:[#allocation5 + $0x2b0] sm:$0xff] }
 0x15b   :  { %485 = vst.msk [vmem:[#allocation3 + $0x30] sm:$0x3] %vm71_vm0, %v456_v4 }
 0x15c   :  { %561 = vst.msk [vmem:[#allocation3 + $0x26] sm:$0x3] %vm71_vm0, %v456_v4  ;;  %vm439_vm6 = vcmp.gt.f32.partialorder %v434_v10, 0.0  ;;  %v443_v11 = vmul.f32 0.01, %v434_v10  ;;  %1342 = vmatpush.msrb.mxu0 %v1104_v42 }
 0x15d   :  { %599 = vst.msk [vmem:[#allocation3 + $0x22] sm:$0x3] %vm71_vm0, %v457_v7 }
 0x15e   :  { %v447_v13 = vsel %vm439_vm6, %v434_v10, %v443_v11  ;;  %486 = vst.msk [vmem:[#allocation3 + $0x36] sm:$0x3] %vm71_vm0, %v457_v7 }
 0x15f   :  { %604 = vst.msk [vmem:[#allocation3 + $0x40] sm:$0x3] %vm71_vm0, %v447_v13  ;;  %512 = vrot.lane.b32.xlu1 %v458_v12, %s2260_s28  ;;  %v462_v16 = vrot.slane %v447_v13, 4  ;;  %v461_v17 = vrot.slane %v447_v13, 2  ;;  %v463_v18 = vrot.slane %v447_v13, 6 }
 0x160   :  { %491 = vst.msk [vmem:[#allocation3 + $0x54] sm:$0x3] %vm71_vm0, %v447_v13 }
 0x161   :  { %567 = vst.msk [vmem:[#allocation3 + $0x4a] sm:$0x3] %vm71_vm0, %v447_v13  ;;  %516 = vrot.lane.b32.xlu0 %v460_v14, %s2260_s28  ;;  %514 = vrot.lane.b32.xlu2 %v459_v15, %s2260_s28 }
 0x162   :  { %562 = vst.msk [vmem:[#allocation3 + $0x2c] sm:$0x3] %vm71_vm0, %v457_v7 }
 0x163   :  { %601 = vst.msk [vmem:[#allocation3 + $0x2e] sm:$0x3] %vm71_vm0, %v458_v12 }
 0x164   :  { %488 = vst.msk [vmem:[#allocation3 + $0x42] sm:$0x3] %vm71_vm0, %v458_v12 }
 0x165   :  { %564 = vst.msk [vmem:[#allocation3 + $0x38] sm:$0x3] %vm71_vm0, %v458_v12 }
 0x166   :  { %603 = vst.msk [vmem:[#allocation3 + $0x3a] sm:$0x3] %vm71_vm0, %v460_v14 }
 0x167   :  { %490 = vst.msk [vmem:[#allocation3 + $0x4e] sm:$0x3] %vm71_vm0, %v460_v14  ;;  %518 = vrot.lane.b32.xlu1 %v447_v13, %s2260_s28 }
 0x168   :  { %566 = vst.msk [vmem:[#allocation3 + $0x44] sm:$0x3] %vm71_vm0, %v460_v14 }
 0x169   :  { %602 = vst.msk [vmem:[#allocation3 + $0x34] sm:$0x3] %vm71_vm0, %v459_v15  ;;  %522 = vrot.lane.b32.xlu0 %v462_v16, %s2260_s28  ;;  %520 = vrot.lane.b32.xlu2 %v461_v17, %s2260_s28 }
 0x16a   :  { %489 = vst.msk [vmem:[#allocation3 + $0x48] sm:$0x3] %vm71_vm0, %v459_v15 }
 0x16b   :  { %565 = vst.msk [vmem:[#allocation3 + $0x3e] sm:$0x3] %vm71_vm0, %v459_v15 }
 0x16c   :  { %606 = vst.msk [vmem:[#allocation3 + $0x4c] sm:$0x3] %vm71_vm0, %v462_v16 }
 0x16d   :  { %569 = vst.msk [vmem:[#allocation3 + $0x56] sm:$0x3] %vm71_vm0, %v462_v16 }
 0x16e   :  { %605 = vst.msk [vmem:[#allocation3 + $0x46] sm:$0x3] %vm71_vm0, %v461_v17 }
 0x16f   :  { %492 = vst.msk [vmem:[#allocation3 + $0x5a] sm:$0x3] %vm71_vm0, %v461_v17  ;;  %573 = vrot.lane.b32.xlu1 %v463_v18, %s2260_s28 }
 0x170   :  { %568 = vst.msk [vmem:[#allocation3 + $0x50] sm:$0x3] %vm71_vm0, %v461_v17 }
 0x171   :  { %570 = vst.msk [vmem:[#allocation3 + $0x5c] sm:$0x3] %vm71_vm0, %v463_v18 }
 0x172   :  { %572 = vst.msk [vmem:[#allocation3 + $0x5c] sm:$0x3] %vm89_vm1, %v2261_v24  ;;  %v654_v24 = vld [vmem:[%s3471_s3 + $0xf0] sm:$0xff] }
 0x173   :  { %607 = vst.msk [vmem:[#allocation3 + $0x52] sm:$0x3] %vm71_vm0, %v463_v18  ;;  %765 = vmatpush.msra.mxu2 %v654_v24  ;;  %vm1589_vm0 = vcmask 1045504  }
 0x175   :  { %766 = vmatpush.msra.mxu2 %v653_v23 }
 0x177   :  { %767 = vmatpush.msra.mxu2 %v652_v26 }
 0x179   :  { %768 = vmatpush.msra.mxu2 %v651_v28 }
 0x17b   :  { %769 = vmatpush.msra.mxu2 %v650_v31 }
 0x17d   :  { %770 = vmatpush.msra.mxu2 %v649_v33 }
 0x17f   :  { %771 = vmatpush.msra.mxu2 %v648_v35 }
 0x181   :  { %772 = vmatpush.msra.mxu2 %v647_v40  ;;  %v1040_v40 = vld [vmem:[#allocation5 + $0x1f0] sm:$0xff] }
 0x182   :  { %1284 = vmatpush.msrb.mxu3 %v1040_v40 }
 0x183   :  { %773 = vmatpush.msra.mxu2 %v646_v43  ;;  %v1006_v43 = vld [vmem:[#allocation5 + $0xe0] sm:$0xff] }
 0x184   :  { %1256 = vmatpush.msrb.mxu1 %v1006_v43  ;;  %1285 = vmatpush.msrb.mxu3 %v1038_v44 }
 0x185   :  { %774 = vmatpush.msra.mxu2 %v645_v46  ;;  %v1102_v46 = vld [vmem:[#allocation5 + $0x3e0] sm:$0xff] }
 0x186   :  { %1343 = vmatpush.msrb.mxu0 %v1102_v46  ;;  %1257 = vmatpush.msrb.mxu1 %v1004_v47 }
 0x187   :  { %775 = vmatpush.msra.mxu2 %v644_v49  ;;  %v1068_v49 = vld [vmem:[#allocation5 + $0x2d0] sm:$0xff]  ;;  %1286 = vmatpush.msrb.mxu3 %v1036_v48 }
 0x188   :  { %1344 = vmatpush.msrb.mxu0 %v1100_v50  ;;  %1258 = vmatpush.msrb.mxu1 %v1002_v59  ;;  %v988_v48 = vld [vmem:[#allocation5 + $0x50] sm:$0xff] }
 0x189   :  { %776 = vmatpush.msra.mxu2 %v643_v53  ;;  %1287 = vmatpush.msrb.mxu3 %v1034_v60  ;;  %v1052_v50 = vld [vmem:[#allocation5 + $0x250] sm:$0xff] }
 0x18a   :  { %1345 = vmatpush.msrb.mxu0 %v1098_v62  ;;  %1259 = vmatpush.msrb.mxu1 %v1000_v0  ;;  %v1016_v59 = vld [vmem:[#allocation5 + $0x130] sm:$0xff]  ;;  %v1014_v0 = vld [vmem:[#allocation5 + $0x120] sm:$0xff] }
 0x18b   :  { %777 = vmatpush.msra.mxu2 %v642_v58  ;;  %v1048_v60 = vld [vmem:[#allocation5 + $0x230] sm:$0xff] }
 0x18c   :  { %v1080_v62 = vld [vmem:[#allocation5 + $0x330] sm:$0xff] }
 0x18d   :  { %778 = vmatpush.msra.mxu2 %v641_v61  ;;  %v1066_v61 = vld [vmem:[#allocation5 + $0x2c0] sm:$0xff] }
 0x18f   :  { %779 = vmatpush.msra.mxu2 %v640_v1  ;;  %v1032_v1 = vld [vmem:[#allocation5 + $0x1b0] sm:$0xff] }
 0x190   :  { %1288 = vmatpush.msrb.mxu3 %v1032_v1  ;;  %v1046_v1 = vld [vmem:[#allocation5 + $0x220] sm:$0xff] }
 0x191   :  { %1313 = vmatpush.msrb.mxu2 %v1072_v41 }
 0x193   :  { %1314 = vmatpush.msrb.mxu2 %v1070_v45 }
 0x195   :  { %1315 = vmatpush.msrb.mxu2 %v1068_v49  ;;  %v1020_v49 = vld [vmem:[#allocation5 + $0x150] sm:$0xff] }
 0x197   :  { %1316 = vmatpush.msrb.mxu2 %v1066_v61 }
 0x199   :  { %1317 = vmatpush.msrb.mxu2 %v1064_v2  ;;  %v1078_v2 = vld [vmem:[#allocation5 + $0x320] sm:$0xff] }
 0x1a3   :  { %v497_v29 = vpop.permute.xlu2 %496 }
 0x1a4   :  { %541 = vst.msk [vmem:[#allocation3 + $0xc] sm:$0x3] %vm89_vm1, %v497_v29 }
 0x1a5   :  { %576 = vst.msk [vmem:[#allocation3 + $0x2] sm:$0x3] %vm89_vm1, %v497_v29 }
 0x1ab   :  { %v503_v36 = vpop.permute.xlu2 %502 }
 0x1ac   :  { %v608_v37 = vld [vmem:[#allocation3] sm:$0x3f]  ;;  %544 = vst.msk [vmem:[#allocation3 + $0x1e] sm:$0x3] %vm89_vm1, %v503_v36 }
 0x1ad   :  { %684 = vst [vmem:[#allocation1] ss:$4 sm:$0xff] %v608_v37 }
 0x1ae   :  { %579 = vst.msk [vmem:[#allocation3 + $0x14] sm:$0x3] %vm89_vm1, %v503_v36 }
 0x1b3   :  { %v509_v38 = vpop.permute.xlu2 %508 }
 0x1b4   :  { %547 = vst.msk [vmem:[#allocation3 + $0x30] sm:$0x3] %vm89_vm1, %v509_v38 }
 0x1b5   :  { %582 = vst.msk [vmem:[#allocation3 + $0x26] sm:$0x3] %vm89_vm1, %v509_v38 }
 0x1b9   :  { %v495_v51 = vpop.permute.xlu1 %494 }
 0x1ba   :  { %540 = vst.msk [vmem:[#allocation3 + $0x6] sm:$0x3] %vm89_vm1, %v495_v51  ;;  %v2846_v51 = vld [vmem:[%s3472_s4] ss:$0 sm:$0xff]  ;;  %s2159_s4 = sshll.u32 %s3479_s11, 4  ;;  %s2160_s4 = int_to_ptr.hbm [resolvable:$true] %s2159_s4 }
 0x1bb   :  { %v499_v55 = vpop.permute.xlu0 %498  ;;  %v515_v56 = vpop.permute.xlu2 %514 }
 0x1bc   :  { %542 = vst.msk [vmem:[#allocation3 + $0x12] sm:$0x3] %vm89_vm1, %v499_v55 }
 0x1bd   :  { %577 = vst.msk [vmem:[#allocation3 + $0x8] sm:$0x3] %vm89_vm1, %v499_v55 }
 0x1be   :  { %550 = vst.msk [vmem:[#allocation3 + $0x42] sm:$0x3] %vm89_vm1, %v515_v56 }
 0x1bf   :  { %585 = vst.msk [vmem:[#allocation3 + $0x38] sm:$0x3] %vm89_vm1, %v515_v56 }
 0x1c1   :  { %v501_v63 = vpop.permute.xlu1 %500 }
 0x1c2   :  { %543 = vst.msk [vmem:[#allocation3 + $0x18] sm:$0x3] %vm89_vm1, %v501_v63 }
 0x1c3   :  { %v611_v3 = vld [vmem:[#allocation3 + $0x12] sm:$0x3f]  ;;  %578 = vst.msk [vmem:[#allocation3 + $0xe] sm:$0x3] %vm89_vm1, %v501_v63  ;;  %v505_v4 = vpop.permute.xlu0 %504  ;;  %v521_v6 = vpop.permute.xlu2 %520 }
 0x1c4   :  { %v609_v5 = vld [vmem:[#allocation3 + $0x6] sm:$0x3f]  ;;  %690 = vst [vmem:[#allocation1 + $0x3] ss:$4 sm:$0xff] %v611_v3 }
 0x1c5   :  { %686 = vst [vmem:[#allocation1 + $0x1] ss:$4 sm:$0xff] %v609_v5 }
 0x1c6   :  { %545 = vst.msk [vmem:[#allocation3 + $0x24] sm:$0x3] %vm89_vm1, %v505_v4 }
 0x1c7   :  { %580 = vst.msk [vmem:[#allocation3 + $0x1a] sm:$0x3] %vm89_vm1, %v505_v4 }
 0x1c8   :  { %553 = vst.msk [vmem:[#allocation3 + $0x54] sm:$0x3] %vm89_vm1, %v521_v6 }
 0x1c9   :  { %588 = vst.msk [vmem:[#allocation3 + $0x4a] sm:$0x3] %vm89_vm1, %v521_v6  ;;  %v507_v7 = vpop.permute.xlu1 %506  ;;  %v1096_v6 = vld [vmem:[#allocation5 + $0x3b0] sm:$0xff] }
 0x1ca   :  { %v610_v8 = vld [vmem:[#allocation3 + $0xc] sm:$0x3f]  ;;  %546 = vst.msk [vmem:[#allocation3 + $0x2a] sm:$0x3] %vm89_vm1, %v507_v7  ;;  %1346 = vmatpush.msrb.mxu0 %v1096_v6 }
 0x1cb   :  { %688 = vst [vmem:[#allocation1 + $0x2] ss:$4 sm:$0xff] %v610_v8  ;;  %v511_v9 = vpop.permute.xlu0 %510  ;;  %v1030_v8 = vld [vmem:[#allocation5 + $0x1a0] sm:$0xff] }
 0x1cc   :  { %581 = vst.msk [vmem:[#allocation3 + $0x20] sm:$0x3] %vm89_vm1, %v507_v7  ;;  %v998_v7 = vld [vmem:[#allocation5 + $0xa0] sm:$0xff]  ;;  %1289 = vmatpush.msrb.mxu3 %v1030_v8 }
 0x1cd   :  { %v614_v10 = vld [vmem:[#allocation3 + $0x24] sm:$0x3f]  ;;  %548 = vst.msk [vmem:[#allocation3 + $0x36] sm:$0x3] %vm89_vm1, %v511_v9  ;;  %1260 = vmatpush.msrb.mxu1 %v998_v7 }
 0x1ce   :  { %v612_v11 = vld [vmem:[#allocation3 + $0x18] sm:$0x3f]  ;;  %696 = vst [vmem:[#allocation1 + $0x22] ss:$4 sm:$0xff] %v614_v10  ;;  %v1094_v10 = vld [vmem:[#allocation5 + $0x3a0] sm:$0xff] }
 0x1cf   :  { %692 = vst [vmem:[#allocation1 + $0x20] ss:$4 sm:$0xff] %v612_v11  ;;  %1347 = vmatpush.msrb.mxu0 %v1094_v10 }
 0x1d0   :  { %583 = vst.msk [vmem:[#allocation3 + $0x2c] sm:$0x3] %vm89_vm1, %v511_v9  ;;  %v1062_v9 = vld [vmem:[#allocation5 + $0x2a0] sm:$0xff] }
 0x1d1   :  { %v513_v12 = vpop.permute.xlu1 %512  ;;  %1318 = vmatpush.msrb.mxu2 %v1062_v9 }
 0x1d2   :  { %v699_v13 = vld.sshfl [vmem:[#allocation1] sm:$0xff pattern:$0x73625140]  ;;  %v700_v14 = vld.sshfl [vmem:[#allocation1 + $0x8] sm:$0xff pattern:$0x73625140] }
 0x1d3   :  { %v701_v15 = vld.sshfl [vmem:[#allocation1 + $0x10] sm:$0xff pattern:$0x73625140]  ;;  %v613_v16 = vld [vmem:[#allocation3 + $0x1e] sm:$0x3f]  ;;  %751 = vmatmul.f32.vlgmr.msra.gmra.mxu3 %v699_v13  ;;  %780 = vmatmul.f32.vlgmr.msra.gmra.mxu2 %v700_v14  ;;  %v517_v17 = vpop.permute.xlu0 %516  ;;  %v1028_v13 = vld [vmem:[#allocation5 + $0x190] sm:$0xff] }
 0x1d4   :  { %694 = vst [vmem:[#allocation1 + $0x21] ss:$4 sm:$0xff] %v613_v16  ;;  %v617_v18 = vld [vmem:[#allocation3 + $0x36] sm:$0x3f]  ;;  %2176 = vmatmul.msk.f32.vlgmr.msra.gmra.mxu0 %vm340_vm2, %v701_v15  ;;  %1290 = vmatpush.msrb.mxu3 %v1028_v13 }
 0x1d5   :  { %706 = vst [vmem:[#allocation1 + $0x1] ss:$4 sm:$0xff] %v617_v18  ;;  %v1060_v14 = vld [vmem:[#allocation5 + $0x290] sm:$0xff]  ;;  %v994_v18 = vld [vmem:[#allocation5 + $0x80] sm:$0xff] }
 0x1d6   :  { %549 = vst.msk [vmem:[#allocation3 + $0x3c] sm:$0x3] %vm89_vm1, %v513_v12  ;;  %v1092_v16 = vld [vmem:[#allocation5 + $0x390] sm:$0xff]  ;;  %1319 = vmatpush.msrb.mxu2 %v1060_v14 }
 0x1d7   :  { %v615_v19 = vld [vmem:[#allocation3 + $0x2a] sm:$0x3f]  ;;  %584 = vst.msk [vmem:[#allocation3 + $0x32] sm:$0x3] %vm89_vm1, %v513_v12  ;;  %v996_v12 = vld [vmem:[#allocation5 + $0x90] sm:$0xff]  ;;  %1348 = vmatpush.msrb.mxu0 %v1092_v16 }
 0x1d8   :  { %698 = vst [vmem:[#allocation1 + $0x23] ss:$4 sm:$0xff] %v615_v19  ;;  %1261 = vmatpush.msrb.mxu1 %v996_v12  ;;  %v1026_v19 = vld [vmem:[#allocation5 + $0x180] sm:$0xff] }
 0x1d9   :  { %551 = vst.msk [vmem:[#allocation3 + $0x48] sm:$0x3] %vm89_vm1, %v517_v17  ;;  %v519_v20 = vpop.permute.xlu1 %518  ;;  %1291 = vmatpush.msrb.mxu3 %v1026_v19  ;;  %v980_v19 = vld [vmem:[#allocation5 + $0x10] sm:$0xff] }
 0x1da   :  { %586 = vst.msk [vmem:[#allocation3 + $0x3e] sm:$0x3] %vm89_vm1, %v517_v17  ;;  %1262 = vmatpush.msrb.mxu1 %v994_v18 }
 0x1db   :  { %552 = vst.msk [vmem:[#allocation3 + $0x4e] sm:$0x3] %vm89_vm1, %v519_v20  ;;  %v523_v21 = vpop.permute.xlu0 %522 }
 0x1dc   :  { %587 = vst.msk [vmem:[#allocation3 + $0x44] sm:$0x3] %vm89_vm1, %v519_v20  ;;  %v1058_v20 = vld [vmem:[#allocation5 + $0x280] sm:$0xff] }
 0x1dd   :  { %554 = vst.msk [vmem:[#allocation3 + $0x5a] sm:$0x3] %vm89_vm1, %v523_v21  ;;  %1320 = vmatpush.msrb.mxu2 %v1058_v20  ;;  %v1012_v20 = vld [vmem:[#allocation5 + $0x110] sm:$0xff] }
 0x1de   :  { %v616_v24 = vld [vmem:[#allocation3 + $0x30] sm:$0x3f]  ;;  %589 = vst.msk [vmem:[#allocation3 + $0x50] sm:$0x3] %vm89_vm1, %v523_v21 }
 0x1df   :  { %v702_v22 = vld.sshfl [vmem:[#allocation1 + $0x20] sm:$0xff pattern:$0x73625140]  ;;  %v703_v23 = vld.sshfl [vmem:[#allocation1 + $0x28] sm:$0xff pattern:$0x73625140] }
 0x1e0   :  { %v704_v25 = vld.sshfl [vmem:[#allocation1 + $0x30] sm:$0xff pattern:$0x73625140]  ;;  %705 = vst [vmem:[#allocation1] ss:$4 sm:$0xff] %v616_v24  ;;  %754 = vmatmul.f32.gmra.mxu3 %v702_v22  ;;  %783 = vmatmul.f32.gmra.mxu2 %v703_v23  ;;  %v1090_v24 = vld [vmem:[#allocation5 + $0x380] sm:$0xff] }
 0x1e1   :  { %v618_v26 = vld [vmem:[#allocation3 + $0x3c] sm:$0x3f]  ;;  %v620_v27 = vld [vmem:[#allocation3 + $0x48] sm:$0x3f]  ;;  %2177 = vmatmul.msk.f32.gmra.mxu0 %vm340_vm2, %v704_v25  ;;  %v574_v30 = vpop.permute.xlu1 %573  ;;  %v992_v23 = vld [vmem:[#allocation5 + $0x70] sm:$0xff] }
 0x1e2   :  { %707 = vst [vmem:[#allocation1 + $0x2] ss:$4 sm:$0xff] %v618_v26  ;;  %1349 = vmatpush.msrb.mxu0 %v1090_v24  ;;  %v1024_v25 = vld [vmem:[#allocation5 + $0x170] sm:$0xff]  ;;  %1263 = vmatpush.msrb.mxu1 %v992_v23  ;;  %v1010_v23 = vld [vmem:[#allocation5 + $0x100] sm:$0xff] }
 0x1e3   :  { %709 = vst [vmem:[#allocation1 + $0x20] ss:$4 sm:$0xff] %v620_v27  ;;  %v619_v28 = vld [vmem:[#allocation3 + $0x42] sm:$0x3f]  ;;  %v1056_v26 = vld [vmem:[#allocation5 + $0x270] sm:$0xff]  ;;  %1292 = vmatpush.msrb.mxu3 %v1024_v25 }
 0x1e4   :  { %708 = vst [vmem:[#allocation1 + $0x3] ss:$4 sm:$0xff] %v619_v28  ;;  %v623_v29 = vld [vmem:[#allocation3 + $0x5a] sm:$0x3f]  ;;  %v1088_v28 = vld [vmem:[#allocation5 + $0x370] sm:$0xff]  ;;  %1321 = vmatpush.msrb.mxu2 %v1056_v26 }
 0x1e5   :  { %v621_v31 = vld [vmem:[#allocation3 + $0x4e] sm:$0x3f]  ;;  %712 = vst [vmem:[#allocation1 + $0x23] ss:$4 sm:$0xff] %v623_v29  ;;  %1350 = vmatpush.msrb.mxu0 %v1088_v28  ;;  %v990_v29 = vld [vmem:[#allocation5 + $0x60] sm:$0xff] }
 0x1e6   :  { %710 = vst [vmem:[#allocation1 + $0x21] ss:$4 sm:$0xff] %v621_v31  ;;  %v1054_v31 = vld [vmem:[#allocation5 + $0x260] sm:$0xff]  ;;  %1264 = vmatpush.msrb.mxu1 %v990_v29  ;;  %v1076_v24 = vld [vmem:[#allocation5 + $0x310] sm:$0xff] }
 0x1e7   :  { %590 = vst.msk [vmem:[#allocation3 + $0x56] sm:$0x3] %vm89_vm1, %v574_v30  ;;  %v1022_v30 = vld [vmem:[#allocation5 + $0x160] sm:$0xff]  ;;  %1322 = vmatpush.msrb.mxu2 %v1054_v31 }
 0x1e8   :  { %1293 = vmatpush.msrb.mxu3 %v1022_v30  ;;  %1265 = vmatpush.msrb.mxu1 %v988_v48  ;;  %v1074_v28 = vld [vmem:[#allocation5 + $0x300] sm:$0xff]  ;;  %v1035_v48 = vld [vmem:[#allocation5 + $0x1c8] sm:$0xff] }
 0x1e9   :  { %1323 = vmatpush.msrb.mxu2 %v1052_v50 }
 0x1ea   :  { %1294 = vmatpush.msrb.mxu3 %v1020_v49  ;;  %v1067_v49 = vld [vmem:[#allocation5 + $0x2c8] sm:$0xff] }
 0x1eb   :  { %v713_v32 = vld.sshfl [vmem:[#allocation1] sm:$0xff pattern:$0x73625140]  ;;  %v714_v33 = vld.sshfl [vmem:[#allocation1 + $0x8] sm:$0xff pattern:$0x73625140] }
 0x1ec   :  { %v715_v34 = vld.sshfl [vmem:[#allocation1 + $0x10] sm:$0xff pattern:$0x73625140]  ;;  %757 = vmatmul.f32.gmra.mxu3 %v713_v32  ;;  %786 = vmatmul.f32.gmra.mxu2 %v714_v33  ;;  %v1086_v33 = vld [vmem:[#allocation5 + $0x360] sm:$0xff] }
 0x1ed   :  { %2178 = vmatmul.msk.f32.gmra.mxu0 %vm340_vm2, %v715_v34 }
 0x1ee   :  { %v622_v35 = vld [vmem:[#allocation3 + $0x54] sm:$0x3f]  ;;  %1351 = vmatpush.msrb.mxu0 %v1086_v33 }
 0x1ef   :  { %711 = vst [vmem:[#allocation1 + $0x22] ss:$4 sm:$0xff] %v622_v35  ;;  %v1009_v33 = vld [vmem:[#allocation5 + $0xf8] sm:$0xff] }
 0x1f6   :  { %v716_v36 = vld.sshfl [vmem:[#allocation1 + $0x20] sm:$0xff pattern:$0x73625140]  ;;  %v717_v37 = vld.sshfl [vmem:[#allocation1 + $0x28] sm:$0xff pattern:$0x73625140] }
 0x1f7   :  { %v718_v38 = vld.sshfl [vmem:[#allocation1 + $0x30] sm:$0xff pattern:$0x73625140]  ;;  %760 = vmatmul.f32.gmra.mxu3 %v716_v36  ;;  %789 = vmatmul.f32.gmra.mxu2 %v717_v37 }
 0x1f8   :  { %2179 = vmatmul.msk.f32.gmra.mxu0 %vm340_vm2, %v718_v38 }
 0x251   :  { %v810_v56 = vpop.f32.mrf.mxu0 }
 0x256   :  { %v752_v52 = vpop.f32.mrf.mxu3  ;;  %v781_v54 = vpop.f32.mrf.mxu2 }
 0x257   :  { %v753_v53 = vadd.f32 %v2846_v51, %v752_v52 }
 0x259   :  { %v782_v55 = vadd.f32 %v781_v54, %v753_v53  ;;  %v1084_v53 = vld [vmem:[#allocation5 + $0x350] sm:$0xff]  ;;  %v986_v54 = vld [vmem:[#allocation5 + $0x40] sm:$0xff] }
 0x25a   :  { %1352 = vmatpush.msrb.mxu0 %v1084_v53  ;;  %1266 = vmatpush.msrb.mxu1 %v986_v54  ;;  %v1128_v53 = vld [vmem:[#allocation5 + $0x4b0] sm:$0xff]  ;;  %v1033_v54 = vld [vmem:[#allocation5 + $0x1b8] sm:$0xff] }
 0x25b   :  { %v811_v57 = vadd.f32 %v810_v56, %v782_v55  ;;  %v1018_v55 = vld [vmem:[#allocation5 + $0x140] sm:$0xff] }
 0x25c   :  { %v1050_v56 = vld [vmem:[#allocation5 + $0x240] sm:$0xff]  ;;  %1295 = vmatpush.msrb.mxu3 %v1018_v55  ;;  %v1065_v55 = vld [vmem:[#allocation5 + $0x2b8] sm:$0xff] }
 0x25d   :  { %vm822_vm7 = vcmp.gt.f32.partialorder %v811_v57, 0.0  ;;  %v826_v58 = vmul.f32 0.01, %v811_v57  ;;  %1324 = vmatpush.msrb.mxu2 %v1050_v56  ;;  %v999_v56 = vld [vmem:[#allocation5 + $0xa8] sm:$0xff] }
 0x25e   :  { %v813_v22 = vpop.f32.mrf.mxu0  ;;  %1296 = vmatpush.msrb.mxu3 %v1016_v59  ;;  %v1063_v59 = vld [vmem:[#allocation5 + $0x2a8] sm:$0xff] }
 0x25f   :  { %v830_v63 = vsel %vm822_vm7, %v811_v57, %v826_v58  ;;  %v1082_v57 = vld [vmem:[#allocation5 + $0x340] sm:$0xff]  ;;  %v984_v58 = vld [vmem:[#allocation5 + $0x30] sm:$0xff]  ;;  %1325 = vmatpush.msrb.mxu2 %v1048_v60  ;;  %v997_v60 = vld [vmem:[#allocation5 + $0x98] sm:$0xff]  ;;  %vm1855_vm7 = vcmask 1040384  }
 0x260   :  { %v2849_v3 = vrot.slane %v830_v63, 2  ;;  %v2851_v4 = vrot.slane %v830_v63, 4  ;;  %v2853_v5 = vrot.slane %v830_v63, 6  ;;  %865 = vst [vmem:[#allocation4 + $0x14] sm:$0x3] %v830_v63  ;;  %1353 = vmatpush.msrb.mxu0 %v1082_v57  ;;  %1267 = vmatpush.msrb.mxu1 %v984_v58  ;;  %v1126_v57 = vld [vmem:[#allocation5 + $0x4a0] sm:$0xff] }
 0x261   :  { %881 = vst [vmem:[#allocation4 + $0xc] sm:$0x3] %v830_v63  ;;  %1297 = vmatpush.msrb.mxu3 %v1014_v0  ;;  %1326 = vmatpush.msrb.mxu2 %v1046_v1  ;;  %v1031_v58 = vld [vmem:[#allocation5 + $0x1a8] sm:$0xff]  ;;  %v1061_v0 = vld [vmem:[#allocation5 + $0x298] sm:$0xff] }
 0x262   :  { %866 = vst [vmem:[#allocation4 + $0x1e] sm:$0x3] %v2849_v3  ;;  %1354 = vmatpush.msrb.mxu0 %v1080_v62  ;;  %v1124_v62 = vld [vmem:[#allocation5 + $0x490] sm:$0xff] }
 0x263   :  { %867 = vst [vmem:[#allocation4 + $0x28] sm:$0x3] %v2851_v4  ;;  %v755_v11 = vpop.f32.mrf.mxu3  ;;  %v784_v17 = vpop.f32.mrf.mxu2  ;;  %1298 = vmatpush.msrb.mxu3 %v1012_v20 }
 0x264   :  { %868 = vst [vmem:[#allocation4 + $0x32] sm:$0x3] %v2853_v5  ;;  %v756_v15 = vadd.f32 %v2846_v51, %v755_v11  ;;  %1355 = vmatpush.msrb.mxu0 %v1078_v2  ;;  %v995_v2 = vld [vmem:[#allocation5 + $0x88] sm:$0xff] }
 0x265   :  { %882 = vst [vmem:[#allocation4 + $0x16] sm:$0x3] %v2849_v3  ;;  %1299 = vmatpush.msrb.mxu3 %v1010_v23 }
 0x266   :  { %883 = vst [vmem:[#allocation4 + $0x20] sm:$0x3] %v2851_v4  ;;  %v785_v21 = vadd.f32 %v784_v17, %v756_v15  ;;  %1356 = vmatpush.msrb.mxu0 %v1076_v24 }
 0x267   :  { %884 = vst [vmem:[#allocation4 + $0x2a] sm:$0x3] %v2853_v5  ;;  %1400 = vmatpush.msra.mxu3 %v1009_v33  ;;  %v987_v33 = vld [vmem:[#allocation5 + $0x48] sm:$0xff] }
 0x268   :  { %896 = vst [vmem:[#allocation4 + $0x4] sm:$0x3] %v830_v63  ;;  %v814_v27 = vadd.f32 %v813_v22, %v785_v21  ;;  %v982_v63 = vld [vmem:[#allocation5 + $0x20] sm:$0xff]  ;;  %v1044_v21 = vld [vmem:[#allocation5 + $0x210] sm:$0xff]  ;;  %1357 = vmatpush.msrb.mxu0 %v1074_v28  ;;  %v989_v28 = vld [vmem:[#allocation5 + $0x58] sm:$0xff] }
 0x269   :  { %897 = vst [vmem:[#allocation4 + $0xe] sm:$0x3] %v2849_v3  ;;  %1268 = vmatpush.msrb.mxu1 %v982_v63  ;;  %v978_v22 = vld [vmem:[#allocation5] sm:$0xff]  ;;  %1327 = vmatpush.msrb.mxu2 %v1044_v21  ;;  %v1029_v63 = vld [vmem:[#allocation5 + $0x198] sm:$0xff] }
 0x26a   :  { %898 = vst [vmem:[#allocation4 + $0x18] sm:$0x3] %v2851_v4  ;;  %vm823_vm8 = vcmp.gt.f32.partialorder %v814_v27, 0.0  ;;  %v827_v32 = vmul.f32 0.01, %v814_v27  ;;  %v816_v47 = vpop.f32.mrf.mxu0  ;;  %v1118_v21 = vld [vmem:[#allocation5 + $0x460] sm:$0xff] }
 0x26b   :  { %899 = vst [vmem:[#allocation4 + $0x22] sm:$0x3] %v2853_v5  ;;  %1269 = vmatpush.msrb.mxu1 %v980_v19  ;;  %v991_v19 = vld [vmem:[#allocation5 + $0x68] sm:$0xff] }
 0x26c   :  { %914 = vst [vmem:[#allocation4 + $0x6] sm:$0x3] %v2849_v3  ;;  %v2866_v34 = vsel %vm823_vm8, %v814_v27, %v827_v32  ;;  %v1042_v27 = vld [vmem:[#allocation5 + $0x200] sm:$0xff] }
 0x26d   :  { %915 = vst [vmem:[#allocation4 + $0x10] sm:$0x3] %v2851_v4  ;;  %v2871_v35 = vrot.slane %v2866_v34, 2  ;;  %v2875_v36 = vrot.slane %v2866_v34, 4  ;;  %v843_v42 = vrot.slane %v2866_v34, 6  ;;  %1270 = vmatpush.msrb.mxu1 %v978_v22  ;;  %1328 = vmatpush.msrb.mxu2 %v1042_v27  ;;  %v1023_v22 = vld [vmem:[#allocation5 + $0x168] sm:$0xff] }
 0x26e   :  { %916 = vst [vmem:[#allocation4 + $0x1a] sm:$0x3] %v2853_v5 }
 0x26f   :  { %932 = vst [vmem:[#allocation4 + $0x8] sm:$0x3] %v2851_v4  ;;  %v758_v37 = vpop.f32.mrf.mxu3  ;;  %v787_v45 = vpop.f32.mrf.mxu2 }
 0x270   :  { %933 = vst [vmem:[#allocation4 + $0x12] sm:$0x3] %v2853_v5  ;;  %v759_v40 = vadd.f32 %v2846_v51, %v758_v37  ;;  %v1007_v37 = vld [vmem:[#allocation5 + $0xe8] sm:$0xff] }
 0x271   :  { %869 = vst [vmem:[#allocation4 + $0x3c] sm:$0x3] %v2866_v34  ;;  %1401 = vmatpush.msra.mxu3 %v1007_v37  ;;  %v985_v37 = vld [vmem:[#allocation5 + $0x38] sm:$0xff] }
 0x272   :  { %870 = vst [vmem:[#allocation4 + $0x46] sm:$0x3] %v2871_v35  ;;  %v788_v46 = vadd.f32 %v787_v45, %v759_v40  ;;  %v1069_v45 = vld [vmem:[#allocation5 + $0x2d8] sm:$0xff] }
 0x273   :  { %v946_v38 = vld [vmem:[#allocation4] sm:$0xff]  ;;  %871 = vst [vmem:[#allocation4 + $0x50] sm:$0x3] %v2875_v36 }
 0x274   :  { %v948_v39 = vld [vmem:[#allocation4 + $0xa] sm:$0xff]  ;;  %1176 = vst [vmem:[#allocation1] ss:$4 sm:$0xff] %v946_v38  ;;  %v817_v52 = vadd.f32 %v816_v47, %v788_v46  ;;  %v1134_v38 = vld [vmem:[#allocation5 + $0x4e0] sm:$0xff] }
 0x275   :  { %v950_v41 = vld [vmem:[#allocation4 + $0x14] sm:$0xff]  ;;  %1178 = vst [vmem:[#allocation1 + $0x1] ss:$4 sm:$0xff] %v948_v39  ;;  %v819_v31 = vpop.f32.mrf.mxu0  ;;  %v1039_v39 = vld [vmem:[#allocation5 + $0x1e8] sm:$0xff]  ;;  %v1130_v47 = vld [vmem:[#allocation5 + $0x4c0] sm:$0xff] }
 0x276   :  { %v947_v43 = vld [vmem:[#allocation4 + $0x8] sm:$0x3]  ;;  %1180 = vst [vmem:[#allocation1 + $0x2] ss:$4 sm:$0xff] %v950_v41  ;;  %v828_v61 = vmul.f32 0.01, %v817_v52 }
 0x277   :  { %v949_v44 = vld [vmem:[#allocation4 + $0x12] sm:$0x3]  ;;  %1184 = vst [vmem:[#allocation1 + $0x20] ss:$4 sm:$0xff] %v947_v43  ;;  %vm824_vm9 = vcmp.gt.f32.partialorder %v817_v52, 0.0  ;;  %v1071_v41 = vld [vmem:[#allocation5 + $0x2e8] sm:$0xff] }
 0x278   :  { %1186 = vst [vmem:[#allocation1 + $0x21] ss:$4 sm:$0xff] %v949_v44  ;;  %v2892_v3 = vsel %vm824_vm9, %v817_v52, %v828_v61  ;;  %v1132_v43 = vld [vmem:[#allocation5 + $0x4d0] sm:$0xff]  ;;  %v1037_v44 = vld [vmem:[#allocation5 + $0x1d8] sm:$0xff]  ;;  %v1003_v46 = vld [vmem:[#allocation5 + $0xc8] sm:$0xff]  ;;  %vm1851_vm9 = vcmask 7168  }
 0x279   :  { %872 = vst [vmem:[#allocation4 + $0x5a] sm:$0x3] %v843_v42  ;;  %v2898_v4 = vrot.slane %v2892_v3, 2  ;;  %v2901_v6 = vrot.slane %v2892_v3, 4  ;;  %v2905_v7 = vrot.slane %v2892_v3, 6  ;;  %v1001_v52 = vld [vmem:[#allocation5 + $0xb8] sm:$0xff] }
 0x27a   :  { %885 = vst [vmem:[#allocation4 + $0x34] sm:$0x3] %v2866_v34  ;;  %v761_v10 = vpop.f32.mrf.mxu3  ;;  %v790_v26 = vpop.f32.mrf.mxu2 }
 0x27b   :  { %886 = vst [vmem:[#allocation4 + $0x3e] sm:$0x3] %v2871_v35  ;;  %v762_v18 = vadd.f32 %v2846_v51, %v761_v10  ;;  %v1120_v10 = vld [vmem:[#allocation5 + $0x470] sm:$0xff] }
 0x27c   :  { %887 = vst [vmem:[#allocation4 + $0x48] sm:$0x3] %v2875_v36 }
 0x27d   :  { %888 = vst [vmem:[#allocation4 + $0x52] sm:$0x3] %v843_v42  ;;  %v791_v51 = vadd.f32 %v790_v26, %v762_v18  ;;  %v1055_v26 = vld [vmem:[#allocation5 + $0x268] sm:$0xff] }
 0x27e   :  { %900 = vst [vmem:[#allocation4 + $0x2c] sm:$0x3] %v2866_v34 }
 0x27f   :  { %901 = vst [vmem:[#allocation4 + $0x36] sm:$0x3] %v2871_v35  ;;  %v820_v32 = vadd.f32 %v819_v31, %v791_v51  ;;  %v1116_v51 = vld [vmem:[#allocation5 + $0x450] sm:$0xff] }
 0x280   :  { %902 = vst [vmem:[#allocation4 + $0x40] sm:$0x3] %v2875_v36 }
 0x281   :  { %903 = vst [vmem:[#allocation4 + $0x4a] sm:$0x3] %v843_v42  ;;  %v829_v40 = vmul.f32 0.01, %v820_v32  ;;  %vm825_vm10 = vcmp.gt.f32.partialorder %v820_v32, 0.0 }
 0x282   :  { %917 = vst [vmem:[#allocation4 + $0x24] sm:$0x3] %v2866_v34 }
 0x283   :  { %918 = vst [vmem:[#allocation4 + $0x2e] sm:$0x3] %v2871_v35  ;;  %v2937_v50 = vsel %vm825_vm10, %v820_v32, %v829_v40  ;;  %v1053_v32 = vld [vmem:[#allocation5 + $0x258] sm:$0xff] }
 0x284   :  { %919 = vst [vmem:[#allocation4 + $0x38] sm:$0x3] %v2875_v36  ;;  %v2943_v61 = vrot.slane %v2937_v50, 2  ;;  %v1049_v40 = vld [vmem:[#allocation5 + $0x238] sm:$0xff] }
 0x285   :  { %920 = vst [vmem:[#allocation4 + $0x42] sm:$0x3] %v843_v42 }
 0x286   :  { %934 = vst [vmem:[#allocation4 + $0x1c] sm:$0x3] %v2866_v34  ;;  %v1136_v34 = vld [vmem:[#allocation5 + $0x4f0] sm:$0xff] }
 0x287   :  { %935 = vst [vmem:[#allocation4 + $0x26] sm:$0x3] %v2871_v35  ;;  %v1041_v35 = vld [vmem:[#allocation5 + $0x1f8] sm:$0xff]  ;;  %1371 = vmatpush.msra.mxu1 %v1136_v34  ;;  %v1114_v34 = vld [vmem:[#allocation5 + $0x440] sm:$0xff] }
 0x288   :  { %936 = vst [vmem:[#allocation4 + $0x30] sm:$0x3] %v2875_v36  ;;  %v1073_v36 = vld [vmem:[#allocation5 + $0x2f8] sm:$0xff]  ;;  %1429 = vmatpush.msra.mxu2 %v1041_v35  ;;  %v1019_v35 = vld [vmem:[#allocation5 + $0x148] sm:$0xff] }
 0x289   :  { %937 = vst [vmem:[#allocation4 + $0x3a] sm:$0x3] %v843_v42  ;;  %v952_v5 = vld [vmem:[#allocation4 + $0x1e] sm:$0xff]  ;;  %1458 = vmatpush.msra.mxu0 %v1073_v36  ;;  %1372 = vmatpush.msra.mxu1 %v1134_v38  ;;  %v1051_v36 = vld [vmem:[#allocation5 + $0x248] sm:$0xff]  ;;  %v1112_v38 = vld [vmem:[#allocation5 + $0x430] sm:$0xff] }
 0x28a   :  { %1182 = vst [vmem:[#allocation1 + $0x3] ss:$4 sm:$0xff] %v952_v5  ;;  %v954_v11 = vld [vmem:[#allocation4 + $0x28] sm:$0xff]  ;;  %1430 = vmatpush.msra.mxu2 %v1039_v39  ;;  %v1005_v42 = vld [vmem:[#allocation5 + $0xd8] sm:$0xff] }
 0x28b   :  { %873 = vst [vmem:[#allocation4 + $0x64] sm:$0x3] %v2892_v3  ;;  %v956_v12 = vld [vmem:[#allocation4 + $0x32] sm:$0xff]  ;;  %1459 = vmatpush.msra.mxu0 %v1071_v41  ;;  %1402 = vmatpush.msra.mxu3 %v1005_v42  ;;  %v1059_v5 = vld [vmem:[#allocation5 + $0x288] sm:$0xff]  ;;  %v1110_v42 = vld [vmem:[#allocation5 + $0x420] sm:$0xff] }
 0x28c   :  { %874 = vst [vmem:[#allocation4 + $0x6e] sm:$0x3] %v2898_v4  ;;  %v958_v15 = vld [vmem:[#allocation4 + $0x3c] sm:$0xff]  ;;  %1373 = vmatpush.msra.mxu1 %v1132_v43  ;;  %1431 = vmatpush.msra.mxu2 %v1037_v44  ;;  %v983_v41 = vld [vmem:[#allocation5 + $0x28] sm:$0xff] }
 0x28d   :  { %v951_v8 = vld [vmem:[#allocation4 + $0x1c] sm:$0x3]  ;;  %875 = vst [vmem:[#allocation4 + $0x78] sm:$0x3] %v2901_v6  ;;  %1460 = vmatpush.msra.mxu0 %v1069_v45  ;;  %1403 = vmatpush.msra.mxu3 %v1003_v46  ;;  %v1015_v43 = vld [vmem:[#allocation5 + $0x128] sm:$0xff]  ;;  %v1108_v46 = vld [vmem:[#allocation5 + $0x410] sm:$0xff] }
 0x28e   :  { %v953_v9 = vld [vmem:[#allocation4 + $0x26] sm:$0x3]  ;;  %1188 = vst [vmem:[#allocation1 + $0x22] ss:$4 sm:$0xff] %v951_v8  ;;  %1374 = vmatpush.msra.mxu1 %v1130_v47  ;;  %1432 = vmatpush.msra.mxu2 %v1035_v48  ;;  %v1017_v39 = vld [vmem:[#allocation5 + $0x138] sm:$0xff]  ;;  %v1047_v44 = vld [vmem:[#allocation5 + $0x228] sm:$0xff] }
 0x28f   :  { %1190 = vst [vmem:[#allocation1 + $0x23] ss:$4 sm:$0xff] %v953_v9  ;;  %v955_v25 = vld [vmem:[#allocation4 + $0x30] sm:$0x3]  ;;  %1461 = vmatpush.msra.mxu0 %v1067_v49  ;;  %1404 = vmatpush.msra.mxu3 %v1001_v52  ;;  %v993_v9 = vld [vmem:[#allocation5 + $0x78] sm:$0xff]  ;;  %v979_v49 = vld [vmem:[#allocation5 + $0x8] sm:$0xff] }
 0x290   :  { %876 = vst [vmem:[#allocation4 + $0x82] sm:$0x3] %v2905_v7  ;;  %v957_v30 = vld [vmem:[#allocation4 + $0x3a] sm:$0x3]  ;;  %1375 = vmatpush.msra.mxu1 %v1128_v53  ;;  %1433 = vmatpush.msra.mxu2 %v1033_v54  ;;  %v1106_v52 = vld [vmem:[#allocation5 + $0x400] sm:$0xff]  ;;  %v1011_v53 = vld [vmem:[#allocation5 + $0x108] sm:$0xff] }
 0x291   :  { %v2910_v13 = vld.sshfl [vmem:[#allocation1] sm:$0xff pattern:$0x73625140]  ;;  %v2912_v14 = vld.sshfl [vmem:[#allocation1 + $0x8] sm:$0xff pattern:$0x73625140]  ;;  %1462 = vmatpush.msra.mxu0 %v1065_v55  ;;  %1405 = vmatpush.msra.mxu3 %v999_v56 }
 0x292   :  { %v2914_v16 = vld.sshfl [vmem:[#allocation1 + $0x10] sm:$0xff pattern:$0x73625140]  ;;  %v2916_v17 = vld.sshfl [vmem:[#allocation1 + $0x18] sm:$0xff pattern:$0x73625140]  ;;  %1271 = vmatmul.f32.vlgmr.msrb.gmra.mxu1 %v2910_v13  ;;  %1300 = vmatmul.f32.vlgmr.msrb.gmra.mxu3 %v2912_v14 }
 0x293   :  { %1196 = vst [vmem:[#allocation1] ss:$4 sm:$0xff] %v954_v11  ;;  %1329 = vmatmul.f32.vlgmr.msrb.gmra.mxu2 %v2914_v16  ;;  %1358 = vmatmul.f32.vlgmr.msrb.gmra.mxu0 %v2916_v17  ;;  %v2953_v11 = vrot.slane %v2937_v50, 6  ;;  %v981_v45 = vld [vmem:[#allocation5 + $0x18] sm:$0xff] }
 0x294   :  { %1197 = vst [vmem:[#allocation1 + $0x1] ss:$4 sm:$0xff] %v956_v12  ;;  %1376 = vmatpush.msra.mxu1 %v1126_v57  ;;  %1434 = vmatpush.msra.mxu2 %v1031_v58  ;;  %v1025_v12 = vld [vmem:[#allocation5 + $0x178] sm:$0xff] }
 0x295   :  { %1198 = vst [vmem:[#allocation1 + $0x2] ss:$4 sm:$0xff] %v958_v15  ;;  %1463 = vmatpush.msra.mxu0 %v1063_v59  ;;  %1406 = vmatpush.msra.mxu3 %v997_v60  ;;  %v1057_v15 = vld [vmem:[#allocation5 + $0x278] sm:$0xff]  ;;  %v1135_v60 = vld [vmem:[#allocation5 + $0x4e8] sm:$0xff] }
 0x296   :  { %v2919_v29 = vld.sshfl [vmem:[#allocation1 + $0x20] sm:$0xff pattern:$0x73625140]  ;;  %889 = vst [vmem:[#allocation4 + $0x5c] sm:$0x3] %v2892_v3  ;;  %1377 = vmatpush.msra.mxu1 %v1124_v62  ;;  %1435 = vmatpush.msra.mxu2 %v1029_v63 }
 0x297   :  { %1200 = vst [vmem:[#allocation1 + $0x20] ss:$4 sm:$0xff] %v955_v25  ;;  %1464 = vmatpush.msra.mxu0 %v1061_v0  ;;  %1407 = vmatpush.msra.mxu3 %v995_v2  ;;  %v1013_v47 = vld [vmem:[#allocation5 + $0x118] sm:$0xff]  ;;  %v1131_v2 = vld [vmem:[#allocation5 + $0x4c8] sm:$0xff] }
 0x298   :  { %1201 = vst [vmem:[#allocation1 + $0x21] ss:$4 sm:$0xff] %v957_v30  ;;  %v1021_v30 = vld [vmem:[#allocation5 + $0x158] sm:$0xff] }
 0x299   :  { %890 = vst [vmem:[#allocation4 + $0x66] sm:$0x3] %v2898_v4  ;;  %1465 = vmatpush.msra.mxu0 %v1059_v5  ;;  %1408 = vmatpush.msra.mxu3 %v993_v9  ;;  %v1045_v48 = vld [vmem:[#allocation5 + $0x218] sm:$0xff] }
 0x29a   :  { %891 = vst [vmem:[#allocation4 + $0x70] sm:$0x3] %v2901_v6  ;;  %v1137_v57 = vld [vmem:[#allocation5 + $0x4f8] sm:$0xff] }
 0x29b   :  { %892 = vst [vmem:[#allocation4 + $0x7a] sm:$0x3] %v2905_v7  ;;  %1466 = vmatpush.msra.mxu0 %v1057_v15  ;;  %1409 = vmatpush.msra.mxu3 %v991_v19  ;;  %v1105_v58 = vld [vmem:[#allocation5 + $0x3f8] sm:$0xff]  ;;  %v1095_v19 = vld [vmem:[#allocation5 + $0x3a8] sm:$0xff] }
 0x29c   :  { %904 = vst [vmem:[#allocation4 + $0x54] sm:$0x3] %v2892_v3  ;;  %v1133_v63 = vld [vmem:[#allocation5 + $0x4d8] sm:$0xff] }
 0x29d   :  { %905 = vst [vmem:[#allocation4 + $0x5e] sm:$0x3] %v2898_v4  ;;  %1467 = vmatpush.msra.mxu0 %v1055_v26  ;;  %1410 = vmatpush.msra.mxu3 %v989_v28  ;;  %v1093_v26 = vld [vmem:[#allocation5 + $0x398] sm:$0xff]  ;;  %v975_v28 = vld [vmem:[#allocation4 + $0x94] sm:$0x3] }
 0x29e   :  { %906 = vst [vmem:[#allocation4 + $0x68] sm:$0x3] %v2901_v6 }
 0x29f   :  { %907 = vst [vmem:[#allocation4 + $0x72] sm:$0x3] %v2905_v7  ;;  %1468 = vmatpush.msra.mxu0 %v1053_v32  ;;  %1411 = vmatpush.msra.mxu3 %v987_v33  ;;  %v1091_v33 = vld [vmem:[#allocation5 + $0x388] sm:$0xff] }
 0x2a0   :  { %921 = vst [vmem:[#allocation4 + $0x4c] sm:$0x3] %v2892_v3 }
 0x2a1   :  { %922 = vst [vmem:[#allocation4 + $0x56] sm:$0x3] %v2898_v4  ;;  %1469 = vmatpush.msra.mxu0 %v1051_v36  ;;  %1412 = vmatpush.msra.mxu3 %v985_v37  ;;  %v1119_v36 = vld [vmem:[#allocation5 + $0x468] sm:$0xff] }
 0x2a2   :  { %923 = vst [vmem:[#allocation4 + $0x60] sm:$0x3] %v2901_v6  ;;  %v1087_v37 = vld [vmem:[#allocation5 + $0x368] sm:$0xff] }
 0x2a3   :  { %924 = vst [vmem:[#allocation4 + $0x6a] sm:$0x3] %v2905_v7  ;;  %1470 = vmatpush.msra.mxu0 %v1049_v40  ;;  %1413 = vmatpush.msra.mxu3 %v983_v41 }
 0x2a4   :  { %938 = vst [vmem:[#allocation4 + $0x44] sm:$0x3] %v2892_v3  ;;  %v1122_v3 = vld [vmem:[#allocation5 + $0x480] sm:$0xff] }
 0x2a5   :  { %939 = vst [vmem:[#allocation4 + $0x4e] sm:$0x3] %v2898_v4  ;;  %v1027_v4 = vld [vmem:[#allocation5 + $0x188] sm:$0xff]  ;;  %1378 = vmatpush.msra.mxu1 %v1122_v3  ;;  %1471 = vmatpush.msra.mxu0 %v1047_v44 }
 0x2a6   :  { %940 = vst [vmem:[#allocation4 + $0x58] sm:$0x3] %v2901_v6  ;;  %1436 = vmatpush.msra.mxu2 %v1027_v4  ;;  %1414 = vmatpush.msra.mxu3 %v981_v45  ;;  %v1099_v3 = vld [vmem:[#allocation5 + $0x3c8] sm:$0xff]  ;;  %v1129_v4 = vld [vmem:[#allocation5 + $0x4b8] sm:$0xff] }
 0x2a7   :  { %941 = vst [vmem:[#allocation4 + $0x62] sm:$0x3] %v2905_v7  ;;  %v960_v1 = vld [vmem:[#allocation4 + $0x46] sm:$0xff]  ;;  %v2949_v7 = vrot.slane %v2937_v50, 4  ;;  %1379 = vmatpush.msra.mxu1 %v1120_v10  ;;  %1472 = vmatpush.msra.mxu0 %v1045_v48 }
 0x2a8   :  { %1199 = vst [vmem:[#allocation1 + $0x3] ss:$4 sm:$0xff] %v960_v1  ;;  %1437 = vmatpush.msra.mxu2 %v1025_v12  ;;  %v962_v54 = vld [vmem:[#allocation4 + $0x50] sm:$0xff]  ;;  %1415 = vmatpush.msra.mxu3 %v979_v49  ;;  %v1101_v1 = vld [vmem:[#allocation5 + $0x3d8] sm:$0xff]  ;;  %v1115_v44 = vld [vmem:[#allocation5 + $0x448] sm:$0xff] }
 0x2a9   :  { %877 = vst [vmem:[#allocation4 + $0x8c] sm:$0x3] %v2937_v50  ;;  %1380 = vmatpush.msra.mxu1 %v1118_v21  ;;  %v964_v55 = vld [vmem:[#allocation4 + $0x5a] sm:$0xff]  ;;  %v1083_v45 = vld [vmem:[#allocation5 + $0x348] sm:$0xff] }
 0x2aa   :  { %878 = vst [vmem:[#allocation4 + $0x96] sm:$0x3] %v2943_v61  ;;  %1438 = vmatpush.msra.mxu2 %v1023_v22  ;;  %v966_v59 = vld [vmem:[#allocation4 + $0x64] sm:$0xff]  ;;  %1516 = vmatpush.msrb.mxu3 %v1137_v57  ;;  %v1125_v21 = vld [vmem:[#allocation5 + $0x498] sm:$0xff] }
 0x2ab   :  { %v959_v6 = vld [vmem:[#allocation4 + $0x44] sm:$0x3]  ;;  %893 = vst [vmem:[#allocation4 + $0x84] sm:$0x3] %v2937_v50  ;;  %1381 = vmatpush.msra.mxu1 %v1116_v51  ;;  %v1111_v48 = vld [vmem:[#allocation5 + $0x428] sm:$0xff] }
 0x2ac   :  { %v961_v8 = vld [vmem:[#allocation4 + $0x4e] sm:$0x3]  ;;  %1202 = vst [vmem:[#allocation1 + $0x22] ss:$4 sm:$0xff] %v959_v6  ;;  %1439 = vmatpush.msra.mxu2 %v1021_v30  ;;  %1517 = vmatpush.msrb.mxu3 %v1135_v60  ;;  %v1097_v6 = vld [vmem:[#allocation5 + $0x3b8] sm:$0xff] }
 0x2ad   :  { %1203 = vst [vmem:[#allocation1 + $0x23] ss:$4 sm:$0xff] %v961_v8  ;;  %v963_v23 = vld [vmem:[#allocation4 + $0x58] sm:$0x3]  ;;  %1382 = vmatpush.msra.mxu1 %v1114_v34  ;;  %v977_v30 = vld [vmem:[#allocation4 + $0x9e] sm:$0x3] }
 0x2ae   :  { %894 = vst [vmem:[#allocation4 + $0x8e] sm:$0x3] %v2943_v61  ;;  %v965_v27 = vld [vmem:[#allocation4 + $0x62] sm:$0x3]  ;;  %1440 = vmatpush.msra.mxu2 %v1019_v35  ;;  %1518 = vmatpush.msrb.mxu3 %v1133_v63  ;;  %v1121_v34 = vld [vmem:[#allocation5 + $0x478] sm:$0xff]  ;;  %v1079_v49 = vld [vmem:[#allocation5 + $0x328] sm:$0xff] }
 0x2af   :  { %895 = vst [vmem:[#allocation4 + $0x98] sm:$0x3] %v2949_v7  ;;  %v2957_v18 = vld.sshfl [vmem:[#allocation1] sm:$0xff pattern:$0x73625140]  ;;  %1383 = vmatpush.msra.mxu1 %v1112_v38 }
 0x2b0   :  { %908 = vst [vmem:[#allocation4 + $0x7c] sm:$0x3] %v2937_v50  ;;  %1274 = vmatmul.f32.gmra.mxu1 %v2957_v18  ;;  %v2961_v20 = vld.sshfl [vmem:[#allocation1 + $0x8] sm:$0xff pattern:$0x73625140]  ;;  %1441 = vmatpush.msra.mxu2 %v1017_v39  ;;  %v1089_v35 = vld [vmem:[#allocation5 + $0x378] sm:$0xff] }
 0x2b1   :  { %909 = vst [vmem:[#allocation4 + $0x86] sm:$0x3] %v2943_v61  ;;  %1303 = vmatmul.f32.gmra.mxu3 %v2961_v20  ;;  %v2965_v24 = vld.sshfl [vmem:[#allocation1 + $0x10] sm:$0xff pattern:$0x73625140]  ;;  %1384 = vmatpush.msra.mxu1 %v1110_v42  ;;  %v1117_v38 = vld [vmem:[#allocation5 + $0x458] sm:$0xff] }
 0x2b2   :  { %910 = vst [vmem:[#allocation4 + $0x90] sm:$0x3] %v2949_v7  ;;  %1332 = vmatmul.f32.gmra.mxu2 %v2965_v24  ;;  %v2969_v25 = vld.sshfl [vmem:[#allocation1 + $0x18] sm:$0xff pattern:$0x73625140]  ;;  %1519 = vmatpush.msrb.mxu3 %v1131_v2 }
 0x2b3   :  { %911 = vst [vmem:[#allocation4 + $0x9a] sm:$0x3] %v2953_v11  ;;  %1361 = vmatmul.f32.gmra.mxu0 %v2969_v25  ;;  %1442 = vmatpush.msra.mxu2 %v1015_v43  ;;  %v1085_v43 = vld [vmem:[#allocation5 + $0x358] sm:$0xff] }
 0x2b4   :  { %v2973_v31 = vld.sshfl [vmem:[#allocation1 + $0x20] sm:$0xff pattern:$0x73625140]  ;;  %925 = vst [vmem:[#allocation4 + $0x74] sm:$0x3] %v2937_v50  ;;  %1385 = vmatpush.msra.mxu1 %v1108_v46  ;;  %1520 = vmatpush.msrb.mxu3 %v1129_v4 }
 0x2b5   :  { %1213 = vst [vmem:[#allocation1 + $0x20] ss:$4 sm:$0xff] %v963_v23  ;;  %1443 = vmatpush.msra.mxu2 %v1013_v47  ;;  %v1113_v46 = vld [vmem:[#allocation5 + $0x438] sm:$0xff] }
 0x2b6   :  { %1214 = vst [vmem:[#allocation1 + $0x21] ss:$4 sm:$0xff] %v965_v27  ;;  %1386 = vmatpush.msra.mxu1 %v1106_v52  ;;  %v1123_v27 = vld [vmem:[#allocation5 + $0x488] sm:$0xff]  ;;  %v1081_v47 = vld [vmem:[#allocation5 + $0x338] sm:$0xff] }
 0x2b7   :  { %926 = vst [vmem:[#allocation4 + $0x7e] sm:$0x3] %v2943_v61  ;;  %1444 = vmatpush.msra.mxu2 %v1011_v53  ;;  %v1109_v52 = vld [vmem:[#allocation5 + $0x418] sm:$0xff] }
 0x2b8   :  { %927 = vst [vmem:[#allocation4 + $0x88] sm:$0x3] %v2949_v7  ;;  %1487 = vmatpush.msrb.mxu1 %v1105_v58  ;;  %v1077_v53 = vld [vmem:[#allocation5 + $0x318] sm:$0xff] }
 0x2b9   :  { %928 = vst [vmem:[#allocation4 + $0x92] sm:$0x3] %v2953_v11 }
 0x2ba   :  { %942 = vst [vmem:[#allocation4 + $0x6c] sm:$0x3] %v2937_v50  ;;  %v1043_v50 = vld [vmem:[#allocation5 + $0x208] sm:$0xff]  ;;  %v976_v15 = vld [vmem:[#allocation4 + $0x96] sm:$0xff] }
 0x2bb   :  { %943 = vst [vmem:[#allocation4 + $0x76] sm:$0x3] %v2943_v61  ;;  %v968_v56 = vld [vmem:[#allocation4 + $0x6e] sm:$0xff]  ;;  %1473 = vmatpush.msra.mxu0 %v1043_v50 }
 0x2bc   :  { %944 = vst [vmem:[#allocation4 + $0x80] sm:$0x3] %v2949_v7  ;;  %v1103_v61 = vld [vmem:[#allocation5 + $0x3e8] sm:$0xff] }
 0x2bd   :  { %945 = vst [vmem:[#allocation4 + $0x8a] sm:$0x3] %v2953_v11  ;;  %1488 = vmatpush.msrb.mxu1 %v1103_v61  ;;  %v1127_v7 = vld [vmem:[#allocation5 + $0x4a8] sm:$0xff] }
 0x2be   :  { %1209 = vst [vmem:[#allocation1] ss:$4 sm:$0xff] %v962_v54  ;;  %v970_v5 = vld [vmem:[#allocation4 + $0x78] sm:$0xff]  ;;  %1521 = vmatpush.msrb.mxu3 %v1127_v7  ;;  %v1107_v54 = vld [vmem:[#allocation5 + $0x408] sm:$0xff] }
 0x2bf   :  { %1210 = vst [vmem:[#allocation1 + $0x1] ss:$4 sm:$0xff] %v964_v55  ;;  %1489 = vmatpush.msrb.mxu1 %v1101_v1  ;;  %v972_v12 = vld [vmem:[#allocation4 + $0x82] sm:$0xff] }
 0x2c0   :  { %1211 = vst [vmem:[#allocation1 + $0x2] ss:$4 sm:$0xff] %v966_v59  ;;  %v974_v22 = vld [vmem:[#allocation4 + $0x8c] sm:$0xff]  ;;  %1522 = vmatpush.msrb.mxu3 %v1125_v21 }
 0x2c1   :  { %v967_v62 = vld [vmem:[#allocation4 + $0x6c] sm:$0x3]  ;;  %1212 = vst [vmem:[#allocation1 + $0x3] ss:$4 sm:$0xff] %v968_v56  ;;  %1490 = vmatpush.msrb.mxu1 %v1099_v3 }
 0x2c2   :  { %v969_v0 = vld [vmem:[#allocation4 + $0x76] sm:$0x3]  ;;  %1215 = vst [vmem:[#allocation1 + $0x22] ss:$4 sm:$0xff] %v967_v62  ;;  %1523 = vmatpush.msrb.mxu3 %v1123_v27  ;;  %v1075_v55 = vld [vmem:[#allocation5 + $0x308] sm:$0xff] }
 0x2c3   :  { %1216 = vst [vmem:[#allocation1 + $0x23] ss:$4 sm:$0xff] %v969_v0  ;;  %1491 = vmatpush.msrb.mxu1 %v1097_v6  ;;  %v971_v51 = vld [vmem:[#allocation4 + $0x80] sm:$0x3] }
 0x2c4   :  { %v973_v32 = vld [vmem:[#allocation4 + $0x8a] sm:$0x3]  ;;  %1524 = vmatpush.msrb.mxu3 %v1121_v34 }
 0x2c5   :  { %1492 = vmatpush.msrb.mxu1 %v1095_v19 }
 0x2c6   :  { %1525 = vmatpush.msrb.mxu3 %v1119_v36 }
 0x2c7   :  { %1493 = vmatpush.msrb.mxu1 %v1093_v26 }
 0x2c8   :  { %v2983_v8 = vld.sshfl [vmem:[#allocation1] sm:$0xff pattern:$0x73625140]  ;;  %v2985_v9 = vld.sshfl [vmem:[#allocation1 + $0x8] sm:$0xff pattern:$0x73625140]  ;;  %1526 = vmatpush.msrb.mxu3 %v1117_v38 }
 0x2c9   :  { %1277 = vmatmul.f32.gmra.mxu1 %v2983_v8  ;;  %1306 = vmatmul.f32.gmra.mxu3 %v2985_v9  ;;  %v2989_v10 = vld.sshfl [vmem:[#allocation1 + $0x10] sm:$0xff pattern:$0x73625140]  ;;  %v2991_v11 = vld.sshfl [vmem:[#allocation1 + $0x18] sm:$0xff pattern:$0x73625140] }
 0x2ca   :  { %1335 = vmatmul.f32.gmra.mxu2 %v2989_v10  ;;  %1364 = vmatmul.f32.gmra.mxu0 %v2991_v11  ;;  %1222 = vst [vmem:[#allocation1] ss:$4 sm:$0xff] %v970_v5  ;;  %v2995_v23 = vld.sshfl [vmem:[#allocation1 + $0x20] sm:$0xff pattern:$0x73625140] }
 0x2cb   :  { %1223 = vst [vmem:[#allocation1 + $0x1] ss:$4 sm:$0xff] %v972_v12  ;;  %1494 = vmatpush.msrb.mxu1 %v1091_v33  ;;  %1527 = vmatpush.msrb.mxu3 %v1115_v44 }
 0x2cc   :  { %1224 = vst [vmem:[#allocation1 + $0x2] ss:$4 sm:$0xff] %v974_v22 }
 0x2cd   :  { %1225 = vst [vmem:[#allocation1 + $0x3] ss:$4 sm:$0xff] %v976_v15  ;;  %1495 = vmatpush.msrb.mxu1 %v1089_v35  ;;  %1528 = vmatpush.msrb.mxu3 %v1113_v46 }
 0x2ce   :  { %1226 = vst [vmem:[#allocation1 + $0x20] ss:$4 sm:$0xff] %v971_v51 }
 0x2cf   :  { %1227 = vst [vmem:[#allocation1 + $0x21] ss:$4 sm:$0xff] %v973_v32  ;;  %1496 = vmatpush.msrb.mxu1 %v1087_v37  ;;  %1529 = vmatpush.msrb.mxu3 %v1111_v48 }
 0x2d0   :  { %1228 = vst [vmem:[#allocation1 + $0x22] ss:$4 sm:$0xff] %v975_v28 }
 0x2d1   :  { %1229 = vst [vmem:[#allocation1 + $0x23] ss:$4 sm:$0xff] %v977_v30  ;;  %1497 = vmatpush.msrb.mxu1 %v1085_v43  ;;  %1530 = vmatpush.msrb.mxu3 %v1109_v52 }
 0x2d3   :  { %1498 = vmatpush.msrb.mxu1 %v1083_v45  ;;  %1531 = vmatpush.msrb.mxu3 %v1107_v54 }
 0x2d4   :  { %v1230_v39 = vld.sshfl [vmem:[#allocation1] sm:$0xff pattern:$0x73625140]  ;;  %v1231_v40 = vld.sshfl [vmem:[#allocation1 + $0x8] sm:$0xff pattern:$0x73625140] }
 0x2d5   :  { %1280 = vmatmul.f32.gmra.mxu1 %v1230_v39  ;;  %1309 = vmatmul.f32.gmra.mxu3 %v1231_v40  ;;  %v1232_v41 = vld.sshfl [vmem:[#allocation1 + $0x10] sm:$0xff pattern:$0x73625140]  ;;  %v1233_v42 = vld.sshfl [vmem:[#allocation1 + $0x18] sm:$0xff pattern:$0x73625140] }
 0x2d6   :  { %1338 = vmatmul.f32.gmra.mxu2 %v1232_v41  ;;  %1367 = vmatmul.f32.gmra.mxu0 %v1233_v42 }
 0x2d7   :  { %1499 = vmatpush.msrb.mxu1 %v1081_v47 }
 0x2d9   :  { %1500 = vmatpush.msrb.mxu1 %v1079_v49 }
 0x2db   :  { %1501 = vmatpush.msrb.mxu1 %v1077_v53 }
 0x2dd   :  { %1387 = vmatmul.f32.vlgmr.msra.gmra.mxu1 %v2919_v29  ;;  %1416 = vmatmul.f32.vlgmr.msra.gmra.mxu3 %v2910_v13  ;;  %v1234_v13 = vld.sshfl [vmem:[#allocation1 + $0x20] sm:$0xff pattern:$0x73625140] }
 0x2de   :  { %1445 = vmatmul.f32.vlgmr.msra.gmra.mxu2 %v2912_v14  ;;  %1474 = vmatmul.f32.vlgmr.msra.gmra.mxu0 %v2914_v16 }
 0x2df   :  { %1502 = vmatpush.msrb.mxu1 %v1075_v55 }
 0x2e5   :  { %1390 = vmatmul.f32.gmra.mxu1 %v2973_v31  ;;  %1419 = vmatmul.f32.gmra.mxu3 %v2957_v18  ;;  %v1138_v18 = vld [vmem:[%s3474_s6] sm:$0x3]  ;;  %s2264_s6 = smov 2  }
 0x2e6   :  { %1448 = vmatmul.f32.gmra.mxu2 %v2961_v20  ;;  %1477 = vmatmul.f32.gmra.mxu0 %v2965_v24  ;;  %v3032_v12 = vperm.slane %v1138_v18, 1 }
 0x2ed   :  { %1393 = vmatmul.f32.gmra.mxu1 %v2995_v23  ;;  %1422 = vmatmul.f32.gmra.mxu3 %v2983_v8 }
 0x2ee   :  { %1451 = vmatmul.f32.gmra.mxu2 %v2985_v9  ;;  %1480 = vmatmul.f32.gmra.mxu0 %v2989_v10 }
 0x2f5   :  { %1396 = vmatmul.f32.gmra.mxu1 %v1234_v13  ;;  %1425 = vmatmul.f32.gmra.mxu3 %v1230_v39 }
 0x2f6   :  { %1454 = vmatmul.f32.gmra.mxu2 %v1231_v40  ;;  %1483 = vmatmul.f32.gmra.mxu0 %v1232_v41 }
 0x2fd   :  { %1503 = vmatmul.f32.vlgmr.msrb.gmra.mxu1 %v2916_v17  ;;  %1532 = vmatmul.f32.vlgmr.msrb.gmra.mxu3 %v2919_v29  ;;  %v1140_v17 = vperm.slane %v1138_v18, 0 }
 0x305   :  { %1506 = vmatmul.f32.gmra.mxu1 %v2969_v25  ;;  %1535 = vmatmul.f32.gmra.mxu3 %v2973_v31 }
 0x30d   :  { %1509 = vmatmul.f32.gmra.mxu1 %v2991_v11  ;;  %1538 = vmatmul.f32.gmra.mxu3 %v2995_v23 }
 0x30f   :  { %v1272_v14 = vpop.f32.mrf.mxu1 }
 0x310   :  { %v1359_v60 = vpop.f32.mrf.mxu0  ;;  %v1273_v19 = vadd.f32 %v1272_v14, %v1140_v17 }
 0x315   :  { %1512 = vmatmul.f32.gmra.mxu1 %v1233_v42  ;;  %1541 = vmatmul.f32.gmra.mxu3 %v1234_v13  ;;  %v1301_v16 = vpop.f32.mrf.mxu3 }
 0x316   :  { %v1330_v58 = vpop.f32.mrf.mxu2  ;;  %v1302_v21 = vadd.f32 %v1301_v16, %v1273_v19  ;;  %v1785_v19 = vld [vmem:[%s3475_s7 + $0x68] sm:$0xff] }
 0x318   :  { %v1331_v27 = vadd.f32 %v1330_v58, %v1302_v21  ;;  %v1801_v21 = vld [vmem:[%s3475_s7 + $0xe8] sm:$0xff] }
 0x31a   :  { %v1360_v32 = vadd.f32 %v1359_v60, %v1331_v27  ;;  %v1787_v60 = vld [vmem:[%s3475_s7 + $0x78] sm:$0xff] }
 0x31b   :  { %1804 = vmatpush.msrb.mxu2 %v1787_v60 }
 0x32d   :  { %v1275_v20 = vpop.f32.mrf.mxu1 }
 0x32e   :  { %v1276_v24 = vadd.f32 %v1275_v20, %v1140_v17 }
 0x330   :  { %v1362_v2 = vpop.f32.mrf.mxu0 }
 0x334   :  { %v1304_v29 = vpop.f32.mrf.mxu3 }
 0x335   :  { %v1305_v50 = vadd.f32 %v1304_v29, %v1276_v24  ;;  %v1333_v62 = vpop.f32.mrf.mxu2 }
 0x337   :  { %v1334_v52 = vadd.f32 %v1333_v62, %v1305_v50  ;;  %v1786_v62 = vld [vmem:[%s3475_s7 + $0x70] sm:$0xff] }
 0x338   :  { %1805 = vmatpush.msrb.mxu2 %v1786_v62 }
 0x339   :  { %v1363_v16 = vadd.f32 %v1362_v2, %v1334_v52  ;;  %v1780_v52 = vld [vmem:[%s3475_s7 + $0x40] sm:$0xff] }
 0x33a   :  { %1806 = vmatpush.msrb.mxu2 %v1785_v19  ;;  %v1776_v19 = vld [vmem:[%s3475_s7 + $0x20] sm:$0xff] }
 0x346   :  { %v1278_v25 = vpop.f32.mrf.mxu1 }
 0x347   :  { %v1279_v56 = vadd.f32 %v1278_v25, %v1140_v17  ;;  %v3024_v6 = vpop.f32.mrf.mxu0 }
 0x34c   :  { %v1307_v31 = vpop.f32.mrf.mxu3 }
 0x34d   :  { %v3018_v57 = vadd.f32 %v1307_v31, %v1279_v56  ;;  %v3022_v4 = vpop.f32.mrf.mxu2 }
 0x352   :  { %v1281_v59 = vpop.f32.mrf.mxu1 }
 0x353   :  { %v1282_v61 = vadd.f32 %v1281_v59, %v1140_v17  ;;  %v3030_v10 = vpop.f32.mrf.mxu0 }
 0x358   :  { %v1310_v63 = vpop.f32.mrf.mxu3 }
 0x359   :  { %v3020_v0 = vadd.f32 %v1310_v63, %v1282_v61  ;;  %v3028_v9 = vpop.f32.mrf.mxu2  ;;  %v1803_v61 = vld [vmem:[%s3475_s7 + $0xf8] sm:$0xff]  ;;  %v1802_v63 = vld [vmem:[%s3475_s7 + $0xf0] sm:$0xff] }
 0x35a   :  { %v1388_v1 = vpop.f32.mrf.mxu1  ;;  %1824 = vmatpush.msra.mxu1 %v1803_v61  ;;  %v1777_v61 = vld [vmem:[%s3475_s7 + $0x28] sm:$0xff] }
 0x35b   :  { %v1475_v51 = vpop.f32.mrf.mxu0  ;;  %v1389_v35 = vadd.f32 %v1388_v1, %v1360_v32 }
 0x35c   :  { %1825 = vmatpush.msra.mxu1 %v1802_v63 }
 0x35d   :  { %v1553_v41 = vmul.f32 0.01, %v1389_v35  ;;  %vm1545_vm12 = vcmp.gt.f32.partialorder %v1389_v35, 0.0 }
 0x35e   :  { %1826 = vmatpush.msra.mxu1 %v1801_v21 }
 0x35f   :  { %v1561_v48 = vsel %vm1545_vm12, %v1389_v35, %v1553_v41 }
 0x360   :  { %v1417_v3 = vpop.f32.mrf.mxu3 }
 0x361   :  { %v1418_v22 = vadd.f32 %v1417_v3, %v3032_v12  ;;  %v1446_v23 = vpop.f32.mrf.mxu2 }
 0x362   :  { %v1391_v5 = vpop.f32.mrf.mxu1 }
 0x363   :  { %v1447_v28 = vadd.f32 %v1446_v23, %v1418_v22  ;;  %v1478_v43 = vpop.f32.mrf.mxu0  ;;  %v1392_v24 = vadd.f32 %v1391_v5, %v1363_v16 }
 0x365   :  { %v1476_v34 = vadd.f32 %v1475_v51, %v1447_v28  ;;  %vm1547_vm2 = vcmp.gt.f32.partialorder %v1392_v24, 0.0  ;;  %v1555_v1 = vmul.f32 0.01, %v1392_v24  ;;  %v1784_v28 = vld [vmem:[%s3475_s7 + $0x60] sm:$0xff] }
 0x366   :  { %v1800_v51 = vld [vmem:[%s3475_s7 + $0xe0] sm:$0xff]  ;;  %1807 = vmatpush.msrb.mxu2 %v1784_v28  ;;  %v1791_v28 = vld [vmem:[%s3475_s7 + $0x98] sm:$0xff] }
 0x367   :  { %1827 = vmatpush.msra.mxu1 %v1800_v51 }
 0x368   :  { %v1420_v7 = vpop.f32.mrf.mxu3 }
 0x369   :  { %v1421_v33 = vadd.f32 %v1420_v7, %v3032_v12  ;;  %v1449_v37 = vpop.f32.mrf.mxu2 }
 0x36a   :  { %v3026_v8 = vpop.f32.mrf.mxu1 }
 0x36b   :  { %v1450_v39 = vadd.f32 %v1449_v37, %v1421_v33  ;;  %v1481_v5 = vpop.f32.mrf.mxu0 }
 0x36d   :  { %v1479_v46 = vadd.f32 %v1478_v43, %v1450_v39  ;;  %v1783_v39 = vld [vmem:[%s3475_s7 + $0x58] sm:$0xff]  ;;  %v1781_v43 = vld [vmem:[%s3475_s7 + $0x48] sm:$0xff] }
 0x36e   :  { %1808 = vmatpush.msrb.mxu2 %v1783_v39 }
 0x370   :  { %v1423_v11 = vpop.f32.mrf.mxu3 }
 0x371   :  { %v1424_v20 = vadd.f32 %v1423_v11, %v3032_v12  ;;  %v1452_v50 = vpop.f32.mrf.mxu2 }
 0x372   :  { %v3034_v15 = vpop.f32.mrf.mxu1 }
 0x373   :  { %v1453_v58 = vadd.f32 %v1452_v50, %v1424_v20  ;;  %v1795_v50 = vld [vmem:[%s3475_s7 + $0xb8] sm:$0xff]  ;;  %v1484_v62 = vpop.f32.mrf.mxu0 }
 0x375   :  { %v1482_v23 = vadd.f32 %v1481_v5, %v1453_v58  ;;  %v1778_v58 = vld [vmem:[%s3475_s7 + $0x30] sm:$0xff]  ;;  %v1793_v5 = vld [vmem:[%s3475_s7 + $0xa8] sm:$0xff] }
 0x378   :  { %v3037_v26 = vpop.f32.mrf.mxu3 }
 0x37a   :  { %v1504_v30 = vpop.f32.mrf.mxu1 }
 0x37b   :  { %v1505_v36 = vadd.f32 %v1504_v30, %v1476_v34  ;;  %v1563_v30 = vsel %vm1547_vm2, %v1392_v24, %v1555_v1  ;;  %v1779_v24 = vld [vmem:[%s3475_s7 + $0x38] sm:$0xff] }
 0x380   :  { %v1533_v38 = vpop.f32.mrf.mxu3 }
 0x381   :  { %v1534_v40 = vadd.f32 %v1533_v38, %v1505_v36  ;;  %v1337_v36 = vadd.f32 %v3022_v4, %v3018_v57  ;;  %v1782_v57 = vld [vmem:[%s3475_s7 + $0x50] sm:$0xff] }
 0x382   :  { %v1507_v44 = vpop.f32.mrf.mxu1  ;;  %v1798_v4 = vld [vmem:[%s3475_s7 + $0xd0] sm:$0xff]  ;;  %1809 = vmatpush.msrb.mxu2 %v1782_v57  ;;  %v1340_v57 = vadd.f32 %v3028_v9, %v3020_v0 }
 0x383   :  { %vm1546_vm11 = vcmp.gt.f32.partialorder %v1534_v40, 0.0  ;;  %v1554_v42 = vmul.f32 0.01, %v1534_v40  ;;  %v1508_v49 = vadd.f32 %v1507_v44, %v1479_v46  ;;  %v1797_v44 = vld [vmem:[%s3475_s7 + $0xc8] sm:$0xff]  ;;  %v1366_v46 = vadd.f32 %v3024_v6, %v1337_v36 }
 0x384   :  { %1810 = vmatpush.msrb.mxu2 %v1781_v43 }
 0x385   :  { %v1562_v45 = vsel %vm1546_vm11, %v1534_v40, %v1554_v42  ;;  %v1799_v40 = vld [vmem:[%s3475_s7 + $0xd8] sm:$0xff]  ;;  %v1395_v6 = vadd.f32 %v3026_v8, %v1366_v46  ;;  %v1790_v46 = vld [vmem:[%s3475_s7 + $0x90] sm:$0xff] }
 0x386   :  { %v1577_v47 = vrot.slane %v1562_v45, 6  ;;  %1828 = vmatpush.msra.mxu1 %v1799_v40  ;;  %1811 = vmatpush.msrb.mxu2 %v1780_v52 }
 0x387   :  { %v1557_v60 = vmul.f32 0.01, %v1395_v6  ;;  %vm1549_vm4 = vcmp.gt.f32.partialorder %v1395_v6, 0.0 }
 0x388   :  { %v3041_v53 = vsel %vm1581_vm13, %v1561_v48, %v1577_v47  ;;  %v3044_v54 = vsel %vm1583_vm14, %v1561_v48, %v1577_v47  ;;  %v1536_v55 = vpop.f32.mrf.mxu3  ;;  %v3051_v18 = vsel %vm1586_vm15, %v1561_v48, %v1577_v47  ;;  %v3056_v25 = vsel %vm1589_vm0, %v1577_v47, %v1561_v48  ;;  %1829 = vmatpush.msra.mxu1 %v1798_v4 }
 0x389   :  { %v1585_v13 = vrot.slane %v3044_v54, 2  ;;  %1629 = vst [vmem:[#allocation1] ss:$4 sm:$0xff] %v3041_v53  ;;  %v1537_v14 = vadd.f32 %v1536_v55, %v1508_v49  ;;  %v1588_v29 = vrot.slane %v3051_v18, 4  ;;  %v1591_v2 = vrot.slane %v3056_v25, 6  ;;  %v1796_v55 = vld [vmem:[%s3475_s7 + $0xc0] sm:$0xff]  ;;  %1812 = vmatpush.msrb.mxu2 %v1779_v24 }
 0x38a   :  { %v1510_v11 = vpop.f32.mrf.mxu1  ;;  %v1427_v47 = vadd.f32 %v3037_v26, %v3032_v12  ;;  %1830 = vmatpush.msra.mxu1 %v1797_v44  ;;  %v1455_v26 = vpop.f32.mrf.mxu2  ;;  %v3197_v36 = vsel %vm1549_vm4, %v1395_v6, %v1557_v60  ;;  %v1369_v6 = vadd.f32 %v3030_v10, %v1340_v57  ;;  %v1788_v10 = vld [vmem:[%s3475_s7 + $0x80] sm:$0xff] }
 0x38b   :  { %1633 = vst [vmem:[#allocation1 + $0x20] ss:$4 sm:$0xff] %v1585_v13  ;;  %v1556_v17 = vmul.f32 0.01, %v1537_v14  ;;  %vm1548_vm1 = vcmp.gt.f32.partialorder %v1537_v14, 0.0  ;;  %v1511_v32 = vadd.f32 %v1510_v11, %v1482_v23  ;;  %1813 = vmatpush.msrb.mxu2 %v1778_v58  ;;  %v1792_v23 = vld [vmem:[%s3475_s7 + $0xa0] sm:$0xff] }
 0x38c   :  { %v1456_v20 = vadd.f32 %v1455_v26, %v1427_v47  ;;  %1831 = vmatpush.msra.mxu1 %v1796_v55  ;;  %v1398_v58 = vadd.f32 %v3034_v15, %v1369_v6 }
 0x38d   :  { %v1564_v59 = vsel %vm1548_vm1, %v1537_v14, %v1556_v17  ;;  %1814 = vmatpush.msrb.mxu2 %v1777_v61 }
 0x38e   :  { %v1578_v7 = vrot.slane %v1564_v59, 6  ;;  %v1794_v59 = vld [vmem:[%s3475_s7 + $0xb0] sm:$0xff]  ;;  %1832 = vmatpush.msra.mxu1 %v1795_v50  ;;  %v1485_v11 = vadd.f32 %v1484_v62, %v1456_v20  ;;  %v1772_v20 = vld [vmem:[%s3475_s7] sm:$0xff]  ;;  %vm1551_vm6 = vcmp.gt.f32.partialorder %v1398_v58, 0.0 }
 0x38f   :  { %1815 = vmatpush.msrb.mxu2 %v1776_v19 }
 0x390   :  { %v3058_v56 = vld.sshfl [vmem:[#allocation1 + $0x8] sm:$0xff pattern:$0x73625140]  ;;  %v3060_v31 = vld.sshfl [vmem:[#allocation1] sm:$0xff pattern:$0x73625140]  ;;  %v1539_v27 = vpop.f32.mrf.mxu3  ;;  %v3097_v33 = vsel %vm1581_vm13, %v1563_v30, %v1578_v7  ;;  %v3106_v37 = vsel %vm1583_vm14, %v1563_v30, %v1578_v7  ;;  %v3123_v42 = vsel %vm1586_vm15, %v1563_v30, %v1578_v7  ;;  %v3158_v8 = vsel %vm1589_vm0, %v1578_v7, %v1563_v30  ;;  %1833 = vmatpush.msra.mxu1 %v1794_v59 }
 0x391   :  { %1636 = vst [vmem:[#allocation1] ss:$4 sm:$0xff] %v1588_v29  ;;  %v1540_v38 = vadd.f32 %v1539_v27, %v1511_v32  ;;  %v1594_v41 = vrot.slane %v3106_v37, 2  ;;  %v1596_v12 = vrot.slane %v3123_v42, 4  ;;  %v1598_v7 = vrot.slane %v3158_v8, 6  ;;  %v1775_v27 = vld [vmem:[%s3475_s7 + $0x18] sm:$0xff] }
 0x392   :  { %v3077_v3 = vld.sshfl [vmem:[#allocation1 + $0x20] sm:$0xff pattern:$0x73625140]  ;;  %v3085_v22 = vld.sshfl [vmem:[#allocation1 + $0x28] sm:$0xff pattern:$0x73625140]  ;;  %v1513_v1 = vpop.f32.mrf.mxu1  ;;  %1834 = vmatpush.msra.mxu1 %v1793_v5  ;;  %1816 = vmatpush.msrb.mxu2 %v1775_v27 }
 0x393   :  { %1639 = vst [vmem:[#allocation1 + $0x20] ss:$4 sm:$0xff] %v1591_v2  ;;  %v1558_v48 = vmul.f32 0.01, %v1540_v38  ;;  %vm1550_vm3 = vcmp.gt.f32.partialorder %v1540_v38, 0.0  ;;  %v1710_v51 = vsel %vm1581_vm13, %v3060_v31, 0.0 }
 0x394   :  { %v1711_v30 = vsel %vm1581_vm13, %v3077_v3, 0.0  ;;  %v1742_v32 = vsel %vm1581_vm13, %v3085_v22, 0.0  ;;  %1835 = vmatpush.msra.mxu1 %v1792_v23  ;;  %v1774_v22 = vld [vmem:[%s3475_s7 + $0x10] sm:$0xff]  ;;  %v1741_v0 = vsel %vm1581_vm13, %v3058_v56, 0.0 }
 0x395   :  { %v1566_v17 = vsel %vm1550_vm3, %v1540_v38, %v1558_v48  ;;  %v1514_v38 = vadd.f32 %v1513_v1, %v1485_v11  ;;  %v1712_v47 = vadd.f32 %v1711_v30, %v1710_v51  ;;  %v1743_v48 = vadd.f32 %v1742_v32, %v1741_v0  ;;  %1817 = vmatpush.msrb.mxu2 %v1774_v22 }
 0x396   :  { %v3172_v63 = vrot.slane %v1566_v17, 6  ;;  %1836 = vmatpush.msra.mxu1 %v1791_v28 }
 0x398   :  { %v3099_v34 = vld.sshfl [vmem:[#allocation1] sm:$0xff pattern:$0x73625140]  ;;  %v3101_v35 = vld.sshfl [vmem:[#allocation1 + $0x8] sm:$0xff pattern:$0x73625140]  ;;  %v1542_v21 = vpop.f32.mrf.mxu3  ;;  %v3204_v31 = vsel %vm1581_vm13, %v3197_v36, %v3172_v63  ;;  %v3227_v56 = vsel %vm1586_vm15, %v3197_v36, %v3172_v63  ;;  %1837 = vmatpush.msra.mxu1 %v1790_v46  ;;  %v3243_v50 = vsel %vm1583_vm14, %v3197_v36, %v3172_v63  ;;  %v3266_v32 = vsel %vm1589_vm0, %v3172_v63, %v3197_v36 }
 0x399   :  { %1642 = vst [vmem:[#allocation1] ss:$4 sm:$0xff] %v3097_v33  ;;  %v1543_v43 = vadd.f32 %v1542_v21, %v1514_v38  ;;  %v1713_v44 = vsel %vm1581_vm13, %v3099_v34, 0.0  ;;  %v1744_v9 = vsel %vm1581_vm13, %v3101_v35, 0.0  ;;  %v1773_v34 = vld [vmem:[%s3475_s7 + $0x8] sm:$0xff]  ;;  %v1603_v59 = vrot.slane %v3227_v56, 4 }
 0x39a   :  { %v3131_v45 = vld.sshfl [vmem:[#allocation1 + $0x20] sm:$0xff pattern:$0x73625140]  ;;  %v3136_v49 = vld.sshfl [vmem:[#allocation1 + $0x28] sm:$0xff pattern:$0x73625140]  ;;  %v1714_v52 = vadd.f32 %v1713_v44, %v1712_v47  ;;  %v1745_v55 = vadd.f32 %v1744_v9, %v1743_v48  ;;  %1818 = vmatpush.msrb.mxu2 %v1773_v34 }
 0x39b   :  { %1645 = vst [vmem:[#allocation1 + $0x20] ss:$4 sm:$0xff] %v1594_v41  ;;  %v1789_v35 = vld [vmem:[%s3475_s7 + $0x88] sm:$0xff]  ;;  %v1560_v26 = vmul.f32 0.01, %v1543_v43  ;;  %v1715_v17 = vsel %vm1581_vm13, %v3131_v45, 0.0 }
 0x39c   :  { %v1746_v24 = vsel %vm1581_vm13, %v3136_v49, 0.0  ;;  %vm1552_vm5 = vcmp.gt.f32.partialorder %v1543_v43, 0.0  ;;  %1838 = vmatpush.msra.mxu1 %v1789_v35  ;;  %1819 = vmatpush.msrb.mxu2 %v1772_v20  ;;  %v1716_v62 = vadd.f32 %v1715_v17, %v1714_v52  ;;  %v1601_v5 = vrot.slane %v3243_v50, 2 }
 0x39d   :  { %v1747_v1 = vadd.f32 %v1746_v24, %v1745_v55  ;;  %v1568_v11 = vsel %vm1552_vm5, %v1543_v43, %v1560_v26  ;;  %v1605_v9 = vrot.slane %v3266_v32, 6 }
 0x39e   :  { %1839 = vmatpush.msra.mxu1 %v1788_v10  ;;  %v1580_v28 = vrot.slane %v1568_v11, 6 }
 0x3a0   :  { %v3148_v14 = vld.sshfl [vmem:[#allocation1] sm:$0xff pattern:$0x73625140]  ;;  %v3150_v16 = vld.sshfl [vmem:[#allocation1 + $0x8] sm:$0xff pattern:$0x73625140] }
 0x3a1   :  { %1648 = vst [vmem:[#allocation1] ss:$4 sm:$0xff] %v1596_v12  ;;  %v1717_v45 = vsel %vm1581_vm13, %v3148_v14, 0.0  ;;  %v1748_v49 = vsel %vm1581_vm13, %v3150_v16, 0.0  ;;  %v1559_v14 = vmul.f32 0.01, %v1398_v58 }
 0x3a2   :  { %v1646_v39 = vld.sshfl [vmem:[#allocation1 + $0x20] sm:$0xff pattern:$0x73625140]  ;;  %v1647_v40 = vld.sshfl [vmem:[#allocation1 + $0x28] sm:$0xff pattern:$0x73625140]  ;;  %v1718_v21 = vadd.f32 %v1717_v45, %v1716_v62  ;;  %v1749_v23 = vadd.f32 %v1748_v49, %v1747_v1 }
 0x3a3   :  { %1651 = vst [vmem:[#allocation1 + $0x20] ss:$4 sm:$0xff] %v1598_v7  ;;  %v1719_v16 = vsel %vm1581_vm13, %v1646_v39, 0.0  ;;  %v1750_v27 = vsel %vm1581_vm13, %v1647_v40, 0.0  ;;  %v1567_v43 = vsel %vm1551_vm6, %v1398_v58, %v1559_v14 }
 0x3a4   :  { %v1720_v38 = vadd.f32 %v1719_v16, %v1718_v21  ;;  %v1751_v57 = vadd.f32 %v1750_v27, %v1749_v23  ;;  %v3269_v22 = vsel %vm1581_vm13, %v1567_v43, %v1580_v28  ;;  %v3280_v48 = vsel %vm1586_vm15, %v1567_v43, %v1580_v28 }
 0x3a5   :  { %v3283_v52 = vsel %vm1583_vm14, %v1567_v43, %v1580_v28  ;;  %v1610_v26 = vrot.slane %v3280_v48, 4 }
 0x3a6   :  { %v1608_v58 = vrot.slane %v3283_v52, 2 }
 0x3a8   :  { %v1649_v4 = vld.sshfl [vmem:[#allocation1] sm:$0xff pattern:$0x73625140]  ;;  %v1650_v3 = vld.sshfl [vmem:[#allocation1 + $0x8] sm:$0xff pattern:$0x73625140] }
 0x3a9   :  { %1654 = vst [vmem:[#allocation1] ss:$4 sm:$0xff] %v3204_v31  ;;  %v1721_v51 = vsel %vm1581_vm13, %v1649_v4, 0.0  ;;  %v1752_v30 = vsel %vm1581_vm13, %v1650_v3, 0.0 }
 0x3aa   :  { %v1652_v15 = vld.sshfl [vmem:[#allocation1 + $0x20] sm:$0xff pattern:$0x73625140]  ;;  %v1653_v19 = vld.sshfl [vmem:[#allocation1 + $0x28] sm:$0xff pattern:$0x73625140]  ;;  %v1722_v40 = vadd.f32 %v1721_v51, %v1720_v38  ;;  %v1753_v0 = vadd.f32 %v1752_v30, %v1751_v57 }
 0x3ab   :  { %1657 = vst [vmem:[#allocation1 + $0x20] ss:$4 sm:$0xff] %v1601_v5  ;;  %v1723_v4 = vsel %vm1581_vm13, %v1652_v15, 0.0  ;;  %v1754_v3 = vsel %vm1581_vm13, %v1653_v19, 0.0  ;;  %v3296_v19 = vsel %vm1589_vm0, %v1580_v28, %v1567_v43 }
 0x3ac   :  { %v1724_v34 = vadd.f32 %v1723_v4, %v1722_v40  ;;  %v1755_v35 = vadd.f32 %v1754_v3, %v1753_v0  ;;  %v1612_v27 = vrot.slane %v3296_v19, 6 }
 0x3b0   :  { %v1655_v60 = vld.sshfl [vmem:[#allocation1] sm:$0xff pattern:$0x73625140]  ;;  %v1656_v61 = vld.sshfl [vmem:[#allocation1 + $0x8] sm:$0xff pattern:$0x73625140] }
 0x3b1   :  { %1660 = vst [vmem:[#allocation1] ss:$4 sm:$0xff] %v1603_v59  ;;  %v1725_v46 = vsel %vm1581_vm13, %v1655_v60, 0.0  ;;  %v1756_v47 = vsel %vm1581_vm13, %v1656_v61, 0.0 }
 0x3b2   :  { %v1658_v63 = vld.sshfl [vmem:[#allocation1 + $0x20] sm:$0xff pattern:$0x73625140]  ;;  %v1659_v36 = vld.sshfl [vmem:[#allocation1 + $0x28] sm:$0xff pattern:$0x73625140]  ;;  %v1726_v55 = vadd.f32 %v1725_v46, %v1724_v34  ;;  %v1757_v6 = vadd.f32 %v1756_v47, %v1755_v35 }
 0x3b3   :  { %1663 = vst [vmem:[#allocation1 + $0x20] ss:$4 sm:$0xff] %v1605_v9  ;;  %v1727_v20 = vsel %vm1581_vm13, %v1658_v63, 0.0  ;;  %v1758_v17 = vsel %vm1581_vm13, %v1659_v36, 0.0 }
 0x3b4   :  { %v1728_v62 = vadd.f32 %v1727_v20, %v1726_v55  ;;  %v1759_v1 = vadd.f32 %v1758_v17, %v1757_v6 }
 0x3b8   :  { %v1661_v39 = vld.sshfl [vmem:[#allocation1] sm:$0xff pattern:$0x73625140]  ;;  %v1662_v44 = vld.sshfl [vmem:[#allocation1 + $0x8] sm:$0xff pattern:$0x73625140] }
 0x3b9   :  { %1666 = vst [vmem:[#allocation1] ss:$4 sm:$0xff] %v3269_v22  ;;  %v1729_v45 = vsel %vm1581_vm13, %v1661_v39, 0.0  ;;  %v1760_v49 = vsel %vm1581_vm13, %v1662_v44, 0.0 }
 0x3ba   :  { %v1664_v60 = vld.sshfl [vmem:[#allocation1 + $0x20] sm:$0xff pattern:$0x73625140]  ;;  %v1665_v61 = vld.sshfl [vmem:[#allocation1 + $0x28] sm:$0xff pattern:$0x73625140]  ;;  %v1730_v11 = vadd.f32 %v1729_v45, %v1728_v62  ;;  %v1761_v15 = vadd.f32 %v1760_v49, %v1759_v1 }
 0x3bb   :  { %1669 = vst [vmem:[#allocation1 + $0x20] ss:$4 sm:$0xff] %v1608_v58  ;;  %v1731_v21 = vsel %vm1581_vm13, %v1664_v60, 0.0  ;;  %v1762_v23 = vsel %vm1581_vm13, %v1665_v61, 0.0 }
 0x3bc   :  { %v1732_v51 = vadd.f32 %v1731_v21, %v1730_v11  ;;  %v1763_v30 = vadd.f32 %v1762_v23, %v1761_v15  ;;  %v1974_v11 = vld [vmem:[%s3477_s9 + $0x78] sm:$0xff]  ;;  %v1973_v21 = vld [vmem:[%s3477_s9 + $0x70] sm:$0xff] }
 0x3bd   :  { %v1990_v15 = vld [vmem:[%s3477_s9 + $0xf8] sm:$0xff]  ;;  %2050 = vmatpush.msra.mxu3 %v1974_v11  ;;  %v1989_v23 = vld [vmem:[%s3477_s9 + $0xf0] sm:$0xff] }
 0x3be   :  { %2079 = vmatpush.msra.mxu2 %v1990_v15  ;;  %v1977_v11 = vld [vmem:[%s3477_s9 + $0x90] sm:$0xff] }
 0x3bf   :  { %2051 = vmatpush.msra.mxu3 %v1973_v21  ;;  %v1960_v21 = vld [vmem:[%s3477_s9 + $0x8] sm:$0xff] }
 0x3c0   :  { %v1668_v24 = vld.sshfl [vmem:[#allocation1 + $0x8] sm:$0xff pattern:$0x73625140]  ;;  %v1667_v10 = vld.sshfl [vmem:[#allocation1] sm:$0xff pattern:$0x73625140]  ;;  %2080 = vmatpush.msra.mxu2 %v1989_v23 }
 0x3c1   :  { %1672 = vst [vmem:[#allocation1] ss:$4 sm:$0xff] %v1610_v26  ;;  %v1733_v14 = vsel %vm1581_vm13, %v1667_v10, 0.0  ;;  %v1764_v16 = vsel %vm1581_vm13, %v1668_v24, 0.0  ;;  %v1847_v24 = vld [vmem:[%s3476_s8] sm:$0x3] }
 0x3c2   :  { %v1670_v39 = vld.sshfl [vmem:[#allocation1 + $0x20] sm:$0xff pattern:$0x73625140]  ;;  %v1671_v44 = vld.sshfl [vmem:[#allocation1 + $0x28] sm:$0xff pattern:$0x73625140]  ;;  %v1734_v40 = vadd.f32 %v1733_v14, %v1732_v51  ;;  %v1765_v0 = vadd.f32 %v1764_v16, %v1763_v30 }
 0x3c3   :  { %1675 = vst [vmem:[#allocation1 + $0x20] ss:$4 sm:$0xff] %v1612_v27  ;;  %v1735_v28 = vsel %vm1581_vm13, %v1670_v39, 0.0  ;;  %v1766_v43 = vsel %vm1581_vm13, %v1671_v44, 0.0  ;;  %v1849_v10 = vperm.slane %v1847_v24, 0  ;;  %v1850_v45 = vperm.slane %v1847_v24, 1 }
 0x3c4   :  { %v1736_v63 = vadd.f32 %v1735_v28, %v1734_v40  ;;  %v1767_v36 = vadd.f32 %v1766_v43, %v1765_v0  ;;  %v1972_v14 = vld [vmem:[%s3477_s9 + $0x68] sm:$0xff]  ;;  %v1971_v51 = vld [vmem:[%s3477_s9 + $0x60] sm:$0xff]  ;;  %v1970_v39 = vld [vmem:[%s3477_s9 + $0x58] sm:$0xff] }
 0x3c5   :  { %2180 = vmatpush.msk.msrb.mxu1 %vm1855_vm7, %v1849_v10  ;;  %v1988_v16 = vld [vmem:[%s3477_s9 + $0xe8] sm:$0xff]  ;;  %2052 = vmatpush.msra.mxu3 %v1972_v14  ;;  %v1987_v30 = vld [vmem:[%s3477_s9 + $0xe0] sm:$0xff]  ;;  %v1986_v44 = vld [vmem:[%s3477_s9 + $0xd8] sm:$0xff] }
 0x3c6   :  { %2081 = vmatpush.msra.mxu2 %v1988_v16  ;;  %v1969_v40 = vld [vmem:[%s3477_s9 + $0x50] sm:$0xff]  ;;  %v1968_v28 = vld [vmem:[%s3477_s9 + $0x48] sm:$0xff]  ;;  %v1963_v24 = vld [vmem:[%s3477_s9 + $0x20] sm:$0xff] }
 0x3c7   :  { %2053 = vmatpush.msra.mxu3 %v1971_v51  ;;  %v1985_v0 = vld [vmem:[%s3477_s9 + $0xd0] sm:$0xff]  ;;  %v1984_v43 = vld [vmem:[%s3477_s9 + $0xc8] sm:$0xff]  ;;  %v1979_v10 = vld [vmem:[%s3477_s9 + $0xa0] sm:$0xff] }
 0x3c8   :  { %v1673_v38 = vld.sshfl [vmem:[#allocation1] sm:$0xff pattern:$0x73625140]  ;;  %v1674_v57 = vld.sshfl [vmem:[#allocation1 + $0x8] sm:$0xff pattern:$0x73625140]  ;;  %2082 = vmatpush.msra.mxu2 %v1987_v30 }
 0x3c9   :  { %v1737_v4 = vsel %vm1581_vm13, %v1673_v38, 0.0  ;;  %v1768_v3 = vsel %vm1581_vm13, %v1674_v57, 0.0  ;;  %2054 = vmatpush.msra.mxu3 %v1970_v39  ;;  %v1976_v23 = vld [vmem:[%s3477_s9 + $0x88] sm:$0xff]  ;;  %v1959_v14 = vld [vmem:[%s3477_s9] sm:$0xff] }
 0x3ca   :  { %v1738_v46 = vadd.f32 %v1737_v4, %v1736_v63  ;;  %v1769_v47 = vadd.f32 %v1768_v3, %v1767_v36  ;;  %v1676_v34 = vld.sshfl [vmem:[#allocation1 + $0x20] sm:$0xff pattern:$0x73625140]  ;;  %v1677_v35 = vld.sshfl [vmem:[#allocation1 + $0x28] sm:$0xff pattern:$0x73625140]  ;;  %2083 = vmatpush.msra.mxu2 %v1986_v44 }
 0x3cb   :  { %v1739_v55 = vsel %vm1581_vm13, %v1676_v34, 0.0  ;;  %v1770_v6 = vsel %vm1581_vm13, %v1677_v35, 0.0  ;;  %2055 = vmatpush.msra.mxu3 %v1969_v40  ;;  %v1967_v4 = vld [vmem:[%s3477_s9 + $0x40] sm:$0xff]  ;;  %v1982_v34 = vld [vmem:[%s3477_s9 + $0xb8] sm:$0xff] }
 0x3cc   :  { %v1740_v20 = vadd.f32 %v1739_v55, %v1738_v46  ;;  %v1771_v17 = vadd.f32 %v1770_v6, %v1769_v47  ;;  %2084 = vmatpush.msra.mxu2 %v1985_v0  ;;  %v1983_v3 = vld [vmem:[%s3477_s9 + $0xc0] sm:$0xff]  ;;  %v1966_v47 = vld [vmem:[%s3477_s9 + $0x38] sm:$0xff]  ;;  %v1965_v55 = vld [vmem:[%s3477_s9 + $0x30] sm:$0xff] }
 0x3cd   :  { %2056 = vmatpush.msra.mxu3 %v1968_v28  ;;  %v1981_v6 = vld [vmem:[%s3477_s9 + $0xb0] sm:$0xff]  ;;  %v1975_v16 = vld [vmem:[%s3477_s9 + $0x80] sm:$0xff] }
 0x3ce   :  { %1820 = vmatmul.f32.vlgmr.msrb.gmra.mxu2 %v1740_v20  ;;  %1840 = vmatmul.f32.vlgmr.msra.gmra.mxu1 %v1771_v17  ;;  %v1964_v20 = vld [vmem:[%s3477_s9 + $0x28] sm:$0xff] }
 0x3cf   :  { %2182 = vmatpush.msk.msra.mxu1 %vm1855_vm7, %v1850_v45  ;;  %2085 = vmatpush.msra.mxu2 %v1984_v43  ;;  %v1980_v17 = vld [vmem:[%s3477_s9 + $0xa8] sm:$0xff] }
 0x3d0   :  { %2057 = vmatpush.msra.mxu3 %v1967_v4 }
 0x3d1   :  { %2086 = vmatpush.msra.mxu2 %v1983_v3 }
 0x3d2   :  { %2058 = vmatpush.msra.mxu3 %v1966_v47 }
 0x3d3   :  { %2087 = vmatpush.msra.mxu2 %v1982_v34 }
 0x3d4   :  { %2059 = vmatpush.msra.mxu3 %v1965_v55 }
 0x3d5   :  { %2088 = vmatpush.msra.mxu2 %v1981_v6 }
 0x3d6   :  { %2060 = vmatpush.msra.mxu3 %v1964_v20 }
 0x3d7   :  { %2089 = vmatpush.msra.mxu2 %v1980_v17 }
 0x3d8   :  { %2061 = vmatpush.msra.mxu3 %v1963_v24 }
 0x3d9   :  { %2090 = vmatpush.msra.mxu2 %v1979_v10 }
 0x44b   :  { %v1841_v49 = vpop.f32.mrf.mxu1 }
 0x451   :  { %v1821_v60 = vpop.f32.mrf.mxu2 }
 0x452   :  { %v1842_v61 = vadd.f32 %v1841_v49, %v1821_v60  ;;  %v1962_v49 = vld [vmem:[%s3477_s9 + $0x18] sm:$0xff] }
 0x453   :  { %v1978_v60 = vld [vmem:[%s3477_s9 + $0x98] sm:$0xff]  ;;  %2062 = vmatpush.msra.mxu3 %v1962_v49 }
 0x454   :  { %vm1844_vm8 = vcmp.gt.f32.partialorder %v1842_v61, 0.0  ;;  %v1845_v62 = vmul.f32 0.01, %v1842_v61  ;;  %2091 = vmatpush.msra.mxu2 %v1978_v60 }
 0x456   :  { %v1846_v1 = vsel %vm1844_vm8, %v1842_v61, %v1845_v62  ;;  %v1961_v61 = vld [vmem:[%s3477_s9 + $0x10] sm:$0xff]  ;;  %2092 = vmatpush.msra.mxu2 %v1977_v11 }
 0x457   :  { %2181 = vmatmul.msk.f32.vlgmr.msrb.gmra.mxu1 %vm1851_vm9, %v1846_v1  ;;  %2063 = vmatpush.msra.mxu3 %v1961_v61 }
 0x458   :  { %2093 = vmatpush.msra.mxu2 %v1976_v23 }
 0x459   :  { %2064 = vmatpush.msra.mxu3 %v1960_v21 }
 0x45a   :  { %2094 = vmatpush.msra.mxu2 %v1975_v16 }
 0x45b   :  { %2065 = vmatpush.msra.mxu3 %v1959_v14 }
 0x45f   :  { %2183 = vmatmul.msk.f32.vlgmr.msra.gmra.mxu1 %vm1851_vm9, %v1846_v1 }
 0x4d4   :  { %v1877_v38 = vpop.f32.mrf.mxu1 }
 0x4d5   :  { %v2184_v57 = vmul.f32 -1.442695, %v1877_v38 }
 0x4d7   :  { %2197 = vpow2.f32 %v2184_v57 }
 0x4dc   :  { %v1897_v63 = vpop.f32.mrf.mxu1 }
 0x4dd   :  { %v2198_v36 = vpop.eup %2197  ;;  %v2185_v46 = vmul.f32 -1.442695, %v1897_v63 }
 0x4de   :  { %v3368_v35 = vadd.f32 1.0, %v2198_v36 }
 0x4df   :  { %2199 = vpow2.f32 %v2185_v46 }
 0x4e0   :  { %2201 = vrcp.f32 %v3368_v35  ;;  %vm1913_vm12 = vweird.f32 %v3368_v35  ;;  %v1919_v43 = vand.u32 2147483648, %v3368_v35  ;;  %v1917_v4 = vand.u32 2147483647, %v3368_v35 }
 0x4e2   :  { %v1920_v47 = vor.u32 1.1754944e-38, %v1919_v43  ;;  %vm1918_vm2 = vcmp.eq.f32.partialorder %v1917_v4, 8.507059e+37 }
 0x4e5   :  { %v2200_v45 = vpop.eup %2199 }
 0x4e6   :  { %v2202_v62 = vpop.eup %2201  ;;  %v1907_v1 = vadd.f32 1.0, %v2200_v45 }
 0x4e7   :  { %v1909_v15 = vmul.f32 %v2202_v62, %v3368_v35  ;;  %vm1914_vm10 = vweird.f32 %v2202_v62 }
 0x4e8   :  { %2203 = vrcp.f32 %v1907_v1  ;;  %v1934_v44 = vand.u32 2147483648, %v1907_v1  ;;  %v1932_v28 = vand.u32 2147483647, %v1907_v1  ;;  %vm1915_vm14 = vmor %vm1913_vm12, %vm1914_vm10  ;;  %vm1928_vm15 = vweird.f32 %v1907_v1 }
 0x4e9   :  { %v1910_v51 = vsub.f32 1.0, %v1909_v15 }
 0x4ea   :  { %v1935_v63 = vor.u32 1.1754944e-38, %v1934_v44  ;;  %vm1933_vm1 = vcmp.eq.f32.partialorder %v1932_v28, 8.507059e+37 }
 0x4eb   :  { %v1911_v38 = vmul.f32 %v2202_v62, %v1910_v51 }
 0x4ed   :  { %v1912_v40 = vadd.f32 %v2202_v62, %v1911_v38 }
 0x4ee   :  { %v2204_v30 = vpop.eup %2203 }
 0x4ef   :  { %v1924_v57 = vmul.f32 %v2204_v30, %v1907_v1  ;;  %vm1929_vm11 = vweird.f32 %v2204_v30  ;;  %v1916_v36 = vsel %vm1915_vm14, %v2202_v62, %v1912_v40 }
 0x4f0   :  { %vm1930_vm0 = vmor %vm1928_vm15, %vm1929_vm11  ;;  %v1921_v6 = vsel %vm1918_vm2, %v1920_v47, %v1916_v36 }
 0x4f1   :  { %v1925_v39 = vsub.f32 1.0, %v1924_v57 }
 0x4f3   :  { %v1926_v0 = vmul.f32 %v2204_v30, %v1925_v39 }
 0x4f5   :  { %v1927_v3 = vadd.f32 %v2204_v30, %v1926_v0 }
 0x4f7   :  { %v1931_v46 = vsel %vm1930_vm0, %v2204_v30, %v1927_v3 }
 0x4f8   :  { %v1936_v34 = vsel %vm1933_vm1, %v1935_v63, %v1931_v46 }
 0x4f9   :  { %v1940_v55 = vrot.slane %v1936_v34, 6 }
 0x4fb   :  { %v1941_v20 = vsel %vm1581_vm13, %v1921_v6, %v1940_v55  ;;  %vm2136_vm13 = vcmask 123904  }
 0x4fc   :  { %v1943_v17 = vmul.f32 %v1941_v20, %v3041_v53  ;;  %v1944_v24 = vmul.f32 %v1941_v20, %v1585_v13  ;;  %v1945_v35 = vmul.f32 %v1941_v20, %v1588_v29  ;;  %v1946_v10 = vmul.f32 %v1941_v20, %v1591_v2 }
 0x4fd   :  { %v1947_v45 = vmul.f32 %v1941_v20, %v3097_v33  ;;  %v1948_v49 = vmul.f32 %v1941_v20, %v1594_v41  ;;  %v1949_v60 = vmul.f32 %v1941_v20, %v1596_v12  ;;  %v1950_v53 = vmul.f32 %v1941_v20, %v1598_v7 }
 0x4fe   :  { %2011 = vst [vmem:[#allocation1] ss:$4 sm:$0xff] %v1943_v17  ;;  %v1951_v54 = vmul.f32 %v1941_v20, %v3204_v31  ;;  %v1952_v13 = vmul.f32 %v1941_v20, %v1601_v5  ;;  %v1953_v25 = vmul.f32 %v1941_v20, %v1603_v59  ;;  %v1954_v2 = vmul.f32 %v1941_v20, %v1605_v9  ;;  %v2196_v59 = vld [vmem:[%s3478_s10] ss:$0 sm:$0xff]  ;;  %s2262_s10 = smov [#allocation8]  }
 0x4ff   :  { %2013 = vst [vmem:[#allocation1 + $0x1] ss:$4 sm:$0xff] %v1944_v24  ;;  %v1955_v33 = vmul.f32 %v1941_v20, %v3269_v22  ;;  %v1956_v41 = vmul.f32 %v1941_v20, %v1608_v58  ;;  %v1957_v12 = vmul.f32 %v1941_v20, %v1610_v26  ;;  %v1958_v8 = vmul.f32 %v1941_v20, %v1612_v27  ;;  %s2157_s27 = sshll.u32 %s2262_s10, 4  ;;  %s2158_s27 = int_to_ptr.vmem [resolvable:$true] %s2157_s27 }
 0x500   :  { %2015 = vst [vmem:[#allocation1 + $0x2] ss:$4 sm:$0xff] %v1945_v35 }
 0x501   :  { %2017 = vst [vmem:[#allocation1 + $0x3] ss:$4 sm:$0xff] %v1946_v10 }
 0x502   :  { %2019 = vst [vmem:[#allocation1 + $0x20] ss:$4 sm:$0xff] %v1947_v45 }
 0x503   :  { %2021 = vst [vmem:[#allocation1 + $0x21] ss:$4 sm:$0xff] %v1948_v49 }
 0x504   :  { %2023 = vst [vmem:[#allocation1 + $0x22] ss:$4 sm:$0xff] %v1949_v60 }
 0x505   :  { %2025 = vst [vmem:[#allocation1 + $0x23] ss:$4 sm:$0xff] %v1950_v53 }
 0x508   :  { %v2026_v18 = vld.sshfl [vmem:[#allocation1] sm:$0xff pattern:$0x73625140]  ;;  %v2027_v29 = vld.sshfl [vmem:[#allocation1 + $0x8] sm:$0xff pattern:$0x73625140] }
 0x509   :  { %2066 = vmatmul.f32.vlgmr.msra.gmra.mxu3 %v2026_v18  ;;  %2095 = vmatmul.f32.vlgmr.msra.gmra.mxu2 %v2027_v29  ;;  %2030 = vst [vmem:[#allocation1] ss:$4 sm:$0xff] %v1951_v54 }
 0x50a   :  { %2031 = vst [vmem:[#allocation1 + $0x1] ss:$4 sm:$0xff] %v1952_v13 }
 0x50b   :  { %2032 = vst [vmem:[#allocation1 + $0x2] ss:$4 sm:$0xff] %v1953_v25 }
 0x50c   :  { %2033 = vst [vmem:[#allocation1 + $0x3] ss:$4 sm:$0xff] %v1954_v2  ;;  %v2028_v37 = vld.sshfl [vmem:[#allocation1 + $0x20] sm:$0xff pattern:$0x73625140] }
 0x50d   :  { %v2029_v42 = vld.sshfl [vmem:[#allocation1 + $0x28] sm:$0xff pattern:$0x73625140] }
 0x50e   :  { %2034 = vst [vmem:[#allocation1 + $0x20] ss:$4 sm:$0xff] %v1955_v33 }
 0x50f   :  { %2035 = vst [vmem:[#allocation1 + $0x21] ss:$4 sm:$0xff] %v1956_v41 }
 0x510   :  { %2036 = vst [vmem:[#allocation1 + $0x22] ss:$4 sm:$0xff] %v1957_v12 }
 0x511   :  { %2069 = vmatmul.f32.gmra.mxu3 %v2028_v37  ;;  %2098 = vmatmul.f32.gmra.mxu2 %v2029_v42  ;;  %2037 = vst [vmem:[#allocation1 + $0x23] ss:$4 sm:$0xff] %v1958_v8 }
 0x513   :  { %v2038_v7 = vld.sshfl [vmem:[#allocation1] sm:$0xff pattern:$0x73625140]  ;;  %v2039_v31 = vld.sshfl [vmem:[#allocation1 + $0x8] sm:$0xff pattern:$0x73625140] }
 0x518   :  { %v2040_v56 = vld.sshfl [vmem:[#allocation1 + $0x20] sm:$0xff pattern:$0x73625140]  ;;  %v2041_v50 = vld.sshfl [vmem:[#allocation1 + $0x28] sm:$0xff pattern:$0x73625140] }
 0x519   :  { %2072 = vmatmul.f32.gmra.mxu3 %v2038_v7  ;;  %2101 = vmatmul.f32.gmra.mxu2 %v2039_v31 }
 0x521   :  { %2075 = vmatmul.f32.gmra.mxu3 %v2040_v56  ;;  %2104 = vmatmul.f32.gmra.mxu2 %v2041_v50 }
 0x58c   :  { %v2067_v5 = vpop.f32.mrf.mxu3  ;;  %v2096_v32 = vpop.f32.mrf.mxu2 }
 0x58d   :  { %v2068_v22 = vadd.f32 %v2196_v59, %v2067_v5 }
 0x58f   :  { %v2097_v9 = vadd.f32 %v2096_v32, %v2068_v22 }
 0x591   :  { %v2112_v48 = vrot.slane %v2097_v9, 2  ;;  %v2113_v52 = vrot.slane %v2097_v9, 4  ;;  %v2114_v26 = vrot.slane %v2097_v9, 6  ;;  %2137 = vst.msk [vmem:[#allocation8] sm:$0x3] %vm2136_vm13, %v2097_v9 }
 0x593   :  { %2138 = vst.msk [vmem:[#allocation8 + $0x2] sm:$0x3] %vm2136_vm13, %v2112_v48 }
 0x594   :  { %2139 = vst.msk [vmem:[#allocation8 + $0x4] sm:$0x3] %vm2136_vm13, %v2113_v52  ;;  %v2070_v58 = vpop.f32.mrf.mxu3  ;;  %v2099_v19 = vpop.f32.mrf.mxu2 }
 0x595   :  { %2140 = vst.msk [vmem:[#allocation8 + $0x6] sm:$0x3] %vm2136_vm13, %v2114_v26  ;;  %v2071_v27 = vadd.f32 %v2196_v59, %v2070_v58 }
 0x597   :  { %v2100_v61 = vadd.f32 %v2099_v19, %v2071_v27 }
 0x599   :  { %v2115_v62 = vrot.slane %v2100_v61, 2  ;;  %v2116_v1 = vrot.slane %v2100_v61, 4  ;;  %v2117_v11 = vrot.slane %v2100_v61, 6  ;;  %2141 = vst.msk [vmem:[#allocation8 + $0x8] sm:$0x3] %vm2136_vm13, %v2100_v61 }
 0x59b   :  { %2142 = vst.msk [vmem:[#allocation8 + $0xa] sm:$0x3] %vm2136_vm13, %v2115_v62 }
 0x59c   :  { %2143 = vst.msk [vmem:[#allocation8 + $0xc] sm:$0x3] %vm2136_vm13, %v2116_v1  ;;  %v2073_v15 = vpop.f32.mrf.mxu3  ;;  %v2102_v21 = vpop.f32.mrf.mxu2 }
 0x59d   :  { %2144 = vst.msk [vmem:[#allocation8 + $0xe] sm:$0x3] %vm2136_vm13, %v2117_v11  ;;  %v2074_v23 = vadd.f32 %v2196_v59, %v2073_v15 }
 0x59f   :  { %v2103_v14 = vadd.f32 %v2102_v21, %v2074_v23 }
 0x5a1   :  { %v2118_v16 = vrot.slane %v2103_v14, 2  ;;  %v2119_v51 = vrot.slane %v2103_v14, 4  ;;  %v2120_v30 = vrot.slane %v2103_v14, 6  ;;  %2145 = vst.msk [vmem:[#allocation8 + $0x10] sm:$0x3] %vm2136_vm13, %v2103_v14 }
 0x5a3   :  { %2146 = vst.msk [vmem:[#allocation8 + $0x12] sm:$0x3] %vm2136_vm13, %v2118_v16 }
 0x5a4   :  { %2147 = vst.msk [vmem:[#allocation8 + $0x14] sm:$0x3] %vm2136_vm13, %v2119_v51  ;;  %v2076_v38 = vpop.f32.mrf.mxu3  ;;  %v2105_v39 = vpop.f32.mrf.mxu2 }
 0x5a5   :  { %2148 = vst.msk [vmem:[#allocation8 + $0x16] sm:$0x3] %vm2136_vm13, %v2120_v30  ;;  %v2077_v57 = vadd.f32 %v2196_v59, %v2076_v38 }
 0x5a7   :  { %v2106_v44 = vadd.f32 %v2105_v39, %v2077_v57 }
 0x5a9   :  { %v2121_v40 = vrot.slane %v2106_v44, 2  ;;  %v2122_v0 = vrot.slane %v2106_v44, 4  ;;  %v2123_v28 = vrot.slane %v2106_v44, 6  ;;  %2149 = vst.msk [vmem:[#allocation8 + $0x18] sm:$0x3] %vm2136_vm13, %v2106_v44 }
 0x5ab   :  { %2150 = vst.msk [vmem:[#allocation8 + $0x1a] sm:$0x3] %vm2136_vm13, %v2121_v40 }
 0x5ac   :  { %2151 = vst.msk [vmem:[#allocation8 + $0x1c] sm:$0x3] %vm2136_vm13, %v2122_v0 }
 0x5ad   :  { %2152 = vst.msk [vmem:[#allocation8 + $0x1e] sm:$0x3] %vm2136_vm13, %v2123_v28 }
 0x5ae   :  { %2165 = dma.vmem_to_hbm [thread:$0]  %s2158_s27, 512, %s2160_s4, [#allocation7], %s2263_s29, %s2263_s29, %s2264_s6  }
 0x5af   :  { %2255 = dma.done.wait [#allocation7], 512  }
 0x5b0   :  { %2256 = vsyncadd [#allocation7], 4294966784 }
 0x5b1   :  { %2170 = vsyncpa [#allocation6], 1 }
 0x5b2   :  { %2171 = vsyncpa [#allocation7], 1 }

</bundles_post_ra>
